<compile_context>
chip_gen: v5e
topology: v5e:2x2
jax: 0.10.0
libtpu: 0.0.40
codegen_flags: <defaults>
</compile_context>

<pallas_src>
import functools

import jax
import jax.numpy as jnp
from jax.experimental import pallas as pl
from jax.experimental.pallas import tpu as pltpu

_SUB_N = 256  # rows per in-kernel sub-chunk (bounds vreg live ranges)


def _round_up(x: int, m: int) -> int:
    return ((x + m - 1) // m) * m


def _sep_bce_kernel(logits_ref, labels_ref, out_ref, acc_ref, *,
                    n_rows: int, tile_n: int, sub_n: int,
                    tiles_per_core: int, mask_possible: bool):
    """Per-tile stable BCE-with-logits + vector partial sums.

    acc_ref (VMEM, f32[4, 8, C]):
        [0] sum of positive losses, [1] positive count,
        [2] sum of negative losses, [3] negative count,
    each held as an (8, C) vector partial (VPU-only adds).  Per-core partials
    are written to out_ref on the last step; the wrapper does the final reduce.
    """
    c = pl.program_id(0)   # core / row-shard index ("parallel")
    i = pl.program_id(1)   # tile step within the shard ("arbitrary")

    @pl.when(i == 0)
    def _init():
        acc_ref[...] = jnp.zeros_like(acc_ref)

    # Logical (unclamped) tile start; used for validity masking.
    tile_start = (c * tiles_per_core + i) * tile_n
    n_sub = tile_n // sub_n

    def accumulate(masked: bool):
        def body(k, carry):
            start = pl.multiple_of(k * sub_n, sub_n)
            x = logits_ref[pl.ds(start, sub_n), :].astype(jnp.float32)
            lbl = labels_ref[pl.ds(start, sub_n), :].astype(jnp.float32)

            # Arithmetic indicators (labels in {-1, 0, 1}):
            #   pos_f = 1 iff label==1 ; neg_f = 1 iff label==0.
            pos_f = jnp.maximum(lbl, 0.0)
            neg_f = 1.0 - jnp.abs(lbl)

            if masked:
                # Only traced for the ragged/phantom tile path.
                row = jax.lax.broadcasted_iota(jnp.int32, x.shape, 0)
                valid = (tile_start + start + row) < n_rows
                x = jnp.where(valid, x, 0.0)        # keep garbage NaN/Inf out
                pos_f = jnp.where(valid, pos_f, 0.0)
                neg_f = jnp.where(valid, neg_f, 0.0)

            # Stable BCE with logits: loss = max(x,0) - x*y + log1p(exp(-|x|)).
            #   y == 1  -> sp - x ;  y == 0 -> sp ;  y == -1 -> excluded.
            sp = jnp.maximum(x, 0.0) + jnp.log1p(jnp.exp(-jnp.abs(x)))

            def fold(v):
                # (sub_n, C) -> (8, C): sum over leading axis is pure VPU vreg
                # adds (no cross-lane / cross-sublane XLU work).
                return jnp.sum(v.reshape(sub_n // 8, 8, v.shape[-1]), axis=0)

            acc_ref[0] += fold(pos_f * (sp - x))
            acc_ref[1] += fold(pos_f)
            acc_ref[2] += fold(neg_f * sp)
            acc_ref[3] += fold(neg_f)
            return carry

        unroll = True if n_sub <= 8 else 4
        jax.lax.fori_loop(0, n_sub, body, 0, unroll=unroll)

    if mask_possible:
        # Only the tile(s) that extend past n_rows pay the masking cost.
        needs_mask = tile_start + tile_n > n_rows

        @pl.when(jnp.logical_not(needs_mask))
        def _fast():
            accumulate(False)

        @pl.when(needs_mask)
        def _ragged():
            accumulate(True)
    else:
        accumulate(False)

    @pl.when(i == pl.num_programs(1) - 1)
    def _finalize():
        out_ref[0] = acc_ref[...]


def sep_bce_loss(logits: jax.Array, labels: jax.Array, *,
                 tile_n: int | None = None) -> jax.Array:
    """Pallas implementation of SepBCELoss.forward.

    logits: f32/bf16 [N, C]; labels: int8/int32/f32 [N, C] with values {-1,0,1}.
    Returns scalar f32.  (As in torch, the result is NaN if there are zero
    positives or zero negatives — mean over an empty selection.)
    Counts are accumulated in f32 per (8, C) bucket; exact while each bucket
    count stays below 2**24 (i.e. far beyond realistic batch sizes).
    """
    N, C = logits.shape
    assert labels.shape == (N, C)

    # ---- tile sizing -------------------------------------------------------
    if tile_n is None:
        tile_n = (2 << 20) // (C * 4)       # ~2 MiB of f32 logits per DMA tile
    tile_n = max(32, tile_n)
    if tile_n >= _SUB_N:
        sub_n = _SUB_N
        tile_n = _round_up(tile_n, sub_n)
    else:
        # Very wide C: one sub-chunk per tile; 32 keeps int8 label tiling legal.
        tile_n = _round_up(tile_n, 32)
        sub_n = tile_n
    tile_n = min(tile_n, _round_up(N, sub_n))

    total_tiles = pl.cdiv(N, tile_n)
    n_cores = 2 if total_tiles >= 2 else 1       # 2-way split for v7x megacore
    tiles_per_core = pl.cdiv(total_tiles, n_cores)
    # True if any tile extends past N (ragged last tile and/or phantom tile).
    mask_possible = (n_cores * tiles_per_core * tile_n) > N

    def in_map(c, i):
        # Clamp so a phantom tile (odd tile count) re-reads the last valid tile;
        # its contribution is fully masked out inside the kernel.
        t = jnp.minimum(c * tiles_per_core + i, total_tiles - 1)
        return (t, 0)

    kernel = functools.partial(
        _sep_bce_kernel, n_rows=N, tile_n=tile_n, sub_n=sub_n,
        tiles_per_core=tiles_per_core, mask_possible=mask_possible)

    partials = pl.pallas_call(
        kernel,
        out_shape=jax.ShapeDtypeStruct((n_cores, 4, 8, C), jnp.float32),
        grid_spec=pltpu.PrefetchScalarGridSpec(
            num_scalar_prefetch=0,
            grid=(n_cores, tiles_per_core),
            in_specs=[
                pl.BlockSpec((tile_n, C), in_map),
                pl.BlockSpec((tile_n, C), in_map),
            ],
            out_specs=pl.BlockSpec((1, 4, 8, C), lambda c, i: (c, 0, 0, 0)),
            scratch_shapes=[pltpu.VMEM((4, 8, C), jnp.float32)],
        ),
        compiler_params=pltpu.CompilerParams(
            dimension_semantics=("parallel", "arbitrary"),
            vmem_limit_bytes=32 * 1024 * 1024,
        ),
    )(logits, labels)

    # Tiny epilogue: combine per-core vector partials into the scalar loss.
    sums = jnp.sum(partials, axis=(0, 2, 3))     # [pos_sum, pos_cnt, neg_sum, neg_cnt]
    pos_mean = sums[0] / sums[1]
    neg_mean = sums[2] / sums[3]
    return (pos_mean + neg_mean) * 0.5


def sep_bce_loss_ref(logits, labels):
    """Pure-JAX reference for correctness checking."""
    x = logits.astype(jnp.float32)
    y_raw = labels.astype(jnp.float32)
    pos = y_raw == 1.0
    neg = y_raw == 0.0
    y = jnp.where(y_raw == -1.0, 0.0, y_raw)
    loss = jnp.maximum(x, 0.0) - x * y + jnp.log1p(jnp.exp(-jnp.abs(x)))
    pos_mean = jnp.sum(jnp.where(pos, loss, 0.0)) / jnp.sum(pos)
    neg_mean = jnp.sum(jnp.where(neg, loss, 0.0)) / jnp.sum(neg)
    return (pos_mean + neg_mean) / 2.0


if __name__ == "__main__":
    key = jax.random.PRNGKey(0)
    k_logits, k_labels = jax.random.split(key)

    # Small multi-label shape: 700 examples, 128 classes.  N is deliberately
    # not a multiple of the tile size so the ragged / phantom-tile paths run.
    N, C = 700, 128
    logits = jax.random.normal(k_logits, (N, C), dtype=jnp.float32)
    # labels in {-1, 0, 1}: mostly negatives, some positives, some ignored.
    labels = jax.random.choice(
        k_labels,
        jnp.array([-1, 0, 1], dtype=jnp.int8),
        shape=(N, C),
        p=jnp.array([0.1, 0.7, 0.2]),
    )

    # Multi-tile path: 3 row tiles -> 2-way core split x 2 steps, including one
    # ragged tile and one phantom (fully masked, clamped-DMA) tile.
    out_tiled = jax.block_until_ready(sep_bce_loss(logits, labels, tile_n=256))
    # Default path: single large ragged tile on a 1x1 grid.
    out_default = jax.block_until_ready(sep_bce_loss(logits, labels))
    ref = jax.block_until_ready(sep_bce_loss_ref(logits, labels))

    assert jnp.allclose(out_tiled, ref, rtol=1e-5, atol=1e-5), (out_tiled, ref)
    assert jnp.allclose(out_default, ref, rtol=1e-5, atol=1e-5), (out_default, ref)

    print("KERNEL_OK")
</pallas_src>

<mosaic_0001>
module attributes {stable_mosaic.version = 11 : i64} {
  func.func @_sep_bce_kernel(%arg0: i32, %arg1: i32, %arg2: memref<256x128xf32, #tpu.memory_space<vmem>>, %arg3: memref<256x128xi8, #tpu.memory_space<vmem>>, %arg4: memref<1x4x8x128xf32, #tpu.memory_space<vmem>>, %arg5: memref<4x8x128xf32, #tpu.memory_space<vmem>>) attributes {dimension_semantics = [#tpu.dimension_semantics<parallel>, #tpu.dimension_semantics<arbitrary>], iteration_bounds = array<i64: 2, 2>, scalar_prefetch = 0 : i64, scratch_operands = 1 : i64, tpu.core_type = #tpu.core_type<tc>, window_params = [{transform_indices = @transform_0, window_bounds = array<i64: 256, 128>}, {transform_indices = @transform_1, window_bounds = array<i64: 256, 128>}, {transform_indices = @transform_2, window_bounds = array<i64: 1, 4, 8, 128>}]} {
    %c0_i32 = arith.constant 0 : i32
    %0 = arith.cmpi eq, %arg1, %c0_i32 : i32
    %1 = arith.extui %0 : i1 to i32
    %c0_i32_0 = arith.constant 0 : i32
    %2 = arith.cmpi ne, %1, %c0_i32_0 : i32
    scf.if %2 {
      %cst = arith.constant 0.000000e+00 : f32
      %16 = vector.broadcast %cst : f32 to vector<4x8x128xf32>
      %c0 = arith.constant 0 : index
      %c0_5 = arith.constant 0 : index
      %c0_6 = arith.constant 0 : index
      %17 = vector.load %arg5[%c0, %c0_5, %c0_6] : memref<4x8x128xf32, #tpu.memory_space<vmem>>, vector<4x8x128xf32>
      tpu.vector_store %arg5[%c0, %c0_5, %c0_6], %16 {strides = array<i32>} : memref<4x8x128xf32, #tpu.memory_space<vmem>>, vector<4x8x128xf32>,
    } else {
    }
    %c2_i32 = arith.constant 2 : i32
    %3 = arith.muli %arg0, %c2_i32 : i32
    %4 = arith.addi %3, %arg1 : i32
    %c256_i32 = arith.constant 256 : i32
    %5 = arith.muli %4, %c256_i32 : i32
    %c256_i32_1 = arith.constant 256 : i32
    %6 = arith.addi %5, %c256_i32_1 : i32
    %c700_i32 = arith.constant 700 : i32
    %7 = arith.cmpi sgt, %6, %c700_i32 : i32
    %true = arith.constant true
    %8 = arith.xori %7, %true : i1
    %9 = arith.extui %8 : i1 to i32
    %c0_i32_2 = arith.constant 0 : i32
    %10 = arith.cmpi ne, %9, %c0_i32_2 : i32
    scf.if %10 {
      %c0_i32_5 = arith.constant 0 : i32
      %c256_i32_6 = arith.constant 256 : i32
      %16 = arith.muli %c0_i32_5, %c256_i32_6 : i32
      %17 = tpu.assume_multiple %16, 256 : i32
      %18 = arith.index_cast %17 : i32 to index
      %c0 = arith.constant 0 : index
      %19 = vector.load %arg2[%18, %c0] : memref<256x128xf32, #tpu.memory_space<vmem>>, vector<256x128xf32>
      %20 = arith.index_cast %17 : i32 to index
      %c0_7 = arith.constant 0 : index
      %21 = vector.load %arg3[%20, %c0_7] : memref<256x128xi8, #tpu.memory_space<vmem>>, vector<256x128xi8>
      %22 = arith.sitofp %21 : vector<256x128xi8> to vector<256x128xf32>
      %cst = arith.constant 0.000000e+00 : f32
      %23 = vector.broadcast %cst : f32 to vector<256x128xf32>
      %24 = arith.maximumf %22, %23 : vector<256x128xf32>
      %25 = math.absf %22 : vector<256x128xf32>
      %cst_8 = arith.constant 1.000000e+00 : f32
      %26 = vector.broadcast %cst_8 : f32 to vector<256x128xf32>
      %27 = arith.subf %26, %25 : vector<256x128xf32>
      %cst_9 = arith.constant 0.000000e+00 : f32
      %28 = vector.broadcast %cst_9 : f32 to vector<256x128xf32>
      %29 = arith.maximumf %19, %28 : vector<256x128xf32>
      %30 = math.absf %19 : vector<256x128xf32>
      %cst_10 = arith.constant 0.000000e+00 : f32
      %31 = vector.broadcast %cst_10 : f32 to vector<256x128xf32>
      %32 = arith.subf %31, %30 : vector<256x128xf32>
      %33 = math.exp %32 : vector<256x128xf32>
      %34 = math.log1p %33 : vector<256x128xf32>
      %35 = arith.addf %29, %34 : vector<256x128xf32>
      %c0_11 = arith.constant 0 : index
      %c0_12 = arith.constant 0 : index
      %c0_13 = arith.constant 0 : index
      %36 = vector.load %arg5[%c0_11, %c0_12, %c0_13] : memref<4x8x128xf32, #tpu.memory_space<vmem>>, vector<1x8x128xf32>
      %37 = vector.shape_cast %36 : vector<1x8x128xf32> to vector<8x128xf32>
      %38 = arith.subf %35, %19 : vector<256x128xf32>
      %39 = arith.mulf %24, %38 : vector<256x128xf32>
      %40 = vector.shape_cast %39 : vector<256x128xf32> to vector<32x8x128xf32>
      %cst_14 = arith.constant dense<0.000000e+00> : vector<8x128xf32>
      %41 = vector.multi_reduction <add>, %40, %cst_14 [0] : vector<32x8x128xf32> to vector<8x128xf32>
      %42 = arith.addf %37, %41 : vector<8x128xf32>
      %c0_15 = arith.constant 0 : index
      %c0_16 = arith.constant 0 : index
      %c0_17 = arith.constant 0 : index
      %43 = vector.load %arg5[%c0_15, %c0_16, %c0_17] : memref<4x8x128xf32, #tpu.memory_space<vmem>>, vector<1x8x128xf32>
      %44 = vector.shape_cast %43 : vector<1x8x128xf32> to vector<8x128xf32>
      %45 = vector.shape_cast %42 : vector<8x128xf32> to vector<1x8x128xf32>
      tpu.vector_store %arg5[%c0_15, %c0_16, %c0_17], %45 {strides = array<i32>} : memref<4x8x128xf32, #tpu.memory_space<vmem>>, vector<1x8x128xf32>,
      %c1 = arith.constant 1 : index
      %c0_18 = arith.constant 0 : index
      %c0_19 = arith.constant 0 : index
      %46 = vector.load %arg5[%c1, %c0_18, %c0_19] : memref<4x8x128xf32, #tpu.memory_space<vmem>>, vector<1x8x128xf32>
      %47 = vector.shape_cast %46 : vector<1x8x128xf32> to vector<8x128xf32>
      %48 = vector.shape_cast %24 : vector<256x128xf32> to vector<32x8x128xf32>
      %cst_20 = arith.constant dense<0.000000e+00> : vector<8x128xf32>
      %49 = vector.multi_reduction <add>, %48, %cst_20 [0] : vector<32x8x128xf32> to vector<8x128xf32>
      %50 = arith.addf %47, %49 : vector<8x128xf32>
      %c1_21 = arith.constant 1 : index
      %c0_22 = arith.constant 0 : index
      %c0_23 = arith.constant 0 : index
      %51 = vector.load %arg5[%c1_21, %c0_22, %c0_23] : memref<4x8x128xf32, #tpu.memory_space<vmem>>, vector<1x8x128xf32>
      %52 = vector.shape_cast %51 : vector<1x8x128xf32> to vector<8x128xf32>
      %53 = vector.shape_cast %50 : vector<8x128xf32> to vector<1x8x128xf32>
      tpu.vector_store %arg5[%c1_21, %c0_22, %c0_23], %53 {strides = array<i32>} : memref<4x8x128xf32, #tpu.memory_space<vmem>>, vector<1x8x128xf32>,
      %c2 = arith.constant 2 : index
      %c0_24 = arith.constant 0 : index
      %c0_25 = arith.constant 0 : index
      %54 = vector.load %arg5[%c2, %c0_24, %c0_25] : memref<4x8x128xf32, #tpu.memory_space<vmem>>, vector<1x8x128xf32>
      %55 = vector.shape_cast %54 : vector<1x8x128xf32> to vector<8x128xf32>
      %56 = arith.mulf %27, %35 : vector<256x128xf32>
      %57 = vector.shape_cast %56 : vector<256x128xf32> to vector<32x8x128xf32>
      %cst_26 = arith.constant dense<0.000000e+00> : vector<8x128xf32>
      %58 = vector.multi_reduction <add>, %57, %cst_26 [0] : vector<32x8x128xf32> to vector<8x128xf32>
      %59 = arith.addf %55, %58 : vector<8x128xf32>
      %c2_27 = arith.constant 2 : index
      %c0_28 = arith.constant 0 : index
      %c0_29 = arith.constant 0 : index
      %60 = vector.load %arg5[%c2_27, %c0_28, %c0_29] : memref<4x8x128xf32, #tpu.memory_space<vmem>>, vector<1x8x128xf32>
      %61 = vector.shape_cast %60 : vector<1x8x128xf32> to vector<8x128xf32>
      %62 = vector.shape_cast %59 : vector<8x128xf32> to vector<1x8x128xf32>
      tpu.vector_store %arg5[%c2_27, %c0_28, %c0_29], %62 {strides = array<i32>} : memref<4x8x128xf32, #tpu.memory_space<vmem>>, vector<1x8x128xf32>,
      %c3 = arith.constant 3 : index
      %c0_30 = arith.constant 0 : index
      %c0_31 = arith.constant 0 : index
      %63 = vector.load %arg5[%c3, %c0_30, %c0_31] : memref<4x8x128xf32, #tpu.memory_space<vmem>>, vector<1x8x128xf32>
      %64 = vector.shape_cast %63 : vector<1x8x128xf32> to vector<8x128xf32>
      %65 = vector.shape_cast %27 : vector<256x128xf32> to vector<32x8x128xf32>
      %cst_32 = arith.constant dense<0.000000e+00> : vector<8x128xf32>
      %66 = vector.multi_reduction <add>, %65, %cst_32 [0] : vector<32x8x128xf32> to vector<8x128xf32>
      %67 = arith.addf %64, %66 : vector<8x128xf32>
      %c3_33 = arith.constant 3 : index
      %c0_34 = arith.constant 0 : index
      %c0_35 = arith.constant 0 : index
      %68 = vector.load %arg5[%c3_33, %c0_34, %c0_35] : memref<4x8x128xf32, #tpu.memory_space<vmem>>, vector<1x8x128xf32>
      %69 = vector.shape_cast %68 : vector<1x8x128xf32> to vector<8x128xf32>
      %70 = vector.shape_cast %67 : vector<8x128xf32> to vector<1x8x128xf32>
      tpu.vector_store %arg5[%c3_33, %c0_34, %c0_35], %70 {strides = array<i32>} : memref<4x8x128xf32, #tpu.memory_space<vmem>>, vector<1x8x128xf32>,
      %c1_i32_36 = arith.constant 1 : i32
    } else {
    }
    %11 = arith.extui %7 : i1 to i32
    %c0_i32_3 = arith.constant 0 : i32
    %12 = arith.cmpi ne, %11, %c0_i32_3 : i32
    scf.if %12 {
      %c0_i32_5 = arith.constant 0 : i32
      %c256_i32_6 = arith.constant 256 : i32
      %16 = arith.muli %c0_i32_5, %c256_i32_6 : i32
      %17 = tpu.assume_multiple %16, 256 : i32
      %18 = arith.index_cast %17 : i32 to index
      %c0 = arith.constant 0 : index
      %19 = vector.load %arg2[%18, %c0] : memref<256x128xf32, #tpu.memory_space<vmem>>, vector<256x128xf32>
      %20 = arith.index_cast %17 : i32 to index
      %c0_7 = arith.constant 0 : index
      %21 = vector.load %arg3[%20, %c0_7] : memref<256x128xi8, #tpu.memory_space<vmem>>, vector<256x128xi8>
      %22 = arith.sitofp %21 : vector<256x128xi8> to vector<256x128xf32>
      %cst = arith.constant 0.000000e+00 : f32
      %23 = vector.broadcast %cst : f32 to vector<256x128xf32>
      %24 = arith.maximumf %22, %23 : vector<256x128xf32>
      %25 = math.absf %22 : vector<256x128xf32>
      %cst_8 = arith.constant 1.000000e+00 : f32
      %26 = vector.broadcast %cst_8 : f32 to vector<256x128xf32>
      %27 = arith.subf %26, %25 : vector<256x128xf32>
      %28 = tpu.iota {dimensions = array<i32: 0>} : vector<256x128xi32>
      %29 = arith.addi %5, %17 : i32
      %30 = vector.broadcast %29 : i32 to vector<256x128xi32>
      %31 = arith.addi %30, %28 : vector<256x128xi32>
      %c700_i32_9 = arith.constant 700 : i32
      %32 = vector.broadcast %c700_i32_9 : i32 to vector<256x128xi32>
      %33 = arith.cmpi slt, %31, %32 : vector<256x128xi32>
      %cst_10 = arith.constant 0.000000e+00 : f32
      %34 = vector.broadcast %cst_10 : f32 to vector<256x128xf32>
      %35 = arith.select %33, %19, %34 : vector<256x128xi1>, vector<256x128xf32>
      %cst_11 = arith.constant 0.000000e+00 : f32
      %36 = vector.broadcast %cst_11 : f32 to vector<256x128xf32>
      %37 = arith.select %33, %24, %36 : vector<256x128xi1>, vector<256x128xf32>
      %cst_12 = arith.constant 0.000000e+00 : f32
      %38 = vector.broadcast %cst_12 : f32 to vector<256x128xf32>
      %39 = arith.select %33, %27, %38 : vector<256x128xi1>, vector<256x128xf32>
      %cst_13 = arith.constant 0.000000e+00 : f32
      %40 = vector.broadcast %cst_13 : f32 to vector<256x128xf32>
      %41 = arith.maximumf %35, %40 : vector<256x128xf32>
      %42 = math.absf %35 : vector<256x128xf32>
      %cst_14 = arith.constant 0.000000e+00 : f32
      %43 = vector.broadcast %cst_14 : f32 to vector<256x128xf32>
      %44 = arith.subf %43, %42 : vector<256x128xf32>
      %45 = math.exp %44 : vector<256x128xf32>
      %46 = math.log1p %45 : vector<256x128xf32>
      %47 = arith.addf %41, %46 : vector<256x128xf32>
      %c0_15 = arith.constant 0 : index
      %c0_16 = arith.constant 0 : index
      %c0_17 = arith.constant 0 : index
      %48 = vector.load %arg5[%c0_15, %c0_16, %c0_17] : memref<4x8x128xf32, #tpu.memory_space<vmem>>, vector<1x8x128xf32>
      %49 = vector.shape_cast %48 : vector<1x8x128xf32> to vector<8x128xf32>
      %50 = arith.subf %47, %35 : vector<256x128xf32>
      %51 = arith.mulf %37, %50 : vector<256x128xf32>
      %52 = vector.shape_cast %51 : vector<256x128xf32> to vector<32x8x128xf32>
      %cst_18 = arith.constant dense<0.000000e+00> : vector<8x128xf32>
      %53 = vector.multi_reduction <add>, %52, %cst_18 [0] : vector<32x8x128xf32> to vector<8x128xf32>
      %54 = arith.addf %49, %53 : vector<8x128xf32>
      %c0_19 = arith.constant 0 : index
      %c0_20 = arith.constant 0 : index
      %c0_21 = arith.constant 0 : index
      %55 = vector.load %arg5[%c0_19, %c0_20, %c0_21] : memref<4x8x128xf32, #tpu.memory_space<vmem>>, vector<1x8x128xf32>
      %56 = vector.shape_cast %55 : vector<1x8x128xf32> to vector<8x128xf32>
      %57 = vector.shape_cast %54 : vector<8x128xf32> to vector<1x8x128xf32>
      tpu.vector_store %arg5[%c0_19, %c0_20, %c0_21], %57 {strides = array<i32>} : memref<4x8x128xf32, #tpu.memory_space<vmem>>, vector<1x8x128xf32>,
      %c1 = arith.constant 1 : index
      %c0_22 = arith.constant 0 : index
      %c0_23 = arith.constant 0 : index
      %58 = vector.load %arg5[%c1, %c0_22, %c0_23] : memref<4x8x128xf32, #tpu.memory_space<vmem>>, vector<1x8x128xf32>
      %59 = vector.shape_cast %58 : vector<1x8x128xf32> to vector<8x128xf32>
      %60 = vector.shape_cast %37 : vector<256x128xf32> to vector<32x8x128xf32>
      %cst_24 = arith.constant dense<0.000000e+00> : vector<8x128xf32>
      %61 = vector.multi_reduction <add>, %60, %cst_24 [0] : vector<32x8x128xf32> to vector<8x128xf32>
      %62 = arith.addf %59, %61 : vector<8x128xf32>
      %c1_25 = arith.constant 1 : index
      %c0_26 = arith.constant 0 : index
      %c0_27 = arith.constant 0 : index
      %63 = vector.load %arg5[%c1_25, %c0_26, %c0_27] : memref<4x8x128xf32, #tpu.memory_space<vmem>>, vector<1x8x128xf32>
      %64 = vector.shape_cast %63 : vector<1x8x128xf32> to vector<8x128xf32>
      %65 = vector.shape_cast %62 : vector<8x128xf32> to vector<1x8x128xf32>
      tpu.vector_store %arg5[%c1_25, %c0_26, %c0_27], %65 {strides = array<i32>} : memref<4x8x128xf32, #tpu.memory_space<vmem>>, vector<1x8x128xf32>,
      %c2 = arith.constant 2 : index
      %c0_28 = arith.constant 0 : index
      %c0_29 = arith.constant 0 : index
      %66 = vector.load %arg5[%c2, %c0_28, %c0_29] : memref<4x8x128xf32, #tpu.memory_space<vmem>>, vector<1x8x128xf32>
      %67 = vector.shape_cast %66 : vector<1x8x128xf32> to vector<8x128xf32>
      %68 = arith.mulf %39, %47 : vector<256x128xf32>
      %69 = vector.shape_cast %68 : vector<256x128xf32> to vector<32x8x128xf32>
      %cst_30 = arith.constant dense<0.000000e+00> : vector<8x128xf32>
      %70 = vector.multi_reduction <add>, %69, %cst_30 [0] : vector<32x8x128xf32> to vector<8x128xf32>
      %71 = arith.addf %67, %70 : vector<8x128xf32>
      %c2_31 = arith.constant 2 : index
      %c0_32 = arith.constant 0 : index
      %c0_33 = arith.constant 0 : index
      %72 = vector.load %arg5[%c2_31, %c0_32, %c0_33] : memref<4x8x128xf32, #tpu.memory_space<vmem>>, vector<1x8x128xf32>
      %73 = vector.shape_cast %72 : vector<1x8x128xf32> to vector<8x128xf32>
      %74 = vector.shape_cast %71 : vector<8x128xf32> to vector<1x8x128xf32>
      tpu.vector_store %arg5[%c2_31, %c0_32, %c0_33], %74 {strides = array<i32>} : memref<4x8x128xf32, #tpu.memory_space<vmem>>, vector<1x8x128xf32>,
      %c3 = arith.constant 3 : index
      %c0_34 = arith.constant 0 : index
      %c0_35 = arith.constant 0 : index
      %75 = vector.load %arg5[%c3, %c0_34, %c0_35] : memref<4x8x128xf32, #tpu.memory_space<vmem>>, vector<1x8x128xf32>
      %76 = vector.shape_cast %75 : vector<1x8x128xf32> to vector<8x128xf32>
      %77 = vector.shape_cast %39 : vector<256x128xf32> to vector<32x8x128xf32>
      %cst_36 = arith.constant dense<0.000000e+00> : vector<8x128xf32>
      %78 = vector.multi_reduction <add>, %77, %cst_36 [0] : vector<32x8x128xf32> to vector<8x128xf32>
      %79 = arith.addf %76, %78 : vector<8x128xf32>
      %c3_37 = arith.constant 3 : index
      %c0_38 = arith.constant 0 : index
      %c0_39 = arith.constant 0 : index
      %80 = vector.load %arg5[%c3_37, %c0_38, %c0_39] : memref<4x8x128xf32, #tpu.memory_space<vmem>>, vector<1x8x128xf32>
      %81 = vector.shape_cast %80 : vector<1x8x128xf32> to vector<8x128xf32>
      %82 = vector.shape_cast %79 : vector<8x128xf32> to vector<1x8x128xf32>
      tpu.vector_store %arg5[%c3_37, %c0_38, %c0_39], %82 {strides = array<i32>} : memref<4x8x128xf32, #tpu.memory_space<vmem>>, vector<1x8x128xf32>,
      %c1_i32_40 = arith.constant 1 : i32
    } else {
    }
    %c1_i32 = arith.constant 1 : i32
    %13 = arith.cmpi eq, %arg1, %c1_i32 : i32
    %14 = arith.extui %13 : i1 to i32
    %c0_i32_4 = arith.constant 0 : i32
    %15 = arith.cmpi ne, %14, %c0_i32_4 : i32
    scf.if %15 {
      %c0 = arith.constant 0 : index
      %c0_5 = arith.constant 0 : index
      %c0_6 = arith.constant 0 : index
      %16 = vector.load %arg5[%c0, %c0_5, %c0_6] : memref<4x8x128xf32, #tpu.memory_space<vmem>>, vector<4x8x128xf32>
      %c0_7 = arith.constant 0 : index
      %c0_8 = arith.constant 0 : index
      %c0_9 = arith.constant 0 : index
      %c0_10 = arith.constant 0 : index
      %17 = vector.load %arg4[%c0_7, %c0_8, %c0_9, %c0_10] : memref<1x4x8x128xf32, #tpu.memory_space<vmem>>, vector<1x4x8x128xf32>
      %18 = vector.shape_cast %17 : vector<1x4x8x128xf32> to vector<4x8x128xf32>
      %19 = vector.shape_cast %16 : vector<4x8x128xf32> to vector<1x4x8x128xf32>
      tpu.vector_store %arg4[%c0_7, %c0_8, %c0_9, %c0_10], %19 {strides = array<i32>} : memref<1x4x8x128xf32, #tpu.memory_space<vmem>>, vector<1x4x8x128xf32>,
    } else {
    }
    return
  }
  func.func @transform_0(%arg0: i32, %arg1: i32) -> (i32, i32) {
    %c2_i32 = arith.constant 2 : i32
    %0 = arith.muli %arg0, %c2_i32 : i32
    %1 = arith.addi %0, %arg1 : i32
    %c2_i32_0 = arith.constant 2 : i32
    %2 = arith.minsi %1, %c2_i32_0 : i32
    %c0_i32 = arith.constant 0 : i32
    %c0_i32_1 = arith.constant 0 : i32
    return %2, %c0_i32 : i32, i32
  }
  func.func @transform_1(%arg0: i32, %arg1: i32) -> (i32, i32) {
    %c2_i32 = arith.constant 2 : i32
    %0 = arith.muli %arg0, %c2_i32 : i32
    %1 = arith.addi %0, %arg1 : i32
    %c2_i32_0 = arith.constant 2 : i32
    %2 = arith.minsi %1, %c2_i32_0 : i32
    %c0_i32 = arith.constant 0 : i32
    %c0_i32_1 = arith.constant 0 : i32
    return %2, %c0_i32 : i32, i32
  }
  func.func @transform_2(%arg0: i32, %arg1: i32) -> (i32, i32, i32, i32) {
    %c0_i32 = arith.constant 0 : i32
    %c0_i32_0 = arith.constant 0 : i32
    %c0_i32_1 = arith.constant 0 : i32
    %c0_i32_2 = arith.constant 0 : i32
    return %arg0, %c0_i32, %c0_i32_0, %c0_i32_1 : i32, i32, i32, i32
  }
}

</mosaic_0001>

<bundles_post_ra>
// kernel: tpu_custom_call.1
= control target key start
LH: loop header
LB: loop body
LE: loop exit
PB: predicated region body
PF: predicated region fallthrough
CT: control target
= control target key end

     0   :  { %s7183_s0 = inlined_call_operand.hbm [shape: f32[700,128], index: 0, kind: input, shape index: {}]   ;;  %s7184_s1 = inlined_call_operand.hbm [shape: s8[700,128], index: 1, kind: input, shape index: {}]   ;;  %s7185_s2 = inlined_call_operand.hbm [shape: f32[2,4,8,128], index: 2, kind: output, shape index: {}]  }
   0x1   :  { %7614 = sst [smem:[#allocation299_spill]] %s7183_s0 }
   0x2   :  { %7 = vsyncpa [#allocation4], 0 }
   0x3   :  { %9 = vsyncpa [#allocation4 + $0x1], 0 }
   0x4   :  { %10 = vsyncpa [#allocation7], 0 }
   0x5   :  { %12 = vsyncpa [#allocation7 + $0x1], 0 }
   0x6   :  { %13 = vsyncpa [#allocation5], 0 }
   0x7   :  { %15 = vsyncpa [#allocation5 + $0x1], 0  ;;  %s3324_s9 = smov 0   ;;  %s3326_s10 = smov 0  }
   0x8   :  { %s3328_s11 = smov 0   ;;  %s3330_s12 = smov 0  }
   0x9   :  { %s3332_s13 = smov 0   ;;  %s3334_s14 = smov 0  }
   0xa   :  { %s3336_s15 = smov 0   ;;  %s3338_s16 = smov 0  }
   0xb   :  { %s3340_s17 = smov 0   ;;  %s3342_s18 = smov 0  }
   0xc   :  { %s3344_s19 = smov 0  }
   0xd LB: > { %7615 = sst [smem:[#allocation12_spill]] %s3290_s17  ;;  %s2502_s20 = sadd.s32 4294967295, %s3298_s19   ;;  %s3298_s19 = sphi %s3344_s19, %s21_s19   ;;  %s3294_s18 = sphi %s3342_s18, %s8811_s18   ;;  %s3290_s17 = sphi %s3340_s17, %s8810_s17   ;;  %s3286_s16 = sphi %s3338_s16, %s8809_s16   ;;  %s3282_s15 = sphi %s3336_s15, %s8808_s15   ;;  %s3278_s14 = sphi %s3334_s14, %s8817_s14   ;;  %s3274_s13 = sphi %s3332_s13, %s8816_s13   ;;  %s3270_s12 = sphi %s3330_s12, %s8815_s12   ;;  %s3266_s11 = sphi %s3328_s11, %s8814_s11   ;;  %s3262_s10 = sphi %s3326_s10, %s8813_s10   ;;  %s3258_s9 = sphi %s3324_s9, %s8812_s9  }
   0xe   : > { %7616 = sst [smem:[#allocation13_spill]] %s3294_s18  ;;  %s2503_s21 = sadd.s32 4294967294, %s3298_s19  }
   0xf   : > { %s30_s22 = sadd.s32 1, %s3290_s17  ;;  %s33_s23 = sadd.s32 1, %s3294_s18 }
  0x10   : > { %p31_p0 = scmp.ge.s32.totalorder %s30_s22, 2  ;;  %s2504_s24 = sshll.u32 %s3294_s18, 1 }
  0x11   : > { %s38_s25 = sadd.s32 %s3290_s17, %s2504_s24  ;;  %s48_s26 = sadd.s32 1, %s3278_s14 }
  0x12   : > { %s8819_s22 = smov (%p31_p0, %s30_s22), 0  ;;  %s8821_s23 = smov (!%p31_p0, %s33_s23), %s3294_s18 }
  0x13   : > { %7617 = sst [smem:[#allocation14_spill]] %s8819_s22  ;;  %p39_p1 = scmp.lt.s32.totalorder %s38_s25, 2 }
  0x14   : > { %p55_p2 = scmp.ne.s32.totalorder %s3278_s14, %s3274_s13  ;;  %p35_p3 = scmp.ge.s32.totalorder %s8821_s23, 2 }
  0x15   : > { %p56_p4 = scmp.eq.s32.totalorder %s3298_s19, 0  ;;  %s8823_s25 = smov (!%p39_p1, %s38_s25), 2 }
  0x16   : > { %s8825_s23 = smov (%p35_p3, %s8821_s23), 0  ;;  %p61_p6 = scmp.ne.s32.totalorder %s3274_s13, %s3270_s12 }
  0x17   : > { %7618 = sst [smem:[#allocation15_spill]] %s8825_s23  ;;  %p3396_p5 = por %p56_p4, %p55_p2 }
  0x18   : > { %s2505_s28 = sshll.u32 %s8825_s23, 1  ;;  %p62_p7 = scmp.eq.s32.totalorder %s2502_s20, 0 }
  0x19   : > { %s42_s29 = sadd.s32 %s2505_s28, %s8819_s22  ;;  %s105_s30 = ssub.s32 %s3294_s18, %s8825_s23 }
  0x1a   : > { %p43_p8 = scmp.lt.s32.totalorder %s42_s29, 2  ;;  %p3408_p9 = por %p62_p7, %p61_p6 }
  0x1b   : > { %p106_p10 = scmp.eq.s32.totalorder %s105_s30, 0  ;;  %s108_s4 = sadd.s32 1, %s3266_s11 }
  0x1c   : > { %s8827_s29 = smov (!%p43_p8, %s42_s29), 2  ;;  %p118_p11 = scmp.ne.s32.totalorder %s3266_s11, %s3262_s10 }
  0x1d   : > { %s3414_s5 = scalar_select %p106_p10, %s3266_s11, %s108_s4  }
  0x1e   : > { %s45_s6 = ssub.s32 %s8823_s25, %s8827_s29  ;;  %p119_p13 = scmp.eq.s32.totalorder %s2502_s20, 3 }
  0x1f   : > { %p46_p12 = scmp.eq.s32.totalorder %s45_s6, 0  ;;  %p124_p0 = scmp.ne.s32.totalorder %s3262_s10, %s3258_s9 }
  0x20   : > { %p125_p1 = scmp.eq.s32.totalorder %s2503_s21, 3  ;;  %p3428_p2 = por %p119_p13, %p118_p11 }
  0x21   : > { %s3426_s7 = scalar_select %p46_p12, %s3278_s14, %s48_s26  }
  0x22   : > { %p3432_p3 = por %p125_p1, %p124_p0  ;;  %p2509_p4 = scmp.ge.s32.totalorder %s3298_s19, 4 }
  0x23   : > { %7621 = sst [smem:[#allocation16_spill]] %s3426_s7 }
  0x24   : > { %141 = sbr.rel (%p2509_p4) target bundleno = 120 (0x78), region = 16 }
  0x29   : > { %144 = sbr.rel (!%p3396_p5) target bundleno = 84 (0x54), region = 20  ;;  %s145_s20 = sand.u32 (%p3396_p5), 1, %s3278_s14  }
  0x2a   : > { %s2512_s21 = sshll.u32 (%p3396_p5), %s8823_s25, 5  ;;  %s2510_s24 = sshll.u32 (%p3396_p5), %s145_s20, 8 }
  0x2b   : > { %s155_s26 = ssub.s32 (%p3396_p5), 88, %s2512_s21  ;;  %s3444_s4 = scalar_lea.sflag (%p3396_p5), [#allocation4], %s145_s20 }
  0x2c   : > { %p156_p6 = scmp.lt.s32.totalorder (%p3396_p5), %s155_s26, 32  ;;  %s149_s6 = scalar_lea.vmem (%p3396_p5), [#allocation3], %s2510_s24 }
  0x2e   : > { %s8829_s26 = smov (!%p156_p6, %s155_s26), 32 }
  0x2f   : > { %s2513_s28 = sshll.u32 %s8829_s26, 3 }
  0x30   : > { %s159_s29 = ssub.s32 256, %s2513_s28 }
  0x31   : > { %s160_s30 = sshll.u32 %s159_s29, 4 }
  0x32   : > { %161 = vsyncadd %s3444_s4, %s160_s30  ;;  %p3447_p7 = scmp.ne.s32.totalorder %s2513_s28, 0  ;;  %s2541_s21 = sshll.u32 %s8823_s25, 8 }
  0x33   : > { %s7625_s0 = sld [smem:[#allocation299_spill]]  ;;  %s3455_s7 = sshll.u32 %s149_s6, 4  ;;  %s169_s7 = int_to_ptr.vmem [resolvable:$true] %s3455_s7 }
  0x34   : > { %s7190_s24 = sshll.u32 %s8829_s26, 7 }
  0x35   : > { %s3096_s28 = sshrl.u32 %s7190_s24, 4 }
  0x39   : > { %s164_s17 = scalar_lea.hbm %s7625_s0, %s2541_s21  ;;  %s3105_s6 = scalar_lea.hbm %s7625_s0, 704 }
  0x3a   : > { %s166_s20 = sshll.u32 %s164_s17, 4  ;;  %s3458_s20 = int_to_ptr.hbm [resolvable:$true] %s166_s20 }
  0x3b   : > { %s3094_s29 = sshra.s32 %s3458_s20, 4  ;;  %s3095_s29 = int_to_ptr.hbm [resolvable:$true] %s3094_s29 }
  0x3c   : > { %s3101_s30 = scalar_lea.hbm %s3095_s29, %s3096_s28 }
  0x3d   : > { %p3102_p8 = scmp.ne.s32.totalorder %s3095_s29, %s3101_s30  ;;  %p3107_p12 = scmp.lt.s32.totalorder %s3105_s6, %s3101_s30 }
  0x3f   : > { %p3103_p10 = pnand %p3102_p8, %p3447_p7 }
  0x41   : > { %p3104_p11 = pneg %p3103_p10 }
  0x43   : > { %p3109_p13 = pnand %p3107_p12, %p3104_p11 }
  0x45   : > { %3112 = shalt.err (!%p3109_p13)
}
  0x46   : > { %s3113_s17 = sshra.s32 %s169_s7, 4  ;;  %s3300_s29 = smov [#allocation3]   ;;  %s3114_s17 = int_to_ptr.vmem [resolvable:$true] %s3113_s17 }
  0x47   : > { %s3120_s21 = scalar_lea.vmem %s3114_s17, %s3096_s28  ;;  %s3124_s24 = scalar_lea.vmem %s3300_s29, 512 }
  0x48   : > { %p3121_p0 = scmp.ne.s32.totalorder %s3114_s17, %s3120_s21  ;;  %p3126_p6 = scmp.lt.s32.totalorder %s3124_s24, %s3120_s21 }
  0x4a   : > { %p3122_p1 = pnand %p3121_p0, %p3447_p7 }
  0x4c   : > { %p3123_p4 = pneg %p3122_p1 }
  0x4e   : > { %p3128_p8 = pnand %p3126_p6, %p3123_p4 }
  0x50   : > { %3131 = shalt.err (!%p3128_p8)
}
  0x51   : > { %s3301_s18 = smov 128   ;;  %s3302_s30 = smov 8  }
  0x52   : > { %s7626_s22 = sshll.u32 %s8829_s26, 7 }
  0x53   : > { %174 = dma.hbm_to_vmem [thread:$0]  (%p3447_p7), %s3458_s20, %s7626_s22, %s169_s7, %s3444_s4, %s3301_s18, %s3301_s18, %s3302_s30  }
  0x54 PF: > { %177 = sbr.rel (!%p3396_p5) target bundleno = 120 (0x78), region = 24  ;;  %s178_s24 = sand.u32 (%p3396_p5), 1, %s3278_s14  }
  0x55   : > { %s2520_s28 = sshll.u32 (%p3396_p5), %s8823_s25, 5  ;;  %s2518_s6 = sshll.u32 (%p3396_p5), %s178_s24, 6 }
  0x56   : > { %s188_s17 = ssub.s32 (%p3396_p5), 88, %s2520_s28  ;;  %s3488_s0 = scalar_lea.sflag (%p3396_p5), [#allocation7], %s178_s24 }
  0x57   : > { %p189_p10 = scmp.lt.s32.totalorder (%p3396_p5), %s188_s17, 32  ;;  %s182_s7 = scalar_lea.vmem (%p3396_p5), [#allocation6], %s2518_s6 }
  0x59   : > { %s8831_s17 = smov (!%p189_p10, %s188_s17), 32 }
  0x5a   : > { %s2521_s21 = sshll.u32 %s8831_s17, 1 }
  0x5b   : > { %s192_s29 = ssub.s32 64, %s2521_s21 }
  0x5c   : > { %s193_s23 = sshll.u32 %s192_s29, 4 }
  0x5d   : > { %194 = vsyncadd %s3488_s0, %s193_s23  ;;  %p3491_p5 = scmp.ne.s32.totalorder %s2521_s21, 0  ;;  %s2542_s26 = sshll.u32 %s8823_s25, 6 }
  0x5e   : > { %s197_s18 = scalar_lea.hbm %s7184_s1, %s2542_s26  ;;  %s3499_s30 = sshll.u32 %s182_s7, 4  ;;  %s202_s30 = int_to_ptr.vmem [resolvable:$true] %s3499_s30 }
  0x5f   : > { %s199_s22 = sshll.u32 %s197_s18, 4  ;;  %s2525_s24 = sshll.u32 %s8831_s17, 5  ;;  %s3502_s22 = int_to_ptr.hbm [resolvable:$true] %s199_s22 }
  0x60   : > { %s3133_s28 = sshra.s32 %s3502_s22, 4  ;;  %s3135_s6 = sshrl.u32 %s2525_s24, 4  ;;  %s3134_s28 = int_to_ptr.hbm [resolvable:$true] %s3133_s28 }
  0x61   : > { %s3140_s21 = scalar_lea.hbm %s3134_s28, %s3135_s6  ;;  %s3144_s23 = scalar_lea.hbm %s7184_s1, 176 }
  0x62   : > { %p3141_p7 = scmp.ne.s32.totalorder %s3134_s28, %s3140_s21  ;;  %p3146_p13 = scmp.lt.s32.totalorder %s3144_s23, %s3140_s21 }
  0x64   : > { %p3142_p11 = pnand %p3141_p7, %p3491_p5 }
  0x66   : > { %p3143_p12 = pneg %p3142_p11 }
  0x68   : > { %p3148_p0 = pnand %p3146_p13, %p3143_p12 }
  0x6a   : > { %3151 = shalt.err (!%p3148_p0)
}
  0x6b   : > { %s3152_s7 = sshra.s32 %s202_s30, 4  ;;  %s3303_s4 = smov [#allocation6]   ;;  %s3153_s7 = int_to_ptr.vmem [resolvable:$true] %s3152_s7 }
  0x6c   : > { %s3159_s26 = scalar_lea.vmem %s3153_s7, %s3135_s6  ;;  %s3163_s20 = scalar_lea.vmem %s3303_s4, 128 }
  0x6d   : > { %p3160_p1 = scmp.ne.s32.totalorder %s3153_s7, %s3159_s26  ;;  %p3165_p8 = scmp.lt.s32.totalorder %s3163_s20, %s3159_s26 }
  0x6f   : > { %p3161_p4 = pnand %p3160_p1, %p3491_p5 }
  0x71   : > { %p3162_p6 = pneg %p3161_p4 }
  0x73   : > { %p3167_p10 = pnand %p3165_p8, %p3162_p6 }
  0x75   : > { %3170 = shalt.err (!%p3167_p10)
}
  0x76   : > { %s3304_s18 = smov 32   ;;  %s3305_s28 = smov 2  }
  0x77   : > { %207 = dma.hbm_to_vmem [thread:$0]  (%p3491_p5), %s3502_s22, %s2525_s24, %s202_s30, %s3488_s0, %s3304_s18, %s3304_s18, %s3305_s28  }
  0x78 PF: > { %p2526_p7 = scmp.ge.s32.totalorder %s3298_s19, 1  ;;  %p209_p11 = scmp.lt.s32.totalorder %s3298_s19, 5 }
  0x7a   : > { %p210_p12 = pnand %p2526_p7, %p209_p11 }
  0x7b   : > { %s215_s6 = sand.u32 (!%p210_p12), 1, %s3274_s13  }
  0x7c   : > { %213 = sbr.rel (%p210_p12) target bundleno = 842 (0x34a), region = 28  ;;  %s2527_s21 = sshll.u32 (!%p210_p12), %s215_s6, 8 }
  0x7d   : > { %s216_s25 = scalar_lea.sflag (!%p210_p12), [#allocation4], %s215_s6  ;;  %s3528_s29 = scalar_lea.vmem (!%p210_p12), [#allocation3], %s2527_s21 }
  0x81   : > { %3245 = dma.done.wait (%p3408_p9), %s216_s25, 4096  }
  0x82   : > { %3247 = vsyncadd (%p3408_p9), %s216_s25, 4294963200  ;;  %s2528_s0 = sshll.u32 %s215_s6, 6  ;;  %s226_s17 = scalar_lea.sflag [#allocation7], %s215_s6 }
  0x83   : > { %s3534_s27 = scalar_lea.vmem [#allocation6], %s2528_s0 }
  0x84   : > { %3249 = dma.done.wait (%p3408_p9), %s226_s17, 1024  }
  0x85   : > { %3251 = vsyncadd (%p3408_p9), %s226_s17, 4294966272  ;;  %s253_s30 = sand.u32 1, %s3262_s10   ;;  %p2530_p5 = scmp.ne.s32.totalorder %s3282_s15, 0 }
  0x86   : > { %s2529_s22 = sshll.u32 %s253_s30, 5 }
  0x87   : > { %s3543_s24 = scalar_lea.vmem [#allocation8], %s2529_s22  ;;  %277 = sbr.rel (%p2530_p5) target bundleno = 145 (0x91), region = 40 }
  0x8c   : > { %v3306_v0 = vmov 0.0  }
  0x8d   : > { %278 = vst [vmem:[#allocation2 + $0x10] sm:$0xff] %v3306_v0 }
  0x8e   : > { %279 = vst [vmem:[#allocation2] sm:$0xff] %v3306_v0 }
  0x8f   : > { %280 = vst [vmem:[#allocation2 + $0x18] sm:$0xff] %v3306_v0 }
  0x90   : > { %281 = vst [vmem:[#allocation2 + $0x8] sm:$0xff] %v3306_v0 }
  0x91 PF: > { %s2531_s3 = sshll.u32 %s3286_s16, 1 }
  0x92   : > { %s3548_s23 = sadd.s32 %s3282_s15, %s2531_s3 }
  0x93   : > { %s2532_s7 = sshll.u32 %s3548_s23, 8 }
  0x94   : > { %s3553_s26 = sadd.s32 256, %s2532_s7 }
  0x95   : > { %p2533_p9 = scmp.gt.s32.totalorder %s3553_s26, 700 }
  0x97   : > { %290 = sbr.rel (%p2533_p9) target bundleno = 447 (0x1bf), region = 44 }
  0x9c   : > { %v3557_v1 = vld [vmem:[%s3528_s29] sm:$0xff]  ;;  %v3560_v2 = vld [vmem:[%s3528_s29 + $0x8] sm:$0xff]  ;;  %v3563_v3 = vld [vmem:[%s3528_s29 + $0x10] sm:$0xff] }
  0x9d   : > { %7628 = vst [vmem:[#allocation17_spill] sm:$0xff] %v3557_v1  ;;  %v3566_v4 = vld [vmem:[%s3528_s29 + $0x18] sm:$0xff]  ;;  %v3569_v5 = vld [vmem:[%s3528_s29 + $0x20] sm:$0xff]  ;;  %v3572_v6 = vld [vmem:[%s3528_s29 + $0x28] sm:$0xff] }
  0x9e   : > { %7629 = vst [vmem:[#allocation18_spill] sm:$0xff] %v3560_v2  ;;  %v3575_v7 = vld [vmem:[%s3528_s29 + $0x30] sm:$0xff]  ;;  %v3578_v8 = vld [vmem:[%s3528_s29 + $0x38] sm:$0xff]  ;;  %v3581_v9 = vld [vmem:[%s3528_s29 + $0x40] sm:$0xff] }
  0x9f   : > { %7630 = vst [vmem:[#allocation19_spill] sm:$0xff] %v3563_v3  ;;  %v2545_v14 = vld [vmem:[%s3534_s27] sm:$0xff]   ;;  %v2673_v17 = vld [vmem:[%s3534_s27 + $0x8] sm:$0xff]   ;;  %v2675_v20 = vld [vmem:[%s3534_s27 + $0x10] sm:$0xff]  }
  0xa0   : > { %7631 = vst [vmem:[#allocation20_spill] sm:$0xff] %v3566_v4  ;;  %v2546_v24 = vunpack.c.0.s8 %v2545_v14  ;;  %v2547_v25 = vunpack.c.1.s8 %v2545_v14  ;;  %v2550_v26 = vunpack.c.2.s8 %v2545_v14  ;;  %v2551_v27 = vunpack.c.3.s8 %v2545_v14  ;;  %v2677_v28 = vld [vmem:[%s3534_s27 + $0x18] sm:$0xff]   ;;  %v2679_v33 = vld [vmem:[%s3534_s27 + $0x20] sm:$0xff]   ;;  %v2681_v38 = vld [vmem:[%s3534_s27 + $0x28] sm:$0xff]  }
  0xa1   : > { %7632 = vst [vmem:[#allocation21_spill] sm:$0xff] %v3569_v5  ;;  %v2554_v29 = vunpack.c.0.s8 %v2673_v17  ;;  %v2555_v30 = vunpack.c.1.s8 %v2673_v17  ;;  %v2558_v31 = vunpack.c.2.s8 %v2673_v17  ;;  %v2559_v32 = vunpack.c.3.s8 %v2673_v17  ;;  %v2683_v43 = vld [vmem:[%s3534_s27 + $0x30] sm:$0xff]   ;;  %v2685_v48 = vld [vmem:[%s3534_s27 + $0x38] sm:$0xff]  }
  0xa2   : > { %7633 = vst [vmem:[#allocation22_spill] sm:$0xff] %v3572_v6  ;;  %v2562_v34 = vunpack.c.0.s8 %v2675_v20  ;;  %v2563_v35 = vunpack.c.1.s8 %v2675_v20  ;;  %v2566_v36 = vunpack.c.2.s8 %v2675_v20  ;;  %v2567_v37 = vunpack.c.3.s8 %v2675_v20 }
  0xa3   : > { %7634 = vst [vmem:[#allocation23_spill] sm:$0xff] %v3575_v7  ;;  %v2570_v39 = vunpack.c.0.s8 %v2677_v28  ;;  %v2571_v40 = vunpack.c.1.s8 %v2677_v28  ;;  %v2574_v41 = vunpack.c.2.s8 %v2677_v28  ;;  %v2575_v42 = vunpack.c.3.s8 %v2677_v28 }
  0xa4   : > { %7635 = vst [vmem:[#allocation24_spill] sm:$0xff] %v3578_v8  ;;  %v2578_v44 = vunpack.c.0.s8 %v2679_v33  ;;  %v2579_v45 = vunpack.c.1.s8 %v2679_v33  ;;  %v2582_v46 = vunpack.c.2.s8 %v2679_v33  ;;  %v2583_v47 = vunpack.c.3.s8 %v2679_v33 }
  0xa5   : > { %7636 = vst [vmem:[#allocation25_spill] sm:$0xff] %v3581_v9  ;;  %v2586_v49 = vunpack.c.0.s8 %v2681_v38  ;;  %v2587_v50 = vunpack.c.1.s8 %v2681_v38  ;;  %v2590_v51 = vunpack.c.2.s8 %v2681_v38  ;;  %v2591_v52 = vunpack.c.3.s8 %v2681_v38 }
  0xa6   : > { %v2594_v53 = vunpack.c.0.s8 %v2683_v43  ;;  %v2595_v54 = vunpack.c.1.s8 %v2683_v43  ;;  %v2598_v55 = vunpack.c.2.s8 %v2683_v43  ;;  %v2599_v56 = vunpack.c.3.s8 %v2683_v43 }
  0xa7   : > { %v2602_v57 = vunpack.c.0.s8 %v2685_v48  ;;  %v2603_v58 = vunpack.c.1.s8 %v2685_v48  ;;  %v2606_v59 = vunpack.c.2.s8 %v2685_v48  ;;  %v2607_v60 = vunpack.c.3.s8 %v2685_v48 }
  0xa8   : > { %v3602_v61 = vcvt.s32.f32 %v2546_v24  ;;  %v3604_v62 = vcvt.s32.f32 %v2547_v25  ;;  %v3606_v63 = vcvt.s32.f32 %v2550_v26  ;;  %v3608_v0 = vcvt.s32.f32 %v2551_v27 }
  0xa9   : > { %v3610_v14 = vcvt.s32.f32 %v2554_v29  ;;  %v3612_v17 = vcvt.s32.f32 %v2555_v30  ;;  %v3614_v20 = vcvt.s32.f32 %v2558_v31  ;;  %v3616_v28 = vcvt.s32.f32 %v2559_v32 }
  0xaa   : > { %7637 = vst [vmem:[#allocation26_spill] sm:$0xff] %v3602_v61  ;;  %v3618_v33 = vcvt.s32.f32 %v2562_v34  ;;  %v3620_v38 = vcvt.s32.f32 %v2563_v35  ;;  %v3622_v24 = vcvt.s32.f32 %v2566_v36  ;;  %v3624_v25 = vcvt.s32.f32 %v2567_v37 }
  0xab   : > { %7638 = vst [vmem:[#allocation27_spill] sm:$0xff] %v3604_v62  ;;  %v3626_v26 = vcvt.s32.f32 %v2570_v39  ;;  %v3628_v27 = vcvt.s32.f32 %v2571_v40  ;;  %v3630_v29 = vcvt.s32.f32 %v2574_v41  ;;  %v3632_v30 = vcvt.s32.f32 %v2575_v42 }
  0xac   : > { %7639 = vst [vmem:[#allocation28_spill] sm:$0xff] %v3606_v63  ;;  %v3634_v31 = vcvt.s32.f32 %v2578_v44  ;;  %v3636_v32 = vcvt.s32.f32 %v2579_v45  ;;  %v3638_v34 = vcvt.s32.f32 %v2582_v46  ;;  %v3640_v35 = vcvt.s32.f32 %v2583_v47 }
  0xad   : > { %7640 = vst [vmem:[#allocation29_spill] sm:$0xff] %v3608_v0  ;;  %v3642_v36 = vcvt.s32.f32 %v2586_v49  ;;  %v3644_v37 = vcvt.s32.f32 %v2587_v50  ;;  %v3646_v39 = vcvt.s32.f32 %v2590_v51  ;;  %v3648_v40 = vcvt.s32.f32 %v2591_v52 }
  0xae   : > { %7641 = vst [vmem:[#allocation30_spill] sm:$0xff] %v3610_v14  ;;  %v3650_v41 = vcvt.s32.f32 %v2594_v53  ;;  %v3652_v42 = vcvt.s32.f32 %v2595_v54  ;;  %v3654_v43 = vcvt.s32.f32 %v2598_v55  ;;  %v3656_v44 = vcvt.s32.f32 %v2599_v56 }
  0xaf   : > { %7642 = vst [vmem:[#allocation31_spill] sm:$0xff] %v3612_v17  ;;  %v3658_v45 = vcvt.s32.f32 %v2602_v57  ;;  %v3660_v46 = vcvt.s32.f32 %v2603_v58  ;;  %v3662_v47 = vcvt.s32.f32 %v2606_v59  ;;  %v3664_v48 = vcvt.s32.f32 %v2607_v60 }
  0xb0   : > { %7643 = vst [vmem:[#allocation32_spill] sm:$0xff] %v3614_v20  ;;  %v451_v51 = vand.u32 2147483647, %v3602_v61  ;;  %v452_v52 = vand.u32 2147483647, %v3604_v62 }
  0xb1   : > { %7644 = vst [vmem:[#allocation33_spill] sm:$0xff] %v3616_v28  ;;  %v453_v53 = vand.u32 2147483647, %v3606_v63  ;;  %v454_v54 = vand.u32 2147483647, %v3608_v0 }
  0xb2   : > { %7645 = vst [vmem:[#allocation34_spill] sm:$0xff] %v3618_v33  ;;  %v455_v55 = vand.u32 2147483647, %v3610_v14  ;;  %v456_v56 = vand.u32 2147483647, %v3612_v17 }
  0xb3   : > { %7646 = vst [vmem:[#allocation35_spill] sm:$0xff] %v3620_v38  ;;  %v457_v57 = vand.u32 2147483647, %v3614_v20  ;;  %v458_v58 = vand.u32 2147483647, %v3616_v28 }
  0xb4   : > { %7647 = vst [vmem:[#allocation36_spill] sm:$0xff] %v3622_v24  ;;  %v459_v59 = vand.u32 2147483647, %v3618_v33  ;;  %v460_v60 = vand.u32 2147483647, %v3620_v38 }
  0xb5   : > { %7648 = vst [vmem:[#allocation37_spill] sm:$0xff] %v3624_v25  ;;  %v461_v50 = vand.u32 2147483647, %v3622_v24  ;;  %v462_v49 = vand.u32 2147483647, %v3624_v25 }
  0xb6   : > { %7649 = vst [vmem:[#allocation38_spill] sm:$0xff] %v3626_v26  ;;  %v463_v22 = vand.u32 2147483647, %v3626_v26  ;;  %v464_v21 = vand.u32 2147483647, %v3628_v27 }
  0xb7   : > { %7650 = vst [vmem:[#allocation39_spill] sm:$0xff] %v3628_v27  ;;  %v465_v23 = vand.u32 2147483647, %v3630_v29  ;;  %v466_v19 = vand.u32 2147483647, %v3632_v30 }
  0xb8   : > { %7651 = vst [vmem:[#allocation40_spill] sm:$0xff] %v3630_v29  ;;  %v467_v18 = vand.u32 2147483647, %v3634_v31  ;;  %v468_v16 = vand.u32 2147483647, %v3636_v32  ;;  %v3728_v29 = vsub.f32 1.0, %v451_v51 }
  0xb9   : > { %7652 = vst [vmem:[#allocation41_spill] sm:$0xff] %v3632_v30  ;;  %v469_v15 = vand.u32 2147483647, %v3638_v34  ;;  %v470_v13 = vand.u32 2147483647, %v3640_v35  ;;  %v3746_v51 = vsub.f32 1.0, %v460_v60 }
  0xba   : > { %7653 = vst [vmem:[#allocation42_spill] sm:$0xff] %v3634_v31  ;;  %v471_v12 = vand.u32 2147483647, %v3642_v36  ;;  %v472_v11 = vand.u32 2147483647, %v3644_v37  ;;  %v3740_v31 = vsub.f32 1.0, %v457_v57 }
  0xbb   : > { %7654 = vst [vmem:[#allocation43_spill] sm:$0xff] %v3636_v32  ;;  %v473_v10 = vand.u32 2147483647, %v3646_v39  ;;  %v476_v30 = vand.u32 2147483647, %v3652_v42  ;;  %v3758_v57 = vsub.f32 1.0, %v466_v19 }
  0xbc   : > { %7655 = vst [vmem:[#allocation44_spill] sm:$0xff] %v3638_v34  ;;  %v3742_v34 = vsub.f32 1.0, %v458_v58  ;;  %v3760_v58 = vsub.f32 1.0, %v467_v18  ;;  %v3775_v60 = vld [vmem:[%s3528_s29 + $0x58] sm:$0xff]  ;;  %v3779_v19 = vsub.f32 1.0, %v472_v11  ;;  %v3792_v32 = vld [vmem:[%s3528_s29 + $0x70] sm:$0xff] }
  0xbd   : > { %7656 = vst [vmem:[#allocation45_spill] sm:$0xff] %v3640_v35  ;;  %v3744_v35 = vsub.f32 1.0, %v459_v59  ;;  %v3762_v59 = vsub.f32 1.0, %v468_v16  ;;  %v3781_v18 = vsub.f32 1.0, %v473_v10  ;;  %v3837_v10 = vld [vmem:[%s3528_s29 + $0xb8] sm:$0xff] }
  0xbe   : > { %7657 = vst [vmem:[#allocation46_spill] sm:$0xff] %v3642_v36  ;;  %v3730_v36 = vsub.f32 1.0, %v452_v52  ;;  %v3748_v52 = vsub.f32 1.0, %v461_v50  ;;  %v3764_v50 = vsub.f32 1.0, %v469_v15  ;;  %v3789_v15 = vld [vmem:[%s3528_s29 + $0x68] sm:$0xff] }
  0xbf   : > { %7658 = vst [vmem:[#allocation47_spill] sm:$0xff] %v3644_v37  ;;  %v3732_v37 = vsub.f32 1.0, %v453_v53  ;;  %v3750_v53 = vsub.f32 1.0, %v462_v49  ;;  %v3766_v49 = vsub.f32 1.0, %v470_v13  ;;  %v3786_v13 = vld [vmem:[%s3528_s29 + $0x60] sm:$0xff] }
  0xc0   : > { %7659 = vst [vmem:[#allocation48_spill] sm:$0xff] %v3646_v39  ;;  %v3734_v39 = vsub.f32 1.0, %v454_v54  ;;  %v3752_v54 = vsub.f32 1.0, %v463_v22  ;;  %v3769_v22 = vld [vmem:[%s3528_s29 + $0x48] sm:$0xff]  ;;  %v560_v11 = vand.u32 2147483647, %v3789_v15 }
  0xc1   : > { %7660 = vst [vmem:[#allocation49_spill] sm:$0xff] %v3648_v40  ;;  %v7716_v26 = vand.u32 2147483647, %v3560_v2  ;;  %v7724_v25 = vand.u32 2147483647, %v3575_v7  ;;  %v7753_v2 = vmov 0 }
  0xc2   : > { %7661 = vst [vmem:[#allocation50_spill] sm:$0xff] %v3650_v41 }
  0xc3   : > { %7662 = vst [vmem:[#allocation51_spill] sm:$0xff] %v3652_v42  ;;  %v3738_v42 = vsub.f32 1.0, %v456_v56  ;;  %v3756_v56 = vsub.f32 1.0, %v465_v23  ;;  %v3777_v23 = vsub.f32 1.0, %v471_v12  ;;  %v3799_v12 = vsub.f32 1.0, %v476_v30 }
  0xc4   : > { %7663 = vst [vmem:[#allocation52_spill] sm:$0xff] %v3654_v43  ;;  %v556_v43 = vand.u32 2147483647, %v3769_v22  ;;  %v558_v30 = vand.u32 2147483647, %v3775_v60 }
  0xc5   : > { %7664 = vst [vmem:[#allocation53_spill] sm:$0xff] %v3656_v44 }
  0xc6   : > { %7665 = vst [vmem:[#allocation54_spill] sm:$0xff] %v3658_v45 }
  0xc7   : > { %7666 = vst [vmem:[#allocation55_spill] sm:$0xff] %v3660_v46  ;;  %v3795_v46 = vld [vmem:[%s3528_s29 + $0x78] sm:$0xff] }
  0xc8   : > { %7667 = vst [vmem:[#allocation56_spill] sm:$0xff] %v3662_v47  ;;  %v475_v47 = vand.u32 2147483647, %v3650_v41  ;;  %v3834_v41 = vld [vmem:[%s3528_s29 + $0xb0] sm:$0xff] }
  0xc9   : > { %7668 = vst [vmem:[#allocation57_spill] sm:$0xff] %v3664_v48  ;;  %v474_v48 = vand.u32 2147483647, %v3648_v40  ;;  %v3736_v40 = vsub.f32 1.0, %v455_v55  ;;  %v3754_v55 = vsub.f32 1.0, %v464_v21  ;;  %v3772_v21 = vld [vmem:[%s3528_s29 + $0x50] sm:$0xff] }
  0xca   : > { %7669 = vst [vmem:[#allocation58_spill] sm:$0xff] %v3728_v29  ;;  %v3797_v45 = vsub.f32 1.0, %v475_v47  ;;  %v557_v44 = vand.u32 2147483647, %v3772_v21  ;;  %v3863_v47 = vld [vmem:[%s3528_s29 + $0xd8] sm:$0xff] }
  0xcb   : > { %7670 = vst [vmem:[#allocation59_spill] sm:$0xff] %v3730_v36  ;;  %v3783_v16 = vsub.f32 1.0, %v474_v48  ;;  %v3804_v48 = vld [vmem:[%s3528_s29 + $0x80] sm:$0xff]  ;;  %v574_v20 = vand.u32 2147483647, %v3863_v47 }
  0xcc   : > { %7671 = vst [vmem:[#allocation60_spill] sm:$0xff] %v3732_v37  ;;  %v589_v37 = vsub.f32 0.0, %v557_v44 }
  0xcd   : > { %7672 = vst [vmem:[#allocation61_spill] sm:$0xff] %v3734_v39 }
  0xce   : > { %7673 = vst [vmem:[#allocation62_spill] sm:$0xff] %v3736_v40  ;;  %v3895_v40 = vld [vmem:[%s3528_s29 + $0xf8] sm:$0xff] }
  0xcf   : > { %7674 = vst [vmem:[#allocation63_spill] sm:$0xff] %v3738_v42  ;;  %v3887_v42 = vld [vmem:[%s3528_s29 + $0xf0] sm:$0xff] }
  0xd0   : > { %7675 = vst [vmem:[#allocation64_spill] sm:$0xff] %v3740_v31  ;;  %v7718_v31 = vand.u32 2147483647, %v3563_v3 }
  0xd1   : > { %7676 = vst [vmem:[#allocation65_spill] sm:$0xff] %v3742_v34  ;;  %v580_v34 = vsub.f32 0.0, %v7716_v26  ;;  %v7720_v26 = vand.u32 2147483647, %v3566_v4 }
  0xd2   : > { %7677 = vst [vmem:[#allocation66_spill] sm:$0xff] %v3744_v35  ;;  %v581_v24 = vsub.f32 0.0, %v7718_v31 }
  0xd3   : > { %7678 = vst [vmem:[#allocation67_spill] sm:$0xff] %v3746_v51  ;;  %v582_v38 = vsub.f32 0.0, %v7720_v26  ;;  %v613_v39 = vmul.f32 1.442695, %v580_v34  ;;  %v7726_v34 = vand.u32 2147483647, %v3581_v9 }
  0xd4   : > { %7679 = vst [vmem:[#allocation68_spill] sm:$0xff] %v3748_v52  ;;  %v3871_v52 = vld [vmem:[%s3528_s29 + $0xe0] sm:$0xff] }
  0xd5   : > { %7680 = vst [vmem:[#allocation69_spill] sm:$0xff] %v3750_v53 }
  0xd6   : > { %7681 = vst [vmem:[#allocation70_spill] sm:$0xff] %v3752_v54  ;;  %v7714_v54 = vand.u32 2147483647, %v3557_v1 }
  0xd7   : > { %7682 = vst [vmem:[#allocation71_spill] sm:$0xff] %v3754_v55  ;;  %v563_v55 = vand.u32 2147483647, %v3804_v48 }
  0xd8   : > { %7683 = vst [vmem:[#allocation72_spill] sm:$0xff] %v3756_v56  ;;  %v562_v56 = vand.u32 2147483647, %v3795_v46  ;;  %v579_v53 = vsub.f32 0.0, %v7714_v54 }
  0xd9   : > { %7684 = vst [vmem:[#allocation73_spill] sm:$0xff] %v3758_v57  ;;  %v561_v57 = vand.u32 2147483647, %v3792_v32  ;;  %v595_v44 = vsub.f32 0.0, %v563_v55 }
  0xda   : > { %7685 = vst [vmem:[#allocation74_spill] sm:$0xff] %v3760_v58  ;;  %v3851_v58 = vld [vmem:[%s3528_s29 + $0xc8] sm:$0xff]  ;;  %v611_v33 = vmul.f32 1.442695, %v579_v53  ;;  %v7725_v53 = vand.u32 2147483647, %v3578_v8 }
  0xdb   : > { %7686 = vst [vmem:[#allocation75_spill] sm:$0xff] %v3762_v59  ;;  %v3879_v59 = vld [vmem:[%s3528_s29 + $0xe8] sm:$0xff]  ;;  %v572_v28 = vand.u32 2147483647, %v3851_v58 }
  0xdc   : > { %7687 = vst [vmem:[#allocation76_spill] sm:$0xff] %v3764_v50  ;;  %v3844_v50 = vld [vmem:[%s3528_s29 + $0xc0] sm:$0xff]  ;;  %2806 = vpow2.f32 %v611_v33 }
  0xdd   : > { %7688 = vst [vmem:[#allocation77_spill] sm:$0xff] %v3766_v49  ;;  %v3857_v49 = vld [vmem:[%s3528_s29 + $0xd0] sm:$0xff]  ;;  %v571_v51 = vand.u32 2147483647, %v3844_v50  ;;  %2808 = vpow2.f32 %v613_v39 }
  0xde   : > { %7689 = vst [vmem:[#allocation78_spill] sm:$0xff] %v3769_v22 }
  0xdf   : > { %7690 = vst [vmem:[#allocation79_spill] sm:$0xff] %v3772_v21 }
  0xe0   : > { %7691 = vst [vmem:[#allocation80_spill] sm:$0xff] %v3775_v60 }
  0xe1   : > { %7692 = vst [vmem:[#allocation81_spill] sm:$0xff] %v3777_v23  ;;  %v559_v23 = vand.u32 2147483647, %v3786_v13 }
  0xe2   : > { %7693 = vst [vmem:[#allocation82_spill] sm:$0xff] %v3779_v19  ;;  %v3824_v19 = vld [vmem:[%s3528_s29 + $0xa0] sm:$0xff] }
  0xe3   : > { %7694 = vst [vmem:[#allocation83_spill] sm:$0xff] %v3781_v18  ;;  %v3827_v18 = vld [vmem:[%s3528_s29 + $0xa8] sm:$0xff]  ;;  %v567_v54 = vand.u32 2147483647, %v3824_v19 }
  0xe4   : > { %7695 = vst [vmem:[#allocation84_spill] sm:$0xff] %v3783_v16  ;;  %v3807_v16 = vld [vmem:[%s3528_s29 + $0x88] sm:$0xff] }
  0xe5   : > { %7696 = vst [vmem:[#allocation85_spill] sm:$0xff] %v3786_v13  ;;  %v564_v27 = vand.u32 2147483647, %v3807_v16  ;;  %v578_v13 = vand.u32 2147483647, %v3895_v40 }
  0xe6   : > { %7697 = vst [vmem:[#allocation86_spill] sm:$0xff] %v3789_v15  ;;  %v588_v15 = vsub.f32 0.0, %v556_v43  ;;  %v594_v43 = vsub.f32 0.0, %v562_v56 }
  0xe7   : > { %7698 = vst [vmem:[#allocation87_spill] sm:$0xff] %v3792_v32  ;;  %v585_v32 = vsub.f32 0.0, %v7724_v25  ;;  %v576_v25 = vand.u32 2147483647, %v3879_v59 }
  0xe8   : > { %7699 = vst [vmem:[#allocation88_spill] sm:$0xff] %v3795_v46  ;;  %v586_v46 = vsub.f32 0.0, %v7725_v53  ;;  %v577_v53 = vand.u32 2147483647, %v3887_v42  ;;  %v629_v39 = vmul.f32 1.442695, %v588_v15 }
  0xe9   : > { %7700 = vst [vmem:[#allocation89_spill] sm:$0xff] %v3797_v45  ;;  %v3817_v45 = vld [vmem:[%s3528_s29 + $0x98] sm:$0xff] }
  0xea   : > { %7701 = vst [vmem:[#allocation90_spill] sm:$0xff] %v3799_v12  ;;  %v3814_v12 = vld [vmem:[%s3528_s29 + $0x90] sm:$0xff] }
  0xeb   : > { %7702 = vst [vmem:[#allocation91_spill] sm:$0xff] %v3804_v48  ;;  %v565_v35 = vand.u32 2147483647, %v3814_v12  ;;  %v566_v48 = vand.u32 2147483647, %v3817_v45 }
  0xec   : > { %7703 = vst [vmem:[#allocation92_spill] sm:$0xff] %v3807_v16  ;;  %v569_v16 = vand.u32 2147483647, %v3834_v41 }
  0xed   : > { %7704 = vst [vmem:[#allocation93_spill] sm:$0xff] %v3814_v12  ;;  %v568_v12 = vand.u32 2147483647, %v3827_v18 }
  0xee   : > { %7705 = vst [vmem:[#allocation94_spill] sm:$0xff] %v3817_v45  ;;  %v7722_v45 = vand.u32 2147483647, %v3569_v5 }
  0xef   : > { %7706 = vst [vmem:[#allocation95_spill] sm:$0xff] %v3824_v19  ;;  %v570_v19 = vand.u32 2147483647, %v3837_v10  ;;  %v600_v15 = vsub.f32 0.0, %v568_v12 }
  0xf0   : > { %7707 = vst [vmem:[#allocation96_spill] sm:$0xff] %v3827_v18  ;;  %v583_v31 = vsub.f32 0.0, %v7722_v45  ;;  %v7723_v18 = vand.u32 2147483647, %v3572_v6  ;;  %v573_v45 = vand.u32 2147483647, %v3857_v49 }
  0xf1   : > { %7708 = vst [vmem:[#allocation97_spill] sm:$0xff] %v3834_v41 }
  0xf2   : > { %7709 = vst [vmem:[#allocation98_spill] sm:$0xff] %v3837_v10  ;;  %v584_v41 = vsub.f32 0.0, %v7723_v18  ;;  %v615_v10 = vmul.f32 1.442695, %v581_v24  ;;  %v587_v18 = vsub.f32 0.0, %v7726_v34  ;;  %v591_v34 = vsub.f32 0.0, %v559_v23 }
  0xf3   : > { %7710 = vst [vmem:[#allocation99_spill] sm:$0xff] %v3844_v50  ;;  %v617_v50 = vmul.f32 1.442695, %v582_v38  ;;  %v619_v26 = vmul.f32 1.442695, %v583_v31  ;;  %v590_v38 = vsub.f32 0.0, %v558_v30 }
  0xf4   : > { %7711 = vst [vmem:[#allocation100_spill] sm:$0xff] %v3851_v58  ;;  %v575_v58 = vand.u32 2147483647, %v3871_v52  ;;  %v621_v24 = vmul.f32 1.442695, %v584_v41  ;;  %2810 = vpow2.f32 %v615_v10  ;;  %v592_v31 = vsub.f32 0.0, %v560_v11  ;;  %v3920_v41 = vpop.eup %2806 }
  0xf5   : > { %7712 = vst [vmem:[#allocation101_spill] sm:$0xff] %v3857_v49  ;;  %v623_v49 = vmul.f32 1.442695, %v585_v32  ;;  %2812 = vpow2.f32 %v617_v50  ;;  %v627_v33 = vmul.f32 1.442695, %v587_v18  ;;  %v3922_v10 = vpop.eup %2808  ;;  %v596_v30 = vsub.f32 0.0, %v564_v27 }
  0xf6   : > { %7713 = vst [vmem:[#allocation102_spill] sm:$0xff] %v3863_v47  ;;  %v625_v47 = vmul.f32 1.442695, %v586_v46  ;;  %2814 = vpow2.f32 %v619_v26  ;;  %v631_v32 = vmul.f32 1.442695, %v589_v37  ;;  %v597_v50 = vsub.f32 0.0, %v565_v35 }
  0xf7   : > { %7715 = vst [vmem:[#allocation103_spill] sm:$0xff] %v3871_v52  ;;  %v593_v52 = vsub.f32 0.0, %v561_v57  ;;  %2816 = vpow2.f32 %v621_v24  ;;  %v633_v46 = vmul.f32 1.442695, %v590_v38  ;;  %v598_v23 = vsub.f32 0.0, %v566_v48 }
  0xf8   : > { %7717 = vst [vmem:[#allocation104_spill] sm:$0xff] %v3879_v59  ;;  %2818 = vpow2.f32 %v623_v49  ;;  %v599_v26 = vsub.f32 0.0, %v567_v54  ;;  %v635_v57 = vmul.f32 1.442695, %v591_v34  ;;  %v601_v18 = vsub.f32 0.0, %v569_v16 }
  0xf9   : > { %7719 = vst [vmem:[#allocation105_spill] sm:$0xff] %v3887_v42  ;;  %2820 = vpow2.f32 %v625_v47  ;;  %v637_v55 = vmul.f32 1.442695, %v592_v31  ;;  %v602_v37 = vsub.f32 0.0, %v570_v19  ;;  %v603_v49 = vsub.f32 0.0, %v571_v51 }
  0xfa   : > { %7721 = vst [vmem:[#allocation106_spill] sm:$0xff] %v3895_v40  ;;  %v3924_v40 = vpop.eup %2810  ;;  %2822 = vpow2.f32 %v627_v33  ;;  %v639_v27 = vmul.f32 1.442695, %v593_v52  ;;  %v604_v47 = vsub.f32 0.0, %v572_v28  ;;  %v605_v24 = vsub.f32 0.0, %v573_v45 }
  0xfb   : > { %v3926_v11 = vpop.eup %2812  ;;  %2824 = vpow2.f32 %v629_v39  ;;  %v641_v48 = vmul.f32 1.442695, %v594_v43  ;;  %v606_v38 = vsub.f32 0.0, %v574_v20  ;;  %v607_v34 = vsub.f32 0.0, %v575_v58 }
  0xfc   : > { %v3928_v56 = vpop.eup %2814  ;;  %2826 = vpow2.f32 %v631_v32  ;;  %v643_v16 = vmul.f32 1.442695, %v595_v44  ;;  %v608_v33 = vsub.f32 0.0, %v576_v25  ;;  %v609_v31 = vsub.f32 0.0, %v577_v53 }
  0xfd   : > { %v3930_v35 = vpop.eup %2816  ;;  %2828 = vpow2.f32 %v633_v46  ;;  %v645_v51 = vmul.f32 1.442695, %v596_v30  ;;  %v610_v52 = vsub.f32 0.0, %v578_v13  ;;  %v647_v28 = vmul.f32 1.442695, %v597_v50 }
  0xfe   : > { %v3932_v54 = vpop.eup %2818  ;;  %2830 = vpow2.f32 %v635_v57  ;;  %v649_v45 = vmul.f32 1.442695, %v598_v23  ;;  %v651_v43 = vmul.f32 1.442695, %v599_v26  ;;  %v653_v20 = vmul.f32 1.442695, %v600_v15 }
  0xff   : > { %v3934_v12 = vpop.eup %2820  ;;  %2832 = vpow2.f32 %v637_v55  ;;  %v678_v58 = vmul.f32 -0.5, %v3920_v41  ;;  %v655_v25 = vmul.f32 1.442695, %v601_v18  ;;  %v657_v53 = vmul.f32 1.442695, %v602_v37 }
 0x100   : > { %v3936_v19 = vpop.eup %2822  ;;  %2834 = vpow2.f32 %v639_v27  ;;  %v659_v32 = vmul.f32 1.442695, %v603_v49  ;;  %v661_v13 = vmul.f32 1.442695, %v604_v47  ;;  %v663_v46 = vmul.f32 1.442695, %v605_v24 }
 0x101   : > { %v3938_v39 = vpop.eup %2824  ;;  %2836 = vpow2.f32 %v641_v48  ;;  %v687_v50 = vmul.f32 -0.5, %v3922_v10  ;;  %v665_v26 = vmul.f32 1.442695, %v606_v38  ;;  %v667_v57 = vmul.f32 1.442695, %v607_v34 }
 0x102   : > { %v3941_v44 = vpop.eup %2826  ;;  %2838 = vpow2.f32 %v643_v16  ;;  %v696_v15 = vmul.f32 -0.5, %v3924_v40  ;;  %v669_v18 = vmul.f32 1.442695, %v608_v33  ;;  %v671_v37 = vmul.f32 1.442695, %v609_v31 }
 0x103   : > { %v3943_v30 = vpop.eup %2828  ;;  %2840 = vpow2.f32 %v645_v51  ;;  %v679_v49 = vadd.f32 1.0, %v678_v58  ;;  %v673_v47 = vmul.f32 1.442695, %v610_v52  ;;  %v675_v24 = vadd.f32 1.0, %v3920_v41 }
 0x104   : > { %v3946_v23 = vpop.eup %2830  ;;  %2842 = vpow2.f32 %v647_v28  ;;  %v705_v48 = vmul.f32 -0.5, %v3926_v11  ;;  %v684_v34 = vadd.f32 1.0, %v3922_v10  ;;  %v688_v51 = vadd.f32 1.0, %v687_v50 }
 0x105   : > { %v3949_v55 = vpop.eup %2832  ;;  %2844 = vpow2.f32 %v649_v45  ;;  %v697_v31 = vadd.f32 1.0, %v696_v15  ;;  %v714_v52 = vmul.f32 -0.5, %v3928_v56  ;;  %v723_v58 = vmul.f32 -0.5, %v3930_v35 }
 0x106   : > { %v3951_v27 = vpop.eup %2834  ;;  %2846 = vpow2.f32 %v651_v43  ;;  %v3966_v43 = vmul.f32 %v3920_v41, %v679_v49  ;;  %v702_v50 = vadd.f32 1.0, %v3926_v11  ;;  %v706_v15 = vadd.f32 1.0, %v705_v48 }
 0x107   : > { %v3955_v16 = vpop.eup %2836  ;;  %2848 = vpow2.f32 %v653_v20  ;;  %v693_v20 = vadd.f32 1.0, %v3924_v40  ;;  %v732_v42 = vmul.f32 -0.5, %v3932_v54  ;;  %v715_v60 = vadd.f32 1.0, %v714_v52 }
 0x108   : > { %v3959_v28 = vpop.eup %2838  ;;  %2850 = vpow2.f32 %v655_v25  ;;  %v711_v25 = vadd.f32 1.0, %v3928_v56  ;;  %v741_v36 = vmul.f32 -0.5, %v3934_v12  ;;  %v3994_v29 = vmul.f32 %v3926_v11, %v706_v15 }
 0x109   : > { %v3963_v45 = vpop.eup %2840  ;;  %2852 = vpow2.f32 %v657_v53  ;;  %v3977_v53 = vmul.f32 %v3922_v10, %v688_v51  ;;  %v724_v51 = vadd.f32 1.0, %v723_v58  ;;  %v733_v52 = vadd.f32 1.0, %v732_v42 }
 0x10a   : > { %v3970_v38 = vpop.eup %2842  ;;  %2854 = vpow2.f32 %v659_v32  ;;  %v3984_v32 = vmul.f32 %v3924_v40, %v697_v31  ;;  %v726_v31 = vand.u32 2147483647, %v3930_v35  ;;  %v750_v58 = vmul.f32 -0.5, %v3936_v19 }
 0x10b   : > { %v3974_v33 = vpop.eup %2844  ;;  %2856 = vpow2.f32 %v661_v13  ;;  %v735_v15 = vand.u32 2147483647, %v3932_v54  ;;  %v759_v21 = vmul.f32 -0.5, %v3938_v39  ;;  %v738_v42 = vadd.f32 1.0, %v3934_v12 }
 0x10c   : > { %v3981_v59 = vpop.eup %2846  ;;  %2858 = vpow2.f32 %v663_v46  ;;  %v720_v46 = vadd.f32 1.0, %v3930_v35  ;;  %v742_v14 = vadd.f32 1.0, %v741_v36  ;;  %v768_v0 = vmul.f32 -0.5, %v3941_v44 }
 0x10d   : > { %v3987_v48 = vpop.eup %2848  ;;  %2860 = vpow2.f32 %v665_v26  ;;  %v729_v26 = vadd.f32 1.0, %v3932_v54  ;;  %v756_v36 = vadd.f32 1.0, %v3938_v39  ;;  %v777_v7 = vmul.f32 -0.5, %v3943_v30 }
 0x10e   : > { %v3991_v49 = vpop.eup %2850  ;;  %2862 = vpow2.f32 %v667_v57  ;;  %v4005_v57 = vmul.f32 %v3928_v56, %v715_v60  ;;  %v747_v60 = vadd.f32 1.0, %v3936_v19  ;;  %v7731_v61 = vand.u32 2147483647, %v3920_v41 }
 0x10f   : > { %v3998_v17 = vpop.eup %2852  ;;  %2864 = vpow2.f32 %v669_v18  ;;  %v4012_v18 = vmul.f32 %v3930_v35, %v724_v51  ;;  %v751_v35 = vadd.f32 1.0, %v750_v58  ;;  %v753_v51 = vand.u32 2147483647, %v3936_v19 }
 0x110   : > { %v4002_v13 = vpop.eup %2854  ;;  %2866 = vpow2.f32 %v671_v37  ;;  %v744_v37 = vand.u32 2147483647, %v3934_v12  ;;  %vm4034_vm0 = vcmp.lt.f32.partialorder %v7731_v61, 0.0004427343  ;;  %v769_v6 = vadd.f32 1.0, %v768_v0 }
 0x111   : > { %v4009_v22 = vpop.eup %2856  ;;  %2868 = vpow2.f32 %v673_v47  ;;  %v4023_v47 = vmul.f32 %v3932_v54, %v733_v52  ;;  %v4039_v54 = vmul.f32 %v3934_v12, %v742_v14  ;;  %v762_v52 = vand.u32 2147483647, %v3938_v39 }
 0x112   : > { %v4015_v9 = vpop.eup %2858  ;;  %2870 = vlog2.f32 %v675_v24  ;;  %v760_v24 = vadd.f32 1.0, %v759_v21  ;;  %v765_v21 = vadd.f32 1.0, %v3941_v44  ;;  %v795_v41 = vmul.f32 -0.5, %v3949_v55 }
 0x113   : > { %7727 = vst [vmem:[#allocation107_spill] sm:$0xff] %v4015_v9  ;;  %v4020_v8 = vpop.eup %2860  ;;  %2872 = vlog2.f32 %v684_v34  ;;  %v7732_v34 = vmov 0  ;;  %v7738_v5 = vand.u32 2147483647, %v3922_v10  ;;  %v4056_v14 = vmul.f32 %v3936_v19, %v751_v35 }
 0x114   : > { %7728 = vst [vmem:[#allocation108_spill] sm:$0xff] %v4020_v8  ;;  %v4026_v63 = vpop.eup %2862  ;;  %2874 = vlog2.f32 %v693_v20  ;;  %v7733_v34 = vsel %vm4034_vm0, 4294967295, %v7732_v34  ;;  %v786_v20 = vmul.f32 -0.5, %v3946_v23  ;;  %v771_v12 = vand.u32 2147483647, %v3941_v44 }
 0x115   : > { %7729 = vst [vmem:[#allocation109_spill] sm:$0xff] %v4026_v63  ;;  %v4030_v62 = vpop.eup %2864  ;;  %2876 = vlog2.f32 %v702_v50  ;;  %vm4051_vm1 = vcmp.lt.f32.partialorder %v7738_v5, 0.0004427343  ;;  %v4061_v0 = vmul.f32 %v3938_v39, %v760_v24  ;;  %v778_v10 = vadd.f32 1.0, %v777_v7 }
 0x116   : > { %7730 = vst [vmem:[#allocation110_spill] sm:$0xff] %v4030_v62  ;;  %v4043_v58 = vpop.eup %2866  ;;  %2878 = vlog2.f32 %v711_v25  ;;  %v804_v25 = vmul.f32 -0.5, %v3951_v27  ;;  %v7741_v3 = vand.u32 2147483647, %v3924_v40  ;;  %v780_v19 = vand.u32 2147483647, %v3943_v30 }
 0x117   : > { %7734 = vst [vmem:[#allocation111_spill] sm:$0xff] %v7733_v34  ;;  %v4047_v61 = vpop.eup %2868  ;;  %2880 = vlog2.f32 %v720_v46  ;;  %v783_v35 = vadd.f32 1.0, %v3946_v23  ;;  %v7744_v39 = vand.u32 2147483647, %v3926_v11  ;;  %v7747_v7 = vand.u32 2147483647, %v3928_v56 }
 0x118   : > { %7735 = vst [vmem:[#allocation112_spill] sm:$0xff] %v4039_v54  ;;  %v2871_v4 = vpop.eup %2870  ;;  %2882 = vlog2.f32 %v729_v26  ;;  %vm4066_vm2 = vcmp.lt.f32.partialorder %v7741_v3, 0.0004427343  ;;  %vm4084_vm5 = vcmp.lt.f32.partialorder %v726_v31, 0.0004427343  ;;  %v7750_v40 = vmov 0 }
 0x119   : > { %7736 = vst [vmem:[#allocation113_spill] sm:$0xff] %v4043_v58  ;;  %v2873_v5 = vpop.eup %2872  ;;  %2884 = vlog2.f32 %v738_v42  ;;  %v787_v58 = vadd.f32 1.0, %v786_v20  ;;  %vm4074_vm3 = vcmp.lt.f32.partialorder %v7744_v39, 0.0004427343  ;;  %vm4080_vm4 = vcmp.lt.f32.partialorder %v7747_v7, 0.0004427343 }
 0x11a   : > { %7737 = vst [vmem:[#allocation114_spill] sm:$0xff] %v4047_v61  ;;  %v774_v61 = vadd.f32 1.0, %v3943_v30  ;;  %v2875_v26 = vpop.eup %2874  ;;  %v7751_v40 = vsel %vm4084_vm5, 4294967295, %v7750_v40  ;;  %2886 = vlog2.f32 %v747_v60  ;;  %v4089_v42 = vmul.f32 %v3941_v44, %v769_v6 }
 0x11b   : > { %7752 = vst [vmem:[#allocation115_spill] sm:$0xff] %v7751_v40  ;;  %v796_v20 = vadd.f32 1.0, %v795_v41  ;;  %v813_v11 = vmul.f32 -0.5, %v3955_v16  ;;  %v2877_v39 = vpop.eup %2876  ;;  %vm4092_vm6 = vcmp.lt.f32.partialorder %v735_v15, 0.0004427343  ;;  %2888 = vlog2.f32 %v756_v36 }
 0x11c   : > { %v7754_v2 = vsel %vm4092_vm6, 4294967295, %v7753_v2  ;;  %v789_v56 = vand.u32 2147483647, %v3946_v23  ;;  %v792_v31 = vadd.f32 1.0, %v3949_v55  ;;  %v805_v7 = vadd.f32 1.0, %v804_v25  ;;  %v2879_v1 = vpop.eup %2878 }
 0x11d   : > { %7755 = vst [vmem:[#allocation116_spill] sm:$0xff] %v7754_v2  ;;  %v4098_v62 = vmul.f32 0.6931472, %v2871_v4  ;;  %vm4100_vm7 = vcmp.lt.f32.partialorder %v744_v37, 0.0004427343  ;;  %2890 = vlog2.f32 %v765_v21  ;;  %v4105_v44 = vmul.f32 %v3943_v30, %v778_v10  ;;  %v2881_v60 = vpop.eup %2880 }
 0x11e   : > { %v798_v15 = vand.u32 2147483647, %v3949_v55  ;;  %vm4108_vm8 = vcmp.lt.f32.partialorder %v753_v51, 0.0004427343  ;;  %v7759_v36 = vmov 0  ;;  %2892 = vlog2.f32 %v774_v61  ;;  %v2883_v25 = vpop.eup %2882 }
 0x11f   : > { %7758 = vst [vmem:[#allocation117_spill] sm:$0xff] %v4105_v44  ;;  %v7760_v36 = vsel %vm4108_vm8, 4294967295, %v7759_v36  ;;  %v4113_v41 = vmul.f32 %v3946_v23, %v787_v58  ;;  %v801_v4 = vadd.f32 1.0, %v3951_v27  ;;  %v807_v37 = vand.u32 2147483647, %v3951_v27  ;;  %v2885_v63 = vpop.eup %2884  ;;  %v7912_v23 = vld [vmem:[#allocation59_spill] sm:$0xff] }
 0x120   : > { %7761 = vst [vmem:[#allocation118_spill] sm:$0xff] %v7760_v36  ;;  %v4117_v21 = vmul.f32 0.6931472, %v2873_v5  ;;  %v4120_v30 = vmul.f32 %v3949_v55, %v796_v20  ;;  %v810_v10 = vadd.f32 1.0, %v3955_v16  ;;  %v814_v51 = vadd.f32 1.0, %v813_v11 }
 0x121   : > { %vm4123_vm9 = vcmp.lt.f32.partialorder %v762_v52, 0.0004427343  ;;  %vm4127_vm10 = vcmp.lt.f32.partialorder %v771_v12, 0.0004427343  ;;  %vm4131_vm11 = vcmp.lt.f32.partialorder %v780_v19, 0.0004427343  ;;  %2894 = vlog2.f32 %v783_v35  ;;  %v2887_v52 = vpop.eup %2886 }
 0x122   : > { %v7766_v58 = vmov 0  ;;  %v4136_v55 = vmul.f32 %v3951_v27, %v805_v7  ;;  %v816_v61 = vand.u32 2147483647, %v3955_v16  ;;  %v819_v5 = vadd.f32 1.0, %v3959_v28  ;;  %v2889_v11 = vpop.eup %2888 }
 0x123   : > { %v7767_v58 = vsel %vm4131_vm11, 4294967295, %v7766_v58  ;;  %v4144_v20 = vmul.f32 0.6931472, %v2875_v26  ;;  %2896 = vlog2.f32 %v792_v31  ;;  %v822_v19 = vmul.f32 -0.5, %v3959_v28  ;;  %v2891_v9 = vpop.eup %2890 }
 0x124   : > { %7768 = vst [vmem:[#allocation119_spill] sm:$0xff] %v7767_v58  ;;  %v4147_v35 = vmul.f32 0.6931472, %v2877_v39  ;;  %v4149_v27 = vmul.f32 0.6931472, %v2879_v1  ;;  %2898 = vlog2.f32 %v801_v4  ;;  %v7773_v39 = vmov 0  ;;  %v2893_v31 = vpop.eup %2892 }
 0x125   : > { %v4151_v7 = vmul.f32 0.6931472, %v2881_v60  ;;  %v4157_v12 = vmul.f32 0.6931472, %v2883_v25  ;;  %vm4159_vm12 = vcmp.lt.f32.partialorder %v789_v56, 0.0004427343  ;;  %2900 = vlog2.f32 %v810_v10 }
 0x126   : > { %7769 = vst [vmem:[#allocation120_spill] sm:$0xff] %v4147_v35  ;;  %vm4163_vm13 = vcmp.lt.f32.partialorder %v798_v15, 0.0004427343  ;;  %v4168_v1 = vmul.f32 %v3955_v16, %v814_v51  ;;  %v4170_v60 = vmul.f32 0.6931472, %v2885_v63  ;;  %2902 = vlog2.f32 %v819_v5 }
 0x127   : > { %7770 = vst [vmem:[#allocation121_spill] sm:$0xff] %v4149_v27  ;;  %v7774_v39 = vsel %vm4163_vm13, 4294967295, %v7773_v39  ;;  %v825_v4 = vand.u32 2147483647, %v3959_v28  ;;  %v828_v25 = vadd.f32 1.0, %v3963_v45  ;;  %v7777_v10 = vmov 0  ;;  %v2895_v51 = vpop.eup %2894 }
 0x128   : > { %7775 = vst [vmem:[#allocation122_spill] sm:$0xff] %v4168_v1  ;;  %v4178_v15 = vmul.f32 0.6931472, %v2887_v52  ;;  %vm4180_vm14 = vcmp.lt.f32.partialorder %v807_v37, 0.0004427343  ;;  %v823_v16 = vadd.f32 1.0, %v822_v19 }
 0x129   : > { %7776 = vst [vmem:[#allocation123_spill] sm:$0xff] %v4170_v60  ;;  %v7778_v10 = vsel %vm4180_vm14, 4294967295, %v7777_v10  ;;  %v837_v63 = vadd.f32 1.0, %v3970_v38  ;;  %vm4197_vm15 = vcmp.lt.f32.partialorder %v816_v61, 0.0004427343  ;;  %v7779_v52 = vmov 0  ;;  %v2897_v34 = vpop.eup %2896 }
 0x12a   : > { %v7780_v52 = vsel %vm4197_vm15, 4294967295, %v7779_v52  ;;  %v831_v19 = vmul.f32 -0.5, %v3963_v45  ;;  %v4206_v35 = vmul.f32 0.6931472, %v2889_v11  ;;  %v4208_v56 = vmul.f32 0.6931472, %v2891_v9  ;;  %v2899_v40 = vpop.eup %2898 }
 0x12b   : > { %7781 = vst [vmem:[#allocation124_spill] sm:$0xff] %v7780_v52  ;;  %v4210_v27 = vmul.f32 0.6931472, %v2893_v31  ;;  %vm4216_vm5 = vcmp.lt.f32.partialorder %v825_v4, 0.0004427343  ;;  %v7784_v37 = vmov 0  ;;  %2904 = vlog2.f32 %v828_v25  ;;  %v2901_v5 = vpop.eup %2900 }
 0x12c   : > { %7782 = vst [vmem:[#allocation125_spill] sm:$0xff] %v4208_v56  ;;  %v7785_v37 = vsel %vm4216_vm5, 4294967295, %v7784_v37  ;;  %v834_v2 = vand.u32 2147483647, %v3963_v45  ;;  %v4226_v11 = vmul.f32 %v3959_v28, %v823_v16  ;;  %2906 = vlog2.f32 %v837_v63  ;;  %v2903_v61 = vpop.eup %2902 }
 0x12d   : > { %7783 = vst [vmem:[#allocation126_spill] sm:$0xff] %v4210_v27  ;;  %v846_v31 = vadd.f32 1.0, %v3974_v33  ;;  %v4229_v4 = vmul.f32 0.6931472, %v2895_v51  ;;  %v4231_v60 = vmul.f32 0.6931472, %v2897_v34 }
 0x12e   : > { %7786 = vst [vmem:[#allocation127_spill] sm:$0xff] %v7785_v37  ;;  %v832_v25 = vadd.f32 1.0, %v831_v19  ;;  %v840_v54 = vmul.f32 -0.5, %v3970_v38  ;;  %v855_v34 = vadd.f32 1.0, %v3981_v59  ;;  %v4247_v63 = vmul.f32 0.6931472, %v2899_v40 }
 0x12f   : > { %7787 = vst [vmem:[#allocation128_spill] sm:$0xff] %v4226_v11  ;;  %vm4249_vm8 = vcmp.lt.f32.partialorder %v834_v2, 0.0004427343  ;;  %v7789_v51 = vmov 0  ;;  %v849_v19 = vmul.f32 -0.5, %v3974_v33  ;;  %v864_v36 = vadd.f32 1.0, %v3987_v48 }
 0x130   : > { %7788 = vst [vmem:[#allocation129_spill] sm:$0xff] %v4229_v4  ;;  %v7790_v51 = vsel %vm4249_vm8, 4294967295, %v7789_v51  ;;  %v4255_v9 = vmul.f32 0.6931472, %v2901_v5  ;;  %v4257_v28 = vmul.f32 0.6931472, %v2903_v61  ;;  %2908 = vlog2.f32 %v846_v31 }
 0x131   : > { %7791 = vst [vmem:[#allocation130_spill] sm:$0xff] %v7790_v51  ;;  %v843_v56 = vand.u32 2147483647, %v3970_v38  ;;  %v2905_v16 = vpop.eup %2904  ;;  %v4269_v27 = vmul.f32 %v3963_v45, %v832_v25  ;;  %v841_v5 = vadd.f32 1.0, %v840_v54  ;;  %v852_v44 = vand.u32 2147483647, %v3974_v33 }
 0x132   : > { %7792 = vst [vmem:[#allocation131_spill] sm:$0xff] %v4255_v9  ;;  %v2907_v61 = vpop.eup %2906  ;;  %2910 = vlog2.f32 %v855_v34  ;;  %v858_v31 = vmul.f32 -0.5, %v3981_v59  ;;  %v873_v58 = vadd.f32 1.0, %v3991_v49  ;;  %v850_v4 = vadd.f32 1.0, %v849_v19 }
 0x133   : > { %7793 = vst [vmem:[#allocation132_spill] sm:$0xff] %v4257_v28  ;;  %2912 = vlog2.f32 %v864_v36  ;;  %v867_v40 = vmul.f32 -0.5, %v3987_v48  ;;  %v4287_v25 = vmul.f32 0.6931472, %v2905_v16  ;;  %vm4289_vm13 = vcmp.lt.f32.partialorder %v843_v56, 0.0004427343 }
 0x134   : > { %7794 = vst [vmem:[#allocation133_spill] sm:$0xff] %v4269_v27  ;;  %v7796_v34 = vmov 0  ;;  %v4293_v19 = vmul.f32 0.6931472, %v2907_v61  ;;  %v4296_v36 = vmul.f32 %v3970_v38, %v841_v5  ;;  %v861_v2 = vand.u32 2147483647, %v3981_v59 }
 0x135   : > { %7795 = vst [vmem:[#allocation134_spill] sm:$0xff] %v4287_v25  ;;  %v7797_v34 = vsel %vm4289_vm13, 4294967295, %v7796_v34  ;;  %v882_v45 = vadd.f32 1.0, %v3998_v17  ;;  %vm4300_vm15 = vcmp.lt.f32.partialorder %v852_v44, 0.0004427343  ;;  %v7801_v1 = vmov 0 }
 0x136   : > { %7798 = vst [vmem:[#allocation135_spill] sm:$0xff] %v7797_v34  ;;  %v2909_v9 = vpop.eup %2908  ;;  %v7802_v1 = vsel %vm4300_vm15, 4294967295, %v7801_v1  ;;  %v859_v16 = vadd.f32 1.0, %v858_v31  ;;  %2914 = vlog2.f32 %v873_v58  ;;  %v876_v56 = vmul.f32 -0.5, %v3991_v49 }
 0x137   : > { %7799 = vst [vmem:[#allocation136_spill] sm:$0xff] %v4293_v19  ;;  %v4306_v54 = vmul.f32 %v3974_v33, %v850_v4  ;;  %v868_v61 = vadd.f32 1.0, %v867_v40  ;;  %v870_v38 = vand.u32 2147483647, %v3987_v48  ;;  %v891_v5 = vadd.f32 1.0, %v4002_v13 }
 0x138   : > { %7800 = vst [vmem:[#allocation137_spill] sm:$0xff] %v4296_v36  ;;  %v2911_v28 = vpop.eup %2910  ;;  %v879_v11 = vand.u32 2147483647, %v3991_v49  ;;  %v885_v58 = vmul.f32 -0.5, %v3998_v17  ;;  %v900_v31 = vadd.f32 1.0, %v4009_v22  ;;  %v7806_v40 = vmov 0 }
 0x139   : > { %7803 = vst [vmem:[#allocation138_spill] sm:$0xff] %v7802_v1  ;;  %v2913_v37 = vpop.eup %2912  ;;  %v4321_v4 = vmul.f32 0.6931472, %v2909_v9  ;;  %vm4323_vm5 = vcmp.lt.f32.partialorder %v861_v2, 0.0004427343  ;;  %2916 = vlog2.f32 %v882_v45  ;;  %v4328_v44 = vmul.f32 %v3981_v59, %v859_v16  ;;  %v7823_v1 = vld [vmem:[#allocation109_spill] sm:$0xff] }
 0x13a   : > { %7804 = vst [vmem:[#allocation139_spill] sm:$0xff] %v4306_v54  ;;  %v7807_v40 = vsel %vm4323_vm5, 4294967295, %v7806_v40  ;;  %v877_v25 = vadd.f32 1.0, %v876_v56  ;;  %v888_v27 = vand.u32 2147483647, %v3998_v17  ;;  %v894_v51 = vmul.f32 -0.5, %v4002_v13 }
 0x13b   : > { %7805 = vst [vmem:[#allocation140_spill] sm:$0xff] %v4321_v4  ;;  %v4332_v52 = vmul.f32 0.6931472, %v2911_v28  ;;  %v4335_v34 = vmul.f32 %v3987_v48, %v868_v61  ;;  %vm4337_vm13 = vcmp.lt.f32.partialorder %v870_v38, 0.0004427343  ;;  %v7812_v9 = vmov 0 }
 0x13c   : > { %7808 = vst [vmem:[#allocation141_spill] sm:$0xff] %v7807_v40  ;;  %v7813_v9 = vsel %vm4337_vm13, 4294967295, %v7812_v9  ;;  %2918 = vlog2.f32 %v891_v5  ;;  %v2915_v2 = vpop.eup %2914  ;;  %v4341_v45 = vmul.f32 0.6931472, %v2913_v37  ;;  %vm4343_vm8 = vcmp.lt.f32.partialorder %v879_v11, 0.0004427343 }
 0x13d   : > { %7809 = vst [vmem:[#allocation142_spill] sm:$0xff] %v4328_v44  ;;  %v7815_v59 = vmov 0  ;;  %v886_v16 = vadd.f32 1.0, %v885_v58  ;;  %2920 = vlog2.f32 %v900_v31  ;;  %v897_v28 = vand.u32 2147483647, %v4002_v13  ;;  %v7818_v61 = vld [vmem:[#allocation107_spill] sm:$0xff] }
 0x13e   : > { %7810 = vst [vmem:[#allocation143_spill] sm:$0xff] %v4332_v52  ;;  %v7816_v59 = vsel %vm4343_vm8, 4294967295, %v7815_v59  ;;  %v903_v56 = vmul.f32 -0.5, %v4009_v22  ;;  %v909_v38 = vadd.f32 1.0, %v7818_v61  ;;  %v4355_v37 = vmul.f32 %v3991_v49, %v877_v25  ;;  %v7822_v54 = vld [vmem:[#allocation108_spill] sm:$0xff] }
 0x13f   : > { %7811 = vst [vmem:[#allocation144_spill] sm:$0xff] %v4335_v34  ;;  %vm4357_vm14 = vcmp.lt.f32.partialorder %v888_v27, 0.0004427343  ;;  %v895_v5 = vadd.f32 1.0, %v894_v51  ;;  %v906_v58 = vand.u32 2147483647, %v4009_v22  ;;  %v2917_v31 = vpop.eup %2916  ;;  %v4375_v51 = vmul.f32 %v3998_v17, %v886_v16 }
 0x140   : > { %7814 = vst [vmem:[#allocation145_spill] sm:$0xff] %v4341_v45  ;;  %v4366_v33 = vmul.f32 0.6931472, %v2915_v2  ;;  %v912_v4 = vmul.f32 -0.5, %v7818_v61  ;;  %v918_v49 = vadd.f32 1.0, %v7822_v54  ;;  %v927_v19 = vadd.f32 1.0, %v7823_v1 }
 0x141   : > { %7817 = vst [vmem:[#allocation146_spill] sm:$0xff] %v7816_v59  ;;  %v915_v25 = vand.u32 2147483647, %v7818_v61  ;;  %vm4379_vm5 = vcmp.lt.f32.partialorder %v897_v28, 0.0004427343  ;;  %v7824_v2 = vmov 0  ;;  %2922 = vlog2.f32 %v909_v38 }
 0x142   : > { %7821 = vst [vmem:[#allocation107_spill] sm:$0xff] %v4366_v33  ;;  %v2919_v40 = vpop.eup %2918  ;;  %v7825_v2 = vsel %vm4379_vm5, 4294967295, %v7824_v2  ;;  %v904_v48 = vadd.f32 1.0, %v903_v56  ;;  %v921_v52 = vmul.f32 -0.5, %v7822_v54  ;;  %v4384_v36 = vmul.f32 0.6931472, %v2917_v31 }
 0x143   : > { %7826 = vst [vmem:[#allocation108_spill] sm:$0xff] %v7825_v2  ;;  %v2921_v44 = vpop.eup %2920  ;;  %v4387_v27 = vmul.f32 %v4002_v13, %v895_v5  ;;  %vm4389_vm13 = vcmp.lt.f32.partialorder %v906_v58, 0.0004427343  ;;  %v7829_v17 = vmov 0  ;;  %v7832_v16 = vld [vmem:[#allocation110_spill] sm:$0xff]  ;;  %v913_v56 = vadd.f32 1.0, %v912_v4 }
 0x144   : > { %7827 = vst [vmem:[#allocation109_spill] sm:$0xff] %v4384_v36  ;;  %v7830_v17 = vsel %vm4389_vm13, 4294967295, %v7829_v17  ;;  %v936_v45 = vadd.f32 1.0, %v7832_v16  ;;  %2924 = vlog2.f32 %v918_v49  ;;  %v930_v38 = vmul.f32 -0.5, %v7823_v1  ;;  %v7838_v49 = vld [vmem:[#allocation17_spill] sm:$0xff] }
 0x145   : > { %7828 = vst [vmem:[#allocation147_spill] sm:$0xff] %v4387_v27  ;;  %v4399_v31 = vmul.f32 0.6931472, %v2919_v40  ;;  %vm4401_vm15 = vcmp.lt.f32.partialorder %v915_v25, 0.0004427343  ;;  %2926 = vlog2.f32 %v927_v19  ;;  %v4409_v34 = vmul.f32 %v4009_v22, %v904_v48  ;;  %v7842_v22 = vld [vmem:[#allocation18_spill] sm:$0xff] }
 0x146   : > { %7831 = vst [vmem:[#allocation148_spill] sm:$0xff] %v7830_v17  ;;  %v924_v5 = vand.u32 2147483647, %v7822_v54  ;;  %v4406_v58 = vmul.f32 0.6931472, %v2921_v44  ;;  %v922_v59 = vadd.f32 1.0, %v921_v52  ;;  %2928 = vlog2.f32 %v936_v45 }
 0x147   : > { %7833 = vst [vmem:[#allocation110_spill] sm:$0xff] %v4399_v31  ;;  %v933_v4 = vand.u32 2147483647, %v7823_v1  ;;  %v7839_v25 = vmax.f32 %v7838_v49, 0.0  ;;  %v7841_v19 = vsel %vm4034_vm0, %v3966_v43, %v4098_v62  ;;  %v7843_v48 = vmax.f32 %v7842_v22, 0.0  ;;  %v2923_v40 = vpop.eup %2922  ;;  %v7845_v62 = vld [vmem:[#allocation113_spill] sm:$0xff] }
 0x148   : > { %7836 = vst [vmem:[#allocation149_spill] sm:$0xff] %v4406_v58  ;;  %v7844_v52 = vsel %vm4051_vm1, %v3977_v53, %v4117_v21  ;;  %v4435_v45 = vmul.f32 %v7818_v61, %v913_v56  ;;  %v931_v28 = vadd.f32 1.0, %v930_v38  ;;  %v939_v49 = vmul.f32 -0.5, %v7832_v16  ;;  %v7849_v61 = vld [vmem:[#allocation19_spill] sm:$0xff]  ;;  %v7866_v31 = vld [vmem:[#allocation22_spill] sm:$0xff] }
 0x149   : > { %7837 = vst [vmem:[#allocation150_spill] sm:$0xff] %v4409_v34  ;;  %v4423_v44 = vadd.f32 %v7841_v19, %v7839_v25  ;;  %v4432_v33 = vadd.f32 %v7844_v52, %v7843_v48  ;;  %v945_v43 = vadd.f32 1.0, %v7845_v62  ;;  %vm4443_vm0 = vcmp.lt.f32.partialorder %v924_v5, 0.0004427343  ;;  %v7868_v27 = vld [vmem:[#allocation115_spill] sm:$0xff] }
 0x14a   : > { %v7846_v53 = vmov 0  ;;  %v942_v21 = vand.u32 2147483647, %v7832_v16  ;;  %v7850_v56 = vmax.f32 %v7849_v61, 0.0  ;;  %v7851_v38 = vsel %vm4066_vm2, %v3984_v32, %v4144_v20  ;;  %v2925_v19 = vpop.eup %2924  ;;  %v7854_v20 = vld [vmem:[#allocation20_spill] sm:$0xff] }
 0x14b   : > { %v7847_v53 = vsel %vm4443_vm0, 4294967295, %v7846_v53  ;;  %v4462_v22 = vmul.f32 %v7822_v54, %v922_v59  ;;  %vm4464_vm1 = vcmp.lt.f32.partialorder %v933_v4, 0.0004427343  ;;  %v948_v46 = vmul.f32 -0.5, %v7845_v62  ;;  %v2927_v52 = vpop.eup %2926  ;;  %v2934_v54 = vld [vmem:[%s3528_s29] sm:$0xff]  ;;  %v2935_v4 = vld [vmem:[%s3528_s29 + $0x8] sm:$0xff] }
 0x14c   : > { %7848 = vst [vmem:[#allocation17_spill] sm:$0xff] %v7847_v53  ;;  %v4455_v25 = vadd.f32 %v7851_v38, %v7850_v56  ;;  %v4469_v32 = vmul.f32 0.6931472, %v2923_v40  ;;  %v7855_v61 = vmax.f32 %v7854_v20, 0.0  ;;  %v7856_v56 = vld [vmem:[#allocation120_spill] sm:$0xff]  ;;  %v996_v59 = vsub.f32 %v4423_v44, %v2934_v54  ;;  %v7858_v20 = vld [vmem:[#allocation114_spill] sm:$0xff]  ;;  %v2929_v24 = vpop.eup %2928 }
 0x14d   : > { %v7857_v38 = vsel %vm4074_vm3, %v3994_v29, %v7856_v56  ;;  %v997_v50 = vsub.f32 %v4432_v33, %v2935_v4  ;;  %v4485_v58 = vmul.f32 %v7823_v1, %v931_v28  ;;  %v940_v40 = vadd.f32 1.0, %v939_v49  ;;  %v2936_v28 = vld [vmem:[%s3528_s29 + $0x10] sm:$0xff] }
 0x14e   : > { %v4478_v5 = vadd.f32 %v7857_v38, %v7855_v61  ;;  %2930 = vlog2.f32 %v945_v43  ;;  %v957_v34 = vmul.f32 -0.5, %v7858_v20  ;;  %v4488_v17 = vmul.f32 0.6931472, %v2925_v19  ;;  %v7862_v61 = vld [vmem:[#allocation21_spill] sm:$0xff] }
 0x14f   : > { %vm4490_vm2 = vcmp.lt.f32.partialorder %v942_v21, 0.0004427343  ;;  %v7859_v29 = vmov 0  ;;  %v7863_v56 = vmax.f32 %v7862_v61, 0.0  ;;  %v7864_v38 = vld [vmem:[#allocation121_spill] sm:$0xff]  ;;  %v998_v49 = vsub.f32 %v4455_v25, %v2936_v28 }
 0x150   : > { %v7860_v29 = vsel %vm4490_vm2, 4294967295, %v7859_v29  ;;  %v7865_v54 = vsel %vm4080_vm4, %v4005_v57, %v7864_v38  ;;  %v4505_v43 = vmul.f32 0.6931472, %v2927_v52  ;;  %v949_v19 = vadd.f32 1.0, %v948_v46  ;;  %v7873_v46 = vld [vmem:[#allocation27_spill] sm:$0xff] }
 0x151   : > { %7861 = vst [vmem:[#allocation111_spill] sm:$0xff] %v7860_v29  ;;  %v4501_v1 = vadd.f32 %v7865_v54, %v7863_v56  ;;  %v951_v21 = vand.u32 2147483647, %v7845_v62  ;;  %v954_v4 = vadd.f32 1.0, %v7858_v20  ;;  %v7867_v61 = vmax.f32 %v7866_v31, 0.0  ;;  %v2937_v56 = vld [vmem:[%s3528_s29 + $0x18] sm:$0xff] }
 0x152   : > { %vm7869_vm3 = vnez %v7868_v27  ;;  %v999_v38 = vsub.f32 %v4478_v5, %v2937_v56  ;;  %v7871_v54 = vld [vmem:[#allocation26_spill] sm:$0xff]  ;;  %v7874_v2 = vmax.f32 %v7873_v46, 0.0  ;;  %v4528_v27 = vmul.f32 0.6931472, %v2929_v24  ;;  %v2938_v24 = vld [vmem:[%s3528_s29 + $0x20] sm:$0xff] }
 0x153   : > { %v7870_v57 = vsel %vm7869_vm3, %v4012_v18, %v4151_v7  ;;  %v7872_v52 = vmax.f32 %v7871_v54, 0.0  ;;  %v4531_v18 = vmul.f32 %v7832_v16, %v940_v40  ;;  %v958_v7 = vadd.f32 1.0, %v957_v34  ;;  %v7881_v16 = vld [vmem:[#allocation28_spill] sm:$0xff] }
 0x154   : > { %v4516_v3 = vadd.f32 %v7870_v57, %v7867_v61  ;;  %v1029_v36 = vmul.f32 %v997_v50, %v7874_v2  ;;  %7875 = vst [vmem:[#allocation18_spill] sm:$0xff] %v4528_v27  ;;  %v7877_v61 = vld [vmem:[#allocation23_spill] sm:$0xff]  ;;  %v7880_v50 = vsel %vm4092_vm6, %v4023_v47, %v4157_v12  ;;  %v7882_v40 = vmax.f32 %v7881_v16, 0.0  ;;  %v2931_v31 = vpop.eup %2930  ;;  %v7883_v2 = vld [vmem:[#allocation24_spill] sm:$0xff] }
 0x155   : > { %v1028_v28 = vmul.f32 %v996_v59, %v7872_v52  ;;  %7876 = vst [vmem:[#allocation113_spill] sm:$0xff] %v4531_v18  ;;  %v7878_v57 = vmax.f32 %v7877_v61, 0.0  ;;  %v1000_v52 = vsub.f32 %v4501_v1, %v2938_v24  ;;  %v4551_v53 = vmul.f32 %v7845_v62, %v949_v19  ;;  %v7885_v47 = vld [vmem:[#allocation112_spill] sm:$0xff]  ;;  %v7886_v12 = vld [vmem:[#allocation123_spill] sm:$0xff]  ;;  %v2939_v19 = vld [vmem:[%s3528_s29 + $0x28] sm:$0xff] }
 0x156   : > { %v1030_v34 = vmul.f32 %v998_v49, %v7882_v40  ;;  %2932 = vlog2.f32 %v954_v4  ;;  %v7884_v59 = vmax.f32 %v7883_v2, 0.0  ;;  %vm4567_vm4 = vcmp.lt.f32.partialorder %v951_v21, 0.0004427343  ;;  %v7890_v24 = vld [vmem:[#allocation29_spill] sm:$0xff]  ;;  %v7899_v61 = vld [vmem:[#allocation30_spill] sm:$0xff] }
 0x157   : > { %v4544_v56 = vadd.f32 %v7880_v50, %v7878_v57  ;;  %v7887_v57 = vsel %vm4100_vm7, %v7885_v47, %v7886_v12  ;;  %v1001_v4 = vsub.f32 %v4516_v3, %v2939_v19  ;;  %v7891_v6 = vmax.f32 %v7890_v24, 0.0  ;;  %v7892_v21 = vld [vmem:[#allocation25_spill] sm:$0xff]  ;;  %v7901_v18 = vld [vmem:[#allocation78_spill] sm:$0xff] }
 0x158   : > { %v4561_v50 = vadd.f32 %v7887_v57, %v7884_v59  ;;  %v1060_v2 = vadd.f32 %v1029_v36, %v1028_v28  ;;  %v4580_v47 = vmul.f32 %v7858_v20, %v958_v7  ;;  %v7893_v12 = vmax.f32 %v7892_v21, 0.0  ;;  %v7894_v57 = vld [vmem:[#allocation118_spill] sm:$0xff]  ;;  %v2940_v59 = vld [vmem:[%s3528_s29 + $0x30] sm:$0xff] }
 0x159   : > { %v1031_v40 = vmul.f32 %v999_v38, %v7891_v6  ;;  %vm7895_vm6 = vnez %v7894_v57  ;;  %v7897_v38 = vmax.f32 %v7871_v54, 0.0  ;;  %v7898_v36 = vmax.f32 %v7873_v46, 0.0  ;;  %v7904_v54 = vld [vmem:[#allocation79_spill] sm:$0xff] }
 0x15a   : > { %v7896_v49 = vsel %vm7895_vm6, %v4056_v14, %v4178_v15  ;;  %v4595_v6 = vmul.f32 0.6931472, %v2931_v31  ;;  %v1002_v7 = vsub.f32 %v4544_v56, %v2940_v59  ;;  %v7900_v21 = vmax.f32 %v7899_v61, 0.0  ;;  %v7906_v31 = vld [vmem:[#allocation125_spill] sm:$0xff] }
 0x15b   : > { %v4589_v19 = vadd.f32 %v7896_v49, %v7893_v12  ;;  %v1095_v28 = vadd.f32 %v7898_v36, %v7897_v38  ;;  %v1061_v57 = vadd.f32 %v1060_v2, %v1030_v34  ;;  %v7902_v29 = vmax.f32 %v7901_v18, 0.0  ;;  %v7909_v2 = vld [vmem:[#allocation31_spill] sm:$0xff] }
 0x15c   : > { %v1032_v27 = vmul.f32 %v1000_v52, %v7900_v21  ;;  %v7903_v14 = vsel %vm4123_vm9, %v4061_v0, %v4206_v35  ;;  %v7905_v46 = vmax.f32 %v7904_v54, 0.0  ;;  %v7907_v49 = vsel %vm4127_vm10, %v4089_v42, %v7906_v31  ;;  %v2941_v52 = vld [vmem:[%s3528_s29 + $0x38] sm:$0xff]  ;;  %v2933_v42 = vpop.eup %2932  ;;  %v7917_v31 = vld [vmem:[#allocation126_spill] sm:$0xff] }
 0x15d   : > { %v4608_v15 = vadd.f32 %v7903_v14, %v7902_v29  ;;  %v1003_v34 = vsub.f32 %v4561_v50, %v2941_v52  ;;  %v7908_v18 = vmax.f32 %v7881_v16, 0.0  ;;  %v7910_v12 = vmax.f32 %v7909_v2, 0.0  ;;  %v7911_v29 = vld [vmem:[#allocation58_spill] sm:$0xff]  ;;  %v7913_v21 = vld [vmem:[#allocation80_spill] sm:$0xff] }
 0x15e   : > { %v4617_v59 = vadd.f32 %v7907_v49, %v7905_v46  ;;  %v1062_v35 = vadd.f32 %v1061_v57, %v1031_v40  ;;  %v1130_v38 = vmul.f32 %v4423_v44, %v7911_v29  ;;  %v1131_v36 = vmul.f32 %v4432_v33, %v7912_v23  ;;  %v7916_v46 = vld [vmem:[#allocation117_spill] sm:$0xff] }
 0x15f   : > { %v1096_v8 = vadd.f32 %v1095_v28, %v7908_v18  ;;  %v1033_v0 = vmul.f32 %v1001_v4, %v7910_v12  ;;  %v7914_v14 = vmax.f32 %v7913_v21, 0.0  ;;  %v7918_v16 = vsel %vm4131_vm11, %v7916_v46, %v7917_v31  ;;  %v7919_v49 = vld [vmem:[#allocation85_spill] sm:$0xff]  ;;  %v7924_v21 = vld [vmem:[#allocation86_spill] sm:$0xff]  ;;  %v7928_v46 = vld [vmem:[#allocation32_spill] sm:$0xff] }
 0x160   : > { %v7920_v52 = vmax.f32 %v7919_v49, 0.0  ;;  %v7921_v4 = vld [vmem:[#allocation129_spill] sm:$0xff]  ;;  %v7923_v18 = vmax.f32 %v7890_v24, 0.0  ;;  %v7925_v54 = vmax.f32 %v7924_v21, 0.0  ;;  %vm7926_vm7 = vnez %v7774_v39  ;;  %v7930_v49 = vld [vmem:[#allocation60_spill] sm:$0xff] }
 0x161   : > { %v4636_v28 = vadd.f32 %v7918_v16, %v7914_v14  ;;  %v7922_v44 = vsel %vm4159_vm12, %v4113_v41, %v7921_v4  ;;  %v2942_v33 = vld [vmem:[%s3528_s29 + $0x40] sm:$0xff]  ;;  %v7927_v14 = vsel %vm7926_vm7, %v4120_v30, %v4231_v60  ;;  %v7929_v41 = vmax.f32 %v7928_v46, 0.0  ;;  %v7931_v4 = vld [vmem:[#allocation87_spill] sm:$0xff] }
 0x162   : > { %v4645_v40 = vadd.f32 %v7922_v44, %v7920_v52  ;;  %v1004_v57 = vsub.f32 %v4589_v19, %v2942_v33  ;;  %v1097_v12 = vadd.f32 %v1096_v8, %v7923_v18  ;;  %v4658_v26 = vadd.f32 %v7927_v14, %v7925_v54  ;;  %v2943_v44 = vld [vmem:[%s3528_s29 + $0x48] sm:$0xff]  ;;  %v7935_v60 = vld [vmem:[#allocation33_spill] sm:$0xff]  ;;  %v7941_v14 = vld [vmem:[#allocation124_spill] sm:$0xff] }
 0x163   : > { %v1034_v31 = vmul.f32 %v1002_v7, %v7929_v41  ;;  %v1063_v16 = vadd.f32 %v1062_v35, %v1032_v27  ;;  %v1132_v52 = vmul.f32 %v4455_v25, %v7930_v49  ;;  %v7932_v24 = vmax.f32 %v7931_v4, 0.0  ;;  %v7938_v35 = vld [vmem:[#allocation61_spill] sm:$0xff]  ;;  %v7943_v41 = vld [vmem:[#allocation122_spill] sm:$0xff]  ;;  %v7944_v4 = vld [vmem:[#allocation131_spill] sm:$0xff] }
 0x164   : > { %vm7933_vm9 = vnez %v7778_v10  ;;  %v1005_v30 = vsub.f32 %v4608_v15, %v2943_v44  ;;  %v7936_v33 = vmax.f32 %v7935_v60, 0.0  ;;  %v7937_v27 = vmax.f32 %v7899_v61, 0.0  ;;  %v2944_v61 = vld [vmem:[%s3528_s29 + $0x50] sm:$0xff] }
 0x165   : > { %v7934_v8 = vsel %vm7933_vm9, %v4136_v55, %v4247_v63  ;;  %v1064_v25 = vadd.f32 %v1063_v16, %v1033_v0  ;;  %v1133_v21 = vmul.f32 %v4478_v5, %v7938_v35  ;;  %v1162_v10 = vadd.f32 %v1131_v36, %v1130_v38  ;;  %v7939_v63 = vld [vmem:[#allocation88_spill] sm:$0xff]  ;;  %v7946_v0 = vld [vmem:[#allocation34_spill] sm:$0xff] }
 0x166   : > { %v4671_v39 = vadd.f32 %v7934_v8, %v7932_v24  ;;  %v1035_v18 = vmul.f32 %v1003_v34, %v7936_v33  ;;  %v1098_v7 = vadd.f32 %v1097_v12, %v7937_v27  ;;  %v1197_v55 = vadd.f32 %v7912_v23, %v7911_v29  ;;  %v7949_v23 = vld [vmem:[#allocation62_spill] sm:$0xff] }
 0x167   : > { %v7940_v54 = vmax.f32 %v7939_v63, 0.0  ;;  %vm7942_vm10 = vnez %v7941_v14  ;;  %v1006_v12 = vsub.f32 %v4617_v59, %v2944_v61  ;;  %v7947_v16 = vmax.f32 %v7946_v0, 0.0  ;;  %v2945_v63 = vld [vmem:[%s3528_s29 + $0x58] sm:$0xff] }
 0x168   : > { %v7945_v24 = vsel %vm7942_vm10, %v7943_v41, %v7944_v4  ;;  %v7948_v5 = vmax.f32 %v7909_v2, 0.0  ;;  %v1065_v29 = vadd.f32 %v1064_v25, %v1034_v31  ;;  %v1134_v36 = vmul.f32 %v4501_v1, %v7949_v23  ;;  %v7953_v1 = vld [vmem:[#allocation63_spill] sm:$0xff]  ;;  %v2946_v41 = vld [vmem:[%s3528_s29 + $0x60] sm:$0xff] }
 0x169   : > { %v4690_v34 = vadd.f32 %v7945_v24, %v7940_v54  ;;  %v1036_v8 = vmul.f32 %v1004_v57, %v7947_v16  ;;  %v1163_v44 = vadd.f32 %v1162_v10, %v1132_v52  ;;  %v1198_v33 = vadd.f32 %v1197_v55, %v7930_v49  ;;  %v7950_v57 = vld [vmem:[#allocation35_spill] sm:$0xff]  ;;  %v7954_v24 = vld [vmem:[#allocation36_spill] sm:$0xff] }
 0x16a   : > { %v1099_v38 = vadd.f32 %v1098_v7, %v7948_v5  ;;  %v953_v27 = vsel %vm4567_vm4, %v4551_v53, %v4595_v6  ;;  %v1007_v54 = vsub.f32 %v4636_v28, %v2945_v63  ;;  %v7951_v14 = vmax.f32 %v7950_v57, 0.0  ;;  %v8105_v53 = vld [vmem:[#allocation106_spill] sm:$0xff] }
 0x16b   : > { %v7952_v7 = vmax.f32 %v7928_v46, 0.0  ;;  %v1066_v25 = vadd.f32 %v1065_v29, %v1035_v18  ;;  %v1135_v52 = vmul.f32 %v4516_v3, %v7953_v1  ;;  %v1164_v49 = vadd.f32 %v1163_v44, %v1133_v21  ;;  %v7957_v18 = vld [vmem:[#allocation64_spill] sm:$0xff]  ;;  %v7960_v29 = vld [vmem:[#allocation127_spill] sm:$0xff] }
 0x16c   : > { %v1037_v2 = vmul.f32 %v1005_v30, %v7951_v14  ;;  %v1199_v10 = vadd.f32 %v1198_v33, %v7938_v35  ;;  %v4714_v55 = vmul.f32 0.6931472, %v2933_v42  ;;  %v1008_v4 = vsub.f32 %v4645_v40, %v2946_v41  ;;  %v7958_v35 = vld [vmem:[#allocation91_spill] sm:$0xff]  ;;  %v7962_v44 = vld [vmem:[#allocation128_spill] sm:$0xff] }
 0x16d   : > { %v1100_v31 = vadd.f32 %v1099_v38, %v7952_v7  ;;  %v7955_v61 = vmax.f32 %v7954_v24, 0.0  ;;  %v7956_v30 = vmax.f32 %v7935_v60, 0.0  ;;  %v1067_v5 = vadd.f32 %v1066_v25, %v1036_v8  ;;  %v7963_v33 = vld [vmem:[#allocation132_spill] sm:$0xff]  ;;  %v7965_v7 = vld [vmem:[#allocation37_spill] sm:$0xff] }
 0x16e   : > { %v1136_v38 = vmul.f32 %v4544_v56, %v7957_v18  ;;  %v1165_v3 = vadd.f32 %v1164_v49, %v1134_v36  ;;  %v1200_v21 = vadd.f32 %v1199_v10, %v7949_v23  ;;  %v7959_v42 = vmax.f32 %v7958_v35, 0.0  ;;  %v7971_v10 = vld [vmem:[#allocation65_spill] sm:$0xff]  ;;  %v7972_v35 = vld [vmem:[#allocation92_spill] sm:$0xff] }
 0x16f   : > { %v1038_v16 = vmul.f32 %v1006_v12, %v7955_v61  ;;  %v1101_v46 = vadd.f32 %v1100_v31, %v7956_v30  ;;  %vm7961_vm11 = vnez %v7960_v29  ;;  %v2947_v12 = vld [vmem:[%s3528_s29 + $0x68] sm:$0xff]  ;;  %v7966_v8 = vmax.f32 %v7965_v7, 0.0 }
 0x170   : > { %v7964_v63 = vsel %vm7961_vm11, %v7962_v44, %v7963_v33  ;;  %v1009_v60 = vsub.f32 %v4658_v26, %v2947_v12  ;;  %v7967_v56 = vmax.f32 %v7946_v0, 0.0  ;;  %v7968_v23 = vand.u32 2147483647, %v7858_v20  ;;  %v7976_v0 = vld [vmem:[#allocation133_spill] sm:$0xff]  ;;  %v2948_v44 = vld [vmem:[%s3528_s29 + $0x70] sm:$0xff] }
 0x171   : > { %v4732_v14 = vadd.f32 %v7964_v63, %v7959_v42  ;;  %v1039_v31 = vmul.f32 %v1007_v54, %v7966_v8  ;;  %v1068_v49 = vadd.f32 %v1067_v5, %v1037_v2  ;;  %v1137_v41 = vmul.f32 %v4561_v50, %v7971_v10  ;;  %v7974_v54 = vld [vmem:[#allocation130_spill] sm:$0xff] }
 0x172   : > { %v1102_v36 = vadd.f32 %v1101_v46, %v7967_v56  ;;  %vm4742_vm12 = vcmp.lt.f32.partialorder %v7968_v23, 0.0004427343  ;;  %v1166_v61 = vadd.f32 %v1165_v3, %v1135_v52  ;;  %v1201_v30 = vadd.f32 %v1200_v21, %v7953_v1  ;;  %v7977_v46 = vld [vmem:[#allocation134_spill] sm:$0xff]  ;;  %v7983_v56 = vld [vmem:[#allocation93_spill] sm:$0xff] }
 0x173   : > { %v7973_v42 = vmax.f32 %v7972_v35, 0.0  ;;  %vm7975_vm3 = vnez %v7974_v54  ;;  %v1010_v33 = vsub.f32 %v4671_v39, %v2948_v44  ;;  %v7979_v63 = vld [vmem:[#allocation38_spill] sm:$0xff]  ;;  %v7981_v50 = vmax.f32 %v7950_v57, 0.0  ;;  %v7985_v35 = vld [vmem:[#allocation135_spill] sm:$0xff]  ;;  %v7988_v54 = vld [vmem:[#allocation136_spill] sm:$0xff] }
 0x174   : > { %v7978_v29 = vsel %vm7975_vm3, %v7976_v0, %v7977_v46  ;;  %v7980_v2 = vmax.f32 %v7979_v63, 0.0  ;;  %v1069_v1 = vadd.f32 %v1068_v49, %v1038_v16  ;;  %v7982_v3 = vld [vmem:[#allocation66_spill] sm:$0xff]  ;;  %v1167_v12 = vadd.f32 %v1166_v61, %v1136_v38  ;;  %v7993_v61 = vld [vmem:[#allocation67_spill] sm:$0xff] }
 0x175   : > { %v4756_v20 = vadd.f32 %v7978_v29, %v7973_v42  ;;  %v1103_v52 = vadd.f32 %v1102_v36, %v7981_v50  ;;  %v1138_v21 = vmul.f32 %v4589_v19, %v7982_v3  ;;  %v1202_v8 = vadd.f32 %v1201_v30, %v7957_v18  ;;  %v7987_v42 = vld [vmem:[#allocation137_spill] sm:$0xff]  ;;  %v7990_v36 = vld [vmem:[#allocation39_spill] sm:$0xff] }
 0x176   : > { %v1040_v5 = vmul.f32 %v1008_v4, %v7980_v2  ;;  %v7984_v23 = vmax.f32 %v7983_v56, 0.0  ;;  %vm7986_vm6 = vnez %v7985_v35  ;;  %v2949_v4 = vld [vmem:[%s3528_s29 + $0x78] sm:$0xff]  ;;  %v7991_v16 = vmax.f32 %v7990_v36, 0.0  ;;  %v7994_v2 = vld [vmem:[#allocation94_spill] sm:$0xff] }
 0x177   : > { %v7989_v0 = vsel %vm7986_vm6, %v7987_v42, %v7988_v54  ;;  %v1011_v57 = vsub.f32 %v4690_v34, %v2949_v4  ;;  %v7992_v19 = vmax.f32 %v7954_v24, 0.0  ;;  %v1070_v18 = vadd.f32 %v1069_v1, %v1039_v31  ;;  %v7996_v56 = vld [vmem:[#allocation138_spill] sm:$0xff]  ;;  %v7999_v35 = vld [vmem:[#allocation140_spill] sm:$0xff] }
 0x178   : > { %v4774_v46 = vadd.f32 %v7989_v0, %v7984_v23  ;;  %v1041_v49 = vmul.f32 %v1009_v60, %v7991_v16  ;;  %v1139_v30 = vmul.f32 %v4608_v15, %v7993_v61  ;;  %v1168_v29 = vadd.f32 %v1167_v12, %v1137_v41  ;;  %v7998_v23 = vld [vmem:[#allocation139_spill] sm:$0xff]  ;;  %v2950_v60 = vld [vmem:[%s3528_s29 + $0x80] sm:$0xff]  ;;  %v8004_v12 = vld [vmem:[#allocation68_spill] sm:$0xff] }
 0x179   : > { %v1104_v38 = vadd.f32 %v1103_v52, %v7992_v19  ;;  %v1203_v44 = vadd.f32 %v1202_v8, %v7971_v10  ;;  %v7995_v50 = vmax.f32 %v7994_v2, 0.0  ;;  %vm7997_vm7 = vnez %v7996_v56  ;;  %v8001_v52 = vld [vmem:[#allocation40_spill] sm:$0xff]  ;;  %v8005_v16 = vld [vmem:[#allocation95_spill] sm:$0xff]  ;;  %v8007_v2 = vld [vmem:[#allocation141_spill] sm:$0xff] }
 0x17a   : > { %v8000_v42 = vsel %vm7997_vm7, %v7998_v23, %v7999_v35  ;;  %v1012_v24 = vsub.f32 %v4732_v14, %v2950_v60  ;;  %v8002_v31 = vmax.f32 %v8001_v52, 0.0  ;;  %v8003_v15 = vmax.f32 %v7965_v7, 0.0  ;;  %v8010_v56 = vld [vmem:[#allocation143_spill] sm:$0xff] }
 0x17b   : > { %v4792_v54 = vadd.f32 %v8000_v42, %v7995_v50  ;;  %v1071_v10 = vadd.f32 %v1070_v18, %v1040_v5  ;;  %v1140_v8 = vmul.f32 %v4617_v59, %v8004_v12  ;;  %v1169_v0 = vadd.f32 %v1168_v29, %v1138_v21  ;;  %v8009_v50 = vld [vmem:[#allocation142_spill] sm:$0xff]  ;;  %v8015_v29 = vld [vmem:[#allocation69_spill] sm:$0xff] }
 0x17c   : > { %v1042_v1 = vmul.f32 %v1010_v33, %v8002_v31  ;;  %v1105_v41 = vadd.f32 %v1104_v38, %v8003_v15  ;;  %v1204_v4 = vadd.f32 %v1203_v44, %v7982_v3  ;;  %v8006_v19 = vmax.f32 %v8005_v16, 0.0  ;;  %v2951_v33 = vld [vmem:[%s3528_s29 + $0x88] sm:$0xff]  ;;  %v8012_v38 = vld [vmem:[#allocation41_spill] sm:$0xff]  ;;  %v8016_v31 = vld [vmem:[#allocation96_spill] sm:$0xff] }
 0x17d   : > { %vm8008_vm9 = vnez %v8007_v2  ;;  %v1013_v7 = vsub.f32 %v4756_v20, %v2951_v33  ;;  %v8013_v5 = vmax.f32 %v8012_v38, 0.0  ;;  %v8014_v59 = vmax.f32 %v7979_v63, 0.0  ;;  %v8019_v16 = vld [vmem:[#allocation144_spill] sm:$0xff] }
 0x17e   : > { %v8011_v23 = vsel %vm8008_vm9, %v8009_v50, %v8010_v56  ;;  %v1072_v3 = vadd.f32 %v1071_v10, %v1041_v49  ;;  %v1141_v44 = vmul.f32 %v4636_v28, %v8015_v29  ;;  %v1170_v42 = vadd.f32 %v1169_v0, %v1139_v30  ;;  %v8025_v0 = vld [vmem:[#allocation70_spill] sm:$0xff]  ;;  %v2953_v33 = vld [vmem:[%s3528_s29 + $0x98] sm:$0xff] }
 0x17f   : > { %v4810_v35 = vadd.f32 %v8011_v23, %v8006_v19  ;;  %v1043_v18 = vmul.f32 %v1011_v57, %v8013_v5  ;;  %v1106_v21 = vadd.f32 %v1105_v41, %v8014_v59  ;;  %v1205_v60 = vadd.f32 %v1204_v4, %v7993_v61  ;;  %v8020_v19 = vld [vmem:[#allocation145_spill] sm:$0xff]  ;;  %v2952_v57 = vld [vmem:[%s3528_s29 + $0x90] sm:$0xff]  ;;  %v8022_v41 = vld [vmem:[#allocation42_spill] sm:$0xff] }
 0x180   : > { %v8017_v15 = vmax.f32 %v8016_v31, 0.0  ;;  %vm8018_vm10 = vnez %v7813_v9  ;;  %v1014_v63 = vsub.f32 %v4774_v46, %v2952_v57  ;;  %v8023_v49 = vmax.f32 %v8022_v41, 0.0  ;;  %v8035_v57 = vld [vmem:[#allocation44_spill] sm:$0xff] }
 0x181   : > { %v8021_v2 = vsel %vm8018_vm10, %v8019_v16, %v8020_v19  ;;  %v8024_v28 = vmax.f32 %v7990_v36, 0.0  ;;  %v1073_v61 = vadd.f32 %v1072_v3, %v1042_v1  ;;  %v1142_v4 = vmul.f32 %v4645_v40, %v8025_v0  ;;  %v8029_v40 = vld [vmem:[#allocation71_spill] sm:$0xff] }
 0x182   : > { %v4828_v50 = vadd.f32 %v8021_v2, %v8017_v15  ;;  %v1044_v10 = vmul.f32 %v1012_v24, %v8023_v49  ;;  %v1171_v9 = vadd.f32 %v1170_v42, %v1140_v8  ;;  %v1206_v56 = vadd.f32 %v1205_v60, %v8004_v12  ;;  %v8026_v24 = vld [vmem:[#allocation43_spill] sm:$0xff]  ;;  %v8030_v60 = vld [vmem:[#allocation97_spill] sm:$0xff] }
 0x183   : > { %v1107_v30 = vadd.f32 %v1106_v21, %v8024_v28  ;;  %v962_v23 = vsel %vm4742_vm12, %v4580_v47, %v4714_v55  ;;  %v1015_v5 = vsub.f32 %v4792_v54, %v2953_v33  ;;  %v8027_v59 = vmax.f32 %v8026_v24, 0.0  ;;  %v8033_v16 = vld [vmem:[#allocation107_spill] sm:$0xff]  ;;  %v8038_v28 = vld [vmem:[#allocation72_spill] sm:$0xff]  ;;  %v8041_v33 = vld [vmem:[#allocation109_spill] sm:$0xff] }
 0x184   : > { %v8028_v21 = vmax.f32 %v8001_v52, 0.0  ;;  %v1074_v3 = vadd.f32 %v1073_v61, %v1043_v18  ;;  %v1143_v8 = vmul.f32 %v4658_v26, %v8029_v40  ;;  %v1172_v12 = vadd.f32 %v1171_v9, %v1141_v44 }
 0x185   : > { %v1045_v36 = vmul.f32 %v1013_v7, %v8027_v59  ;;  %v1207_v42 = vadd.f32 %v1206_v56, %v8015_v29  ;;  %v8031_v31 = vmax.f32 %v8030_v60, 0.0  ;;  %v8034_v19 = vsel %vm4343_vm8, %v4355_v37, %v8033_v16  ;;  %v2954_v7 = vld [vmem:[%s3528_s29 + $0xa0] sm:$0xff]  ;;  %v8039_v37 = vld [vmem:[#allocation98_spill] sm:$0xff]  ;;  %v8050_v16 = vld [vmem:[#allocation147_spill] sm:$0xff] }
 0x186   : > { %v1108_v1 = vadd.f32 %v1107_v30, %v8028_v21  ;;  %v1016_v52 = vsub.f32 %v4810_v35, %v2954_v7  ;;  %v8036_v18 = vmax.f32 %v8035_v57, 0.0  ;;  %v8037_v26 = vmax.f32 %v8012_v38, 0.0 }
 0x187   : > { %v4859_v2 = vadd.f32 %v8034_v19, %v8031_v31  ;;  %v1075_v29 = vadd.f32 %v1074_v3, %v1044_v10  ;;  %v1144_v30 = vmul.f32 %v4671_v39, %v8038_v28  ;;  %v1173_v61 = vadd.f32 %v1172_v12, %v1142_v4  ;;  %v8046_v12 = vld [vmem:[#allocation73_spill] sm:$0xff]  ;;  %v8051_v19 = vld [vmem:[#allocation110_spill] sm:$0xff] }
 0x188   : > { %v1046_v49 = vmul.f32 %v1014_v63, %v8036_v18  ;;  %v1109_v44 = vadd.f32 %v1108_v1, %v8037_v26  ;;  %v1208_v9 = vadd.f32 %v1207_v42, %v8025_v0  ;;  %v8040_v56 = vmax.f32 %v8039_v37, 0.0  ;;  %v2955_v63 = vld [vmem:[%s3528_s29 + $0xa8] sm:$0xff]  ;;  %v8043_v1 = vld [vmem:[#allocation45_spill] sm:$0xff] }
 0x189   : > { %v8042_v59 = vsel %vm4357_vm14, %v4375_v51, %v8041_v33  ;;  %v1017_v38 = vsub.f32 %v4828_v50, %v2955_v63  ;;  %v8044_v10 = vmax.f32 %v8043_v1, 0.0  ;;  %v8045_v39 = vmax.f32 %v8022_v41, 0.0  ;;  %v8047_v51 = vld [vmem:[#allocation99_spill] sm:$0xff]  ;;  %v8053_v26 = vld [vmem:[#allocation46_spill] sm:$0xff] }
 0x18a   : > { %v4877_v21 = vadd.f32 %v8042_v59, %v8040_v56  ;;  %v1076_v0 = vadd.f32 %v1075_v29, %v1045_v36  ;;  %v1145_v42 = vmul.f32 %v4690_v34, %v8046_v12  ;;  %v1174_v11 = vadd.f32 %v1173_v61, %v1143_v8  ;;  %v8056_v29 = vld [vmem:[#allocation74_spill] sm:$0xff]  ;;  %v8057_v56 = vld [vmem:[#allocation100_spill] sm:$0xff]  ;;  %v8078_v59 = vld [vmem:[#allocation49_spill] sm:$0xff] }
 0x18b   : > { %v1047_v3 = vmul.f32 %v1015_v5, %v8044_v10  ;;  %v1110_v4 = vadd.f32 %v1109_v44, %v8045_v39  ;;  %v1209_v60 = vadd.f32 %v1208_v9, %v8029_v40  ;;  %v8048_v31 = vmax.f32 %v8047_v51, 0.0  ;;  %v2956_v5 = vld [vmem:[%s3528_s29 + $0xb0] sm:$0xff]  ;;  %v8060_v63 = vld [vmem:[#allocation150_spill] sm:$0xff]  ;;  %v8061_v10 = vld [vmem:[#allocation149_spill] sm:$0xff] }
 0x18c   : > { %v8052_v7 = vsel %vm4379_vm5, %v8050_v16, %v8051_v19  ;;  %v1018_v41 = vsub.f32 %v4859_v2, %v2956_v5  ;;  %v8054_v36 = vmax.f32 %v8053_v26, 0.0  ;;  %v8055_v34 = vmax.f32 %v8026_v24, 0.0  ;;  %v8067_v16 = vld [vmem:[#allocation101_spill] sm:$0xff] }
 0x18d   : > { %v4895_v18 = vadd.f32 %v8052_v7, %v8048_v31  ;;  %v1077_v40 = vadd.f32 %v1076_v0, %v1046_v49  ;;  %v1146_v61 = vmul.f32 %v4732_v14, %v8056_v29  ;;  %v1175_v9 = vadd.f32 %v1174_v11, %v1144_v30  ;;  %v8066_v11 = vld [vmem:[#allocation75_spill] sm:$0xff] }
 0x18e   : > { %v1048_v44 = vmul.f32 %v1016_v52, %v8054_v36  ;;  %v1111_v8 = vadd.f32 %v1110_v4, %v8055_v34  ;;  %v1210_v37 = vadd.f32 %v1209_v60, %v8038_v28  ;;  %v8058_v33 = vmax.f32 %v8057_v56, 0.0  ;;  %v2957_v52 = vld [vmem:[%s3528_s29 + $0xb8] sm:$0xff]  ;;  %v8063_v4 = vld [vmem:[#allocation47_spill] sm:$0xff] }
 0x18f   : > { %v8062_v39 = vsel %vm4389_vm13, %v8060_v63, %v8061_v10  ;;  %v1019_v24 = vsub.f32 %v4877_v21, %v2957_v52  ;;  %v8064_v49 = vmax.f32 %v8063_v4, 0.0  ;;  %v8065_v14 = vmax.f32 %v8035_v57, 0.0  ;;  %v8070_v36 = vld [vmem:[#allocation48_spill] sm:$0xff]  ;;  %v8081_v10 = vld [vmem:[#allocation77_spill] sm:$0xff] }
 0x190   : > { %v4913_v51 = vadd.f32 %v8062_v39, %v8058_v33  ;;  %v1078_v28 = vadd.f32 %v1077_v40, %v1047_v3  ;;  %v1147_v60 = vmul.f32 %v4756_v20, %v8066_v11  ;;  %v1176_v31 = vadd.f32 %v1175_v9, %v1145_v42 }
 0x191   : > { %v1049_v0 = vmul.f32 %v1017_v38, %v8064_v49  ;;  %v1112_v30 = vadd.f32 %v1111_v8, %v8065_v14  ;;  %v1211_v15 = vadd.f32 %v1210_v37, %v8046_v12  ;;  %v8068_v19 = vmax.f32 %v8067_v16, 0.0  ;;  %v2958_v38 = vld [vmem:[%s3528_s29 + $0xc0] sm:$0xff]  ;;  %v8073_v8 = vld [vmem:[#allocation76_spill] sm:$0xff] }
 0x192   : > { %v8069_v7 = vsel %vm4401_vm15, %v4435_v45, %v4469_v32  ;;  %v1020_v57 = vsub.f32 %v4895_v18, %v2958_v38  ;;  %v8071_v3 = vmax.f32 %v8070_v36, 0.0  ;;  %v8072_v20 = vmax.f32 %v8043_v1, 0.0  ;;  %v8074_v45 = vld [vmem:[#allocation102_spill] sm:$0xff]  ;;  %v8092_v38 = vld [vmem:[#allocation113_spill] sm:$0xff] }
 0x193   : > { %v4931_v5 = vadd.f32 %v8069_v7, %v8068_v19  ;;  %v1079_v12 = vadd.f32 %v1078_v28, %v1048_v44  ;;  %v1148_v40 = vmul.f32 %v4774_v46, %v8073_v8  ;;  %v1177_v13 = vadd.f32 %v1176_v31, %v1146_v61  ;;  %v8085_v28 = vld [vmem:[#allocation50_spill] sm:$0xff] }
 0x194   : > { %v1050_v34 = vmul.f32 %v1018_v41, %v8071_v3  ;;  %v1113_v42 = vadd.f32 %v1112_v30, %v8072_v20  ;;  %v1212_v9 = vadd.f32 %v1211_v15, %v8056_v29  ;;  %v8075_v32 = vmax.f32 %v8074_v45, 0.0  ;;  %v2959_v41 = vld [vmem:[%s3528_s29 + $0xc8] sm:$0xff]  ;;  %v8088_v15 = vld [vmem:[#allocation81_spill] sm:$0xff] }
 0x195   : > { %v8077_v56 = vsel %vm4443_vm0, %v4462_v22, %v4488_v17  ;;  %v1021_v1 = vsub.f32 %v4913_v51, %v2959_v41  ;;  %v8079_v44 = vmax.f32 %v8078_v59, 0.0  ;;  %v8080_v46 = vmax.f32 %v8053_v26, 0.0  ;;  %v8082_v17 = vld [vmem:[#allocation103_spill] sm:$0xff]  ;;  %v8093_v3 = vld [vmem:[#allocation18_spill] sm:$0xff] }
 0x196   : > { %v4949_v33 = vadd.f32 %v8077_v56, %v8075_v32  ;;  %v1080_v29 = vadd.f32 %v1079_v12, %v1049_v0  ;;  %v1149_v39 = vmul.f32 %v4792_v54, %v8081_v10  ;;  %v1178_v52 = vadd.f32 %v1177_v13, %v1147_v60  ;;  %v8095_v12 = vld [vmem:[#allocation51_spill] sm:$0xff]  ;;  %v8099_v56 = vld [vmem:[#allocation105_spill] sm:$0xff] }
 0x197   : > { %v1051_v63 = vmul.f32 %v1019_v24, %v8079_v44  ;;  %v1114_v61 = vadd.f32 %v1113_v42, %v8080_v46  ;;  %v1213_v49 = vadd.f32 %v1212_v9, %v8066_v11  ;;  %v8083_v22 = vmax.f32 %v8082_v17, 0.0  ;;  %v2960_v24 = vld [vmem:[%s3528_s29 + $0xd0] sm:$0xff]  ;;  %v8098_v9 = vld [vmem:[#allocation82_spill] sm:$0xff]  ;;  %v8101_v46 = vld [vmem:[#allocation52_spill] sm:$0xff] }
 0x198   : > { %v8084_v14 = vsel %vm4464_vm1, %v4485_v58, %v4505_v43  ;;  %v1022_v26 = vsub.f32 %v4931_v5, %v2960_v24  ;;  %v8086_v0 = vmax.f32 %v8085_v28, 0.0  ;;  %v8087_v54 = vmax.f32 %v8063_v4, 0.0  ;;  %v8089_v58 = vld [vmem:[#allocation104_spill] sm:$0xff]  ;;  %v2963_v17 = vld [vmem:[%s3528_s29 + $0xe8] sm:$0xff] }
 0x199   : > { %v4967_v30 = vadd.f32 %v8084_v14, %v8083_v22  ;;  %v1081_v11 = vadd.f32 %v1080_v29, %v1050_v34  ;;  %v1150_v16 = vmul.f32 %v4810_v35, %v8088_v15  ;;  %v1179_v48 = vadd.f32 %v1178_v52, %v1148_v40  ;;  %v8107_v22 = vld [vmem:[#allocation53_spill] sm:$0xff] }
 0x19a   : > { %v1052_v31 = vmul.f32 %v1020_v57, %v8086_v0  ;;  %v1115_v60 = vadd.f32 %v1114_v61, %v8087_v54  ;;  %v1214_v19 = vadd.f32 %v1213_v49, %v8073_v8  ;;  %v8090_v43 = vmax.f32 %v8089_v58, 0.0  ;;  %v2961_v57 = vld [vmem:[%s3528_s29 + $0xd8] sm:$0xff] }
 0x19b   : > { %v8094_v20 = vsel %vm4490_vm2, %v8092_v38, %v8093_v3  ;;  %v1023_v4 = vsub.f32 %v4949_v33, %v2961_v57  ;;  %v8096_v34 = vmax.f32 %v8095_v12, 0.0  ;;  %v8097_v35 = vmax.f32 %v8070_v36, 0.0  ;;  %v2965_v57 = vld [vmem:[%s3528_s29 + $0xf8] sm:$0xff] }
 0x19c   : > { %v4985_v42 = vadd.f32 %v8094_v20, %v8090_v43  ;;  %v1082_v8 = vadd.f32 %v1081_v11, %v1051_v63  ;;  %v1151_v45 = vmul.f32 %v4828_v50, %v8098_v9  ;;  %v1180_v32 = vadd.f32 %v1179_v48, %v1149_v39  ;;  %v8104_v39 = vld [vmem:[#allocation83_spill] sm:$0xff]  ;;  %v8115_v43 = vld [vmem:[#allocation89_spill] sm:$0xff] }
 0x19d   : > { %v1053_v13 = vmul.f32 %v1021_v1, %v8096_v34  ;;  %v1116_v40 = vadd.f32 %v1115_v60, %v8097_v35  ;;  %v1215_v37 = vadd.f32 %v1214_v19, %v8081_v10  ;;  %v8100_v41 = vmax.f32 %v8099_v56, 0.0  ;;  %v2962_v1 = vld [vmem:[%s3528_s29 + $0xe0] sm:$0xff] }
 0x19e   : > { %v1024_v36 = vsub.f32 %v4967_v30, %v2962_v1  ;;  %v8102_v63 = vmax.f32 %v8101_v46, 0.0  ;;  %v8103_v50 = vmax.f32 %v8078_v59, 0.0  ;;  %v1083_v10 = vadd.f32 %v1082_v8, %v1052_v31  ;;  %v8110_v31 = vld [vmem:[#allocation84_spill] sm:$0xff] }
 0x19f   : > { %v5003_v44 = vadd.f32 %v953_v27, %v8100_v41  ;;  %v1152_v52 = vmul.f32 %v4859_v2, %v8104_v39  ;;  %v1181_v62 = vadd.f32 %v1180_v32, %v1150_v16  ;;  %v1216_v49 = vadd.f32 %v1215_v37, %v8088_v15  ;;  %v8112_v15 = vld [vmem:[#allocation54_spill] sm:$0xff]  ;;  %v8121_v37 = vld [vmem:[#allocation56_spill] sm:$0xff] }
 0x1a0   : > { %v1054_v61 = vmul.f32 %v1022_v26, %v8102_v63  ;;  %v1117_v29 = vadd.f32 %v1116_v40, %v8103_v50  ;;  %v8106_v6 = vmax.f32 %v8105_v53, 0.0  ;;  %v1025_v59 = vsub.f32 %v4985_v42, %v2963_v17 }
 0x1a1   : > { %v8108_v14 = vmax.f32 %v8107_v22, 0.0  ;;  %v8109_v2 = vmov %v8086_v0  ;;  %v1084_v0 = vadd.f32 %v1083_v10, %v1053_v13  ;;  %v1153_v54 = vmul.f32 %v4877_v21, %v8110_v31 }
 0x1a2   : > { %v5021_v27 = vadd.f32 %v962_v23, %v8106_v6  ;;  %v1118_v26 = vadd.f32 %v1117_v29, %v8109_v2  ;;  %v1182_v25 = vadd.f32 %v1181_v62, %v1151_v45  ;;  %v1217_v60 = vadd.f32 %v1216_v49, %v8098_v9  ;;  %v2964_v23 = vld [vmem:[%s3528_s29 + $0xf0] sm:$0xff]  ;;  %v8120_v9 = vld [vmem:[#allocation90_spill] sm:$0xff] }
 0x1a3   : > { %v1055_v24 = vmul.f32 %v1023_v4, %v8108_v14  ;;  %v8111_v47 = vand.u32 2147483647, %v8101_v46  ;;  %v1026_v11 = vsub.f32 %v5003_v44, %v2964_v23  ;;  %v8113_v16 = vmax.f32 %v8112_v15, 0.0  ;;  %v995_v23 = vld [vmem:[#allocation2 + $0x10] sm:$0xff] }
 0x1a4   : > { %v8114_v28 = vmov %v8096_v34  ;;  %v1085_v58 = vadd.f32 %v1084_v0, %v1054_v61  ;;  %v1154_v7 = vmul.f32 %v4895_v18, %v8115_v43  ;;  %v1183_v21 = vadd.f32 %v1182_v25, %v1152_v52  ;;  %v8117_v34 = vld [vmem:[#allocation55_spill] sm:$0xff] }
 0x1a5   : > { %v509_v55 = vsub.f32 1.0, %v8111_v47  ;;  %v1056_v48 = vmul.f32 %v1024_v36, %v8113_v16  ;;  %v1119_v19 = vadd.f32 %v1118_v26, %v8114_v28  ;;  %v1218_v38 = vadd.f32 %v1217_v60, %v8104_v39  ;;  %v8125_v39 = vld [vmem:[#allocation57_spill] sm:$0xff] }
 0x1a6   : > { %v8116_v3 = vand.u32 2147483647, %v8107_v22  ;;  %v1027_v4 = vsub.f32 %v5021_v27, %v2965_v57  ;;  %v8118_v13 = vmax.f32 %v8117_v34, 0.0  ;;  %v8119_v40 = vmov %v8102_v63 }
 0x1a7   : > { %v1120_v12 = vadd.f32 %v1119_v19, %v8119_v40  ;;  %v1086_v8 = vadd.f32 %v1085_v58, %v1055_v24  ;;  %v1155_v45 = vmul.f32 %v4913_v51, %v8120_v9  ;;  %v1184_v18 = vadd.f32 %v1183_v21, %v1153_v54 }
 0x1a8   : > { %v510_v20 = vsub.f32 1.0, %v8116_v3  ;;  %v1057_v35 = vmul.f32 %v1025_v59, %v8118_v13  ;;  %v1219_v32 = vadd.f32 %v1218_v38, %v8110_v31  ;;  %v481_v56 = vand.u32 2147483647, %v8121_v37 }
 0x1a9   : > { %v8122_v41 = vand.u32 2147483647, %v8112_v15  ;;  %v8123_v36 = vmax.f32 %v8121_v37, 0.0  ;;  %v8124_v61 = vmov %v8108_v14  ;;  %v1087_v46 = vadd.f32 %v1086_v8, %v1056_v48  ;;  %v1094_v48 = vld [vmem:[#allocation2] sm:$0xff] }
 0x1aa   : > { %v1121_v50 = vadd.f32 %v1120_v12, %v8124_v61  ;;  %v1156_v29 = vmul.f32 %v4931_v5, %v509_v55  ;;  %v1185_v10 = vadd.f32 %v1184_v18, %v1154_v7  ;;  %v1220_v51 = vadd.f32 %v1219_v32, %v8115_v43 }
 0x1ab   : > { %v511_v1 = vsub.f32 1.0, %v8122_v41  ;;  %v1058_v63 = vmul.f32 %v1026_v11, %v8123_v36  ;;  %v482_v52 = vand.u32 2147483647, %v8125_v39  ;;  %v8126_v62 = vand.u32 2147483647, %v8117_v34 }
 0x1ac   : > { %v8127_v53 = vmax.f32 %v8125_v39, 0.0  ;;  %v8128_v17 = vmov %v8113_v16  ;;  %v1088_v14 = vadd.f32 %v1087_v46, %v1057_v35  ;;  %v1157_v22 = vmul.f32 %v4949_v33, %v510_v20  ;;  %v1196_v35 = vld [vmem:[#allocation2 + $0x8] sm:$0xff] }
 0x1ad   : > { %v512_v49 = vsub.f32 1.0, %v8126_v62  ;;  %v1122_v59 = vadd.f32 %v1121_v50, %v8128_v17  ;;  %v1186_v24 = vadd.f32 %v1185_v10, %v1155_v45  ;;  %v1221_v5 = vadd.f32 %v1220_v51, %v8120_v9 }
 0x1ae   : > { %v1059_v6 = vmul.f32 %v1027_v4, %v8127_v53  ;;  %v513_v2 = vsub.f32 1.0, %v481_v56  ;;  %v8129_v26 = vmov %v8118_v13  ;;  %v1089_v31 = vadd.f32 %v1088_v14, %v1058_v63 }
 0x1af   : > { %v1123_v0 = vadd.f32 %v1122_v59, %v8129_v26  ;;  %v1158_v54 = vmul.f32 %v4967_v30, %v511_v1  ;;  %v1187_v25 = vadd.f32 %v1186_v24, %v1156_v29  ;;  %v1222_v60 = vadd.f32 %v1221_v5, %v509_v55 }
 0x1b0   : > { %v514_v47 = vsub.f32 1.0, %v482_v52  ;;  %v8130_v11 = vmov %v8123_v36  ;;  %v1090_v16 = vadd.f32 %v1089_v31, %v1059_v6  ;;  %v1159_v33 = vmul.f32 %v4985_v42, %v512_v49  ;;  %v1129_v42 = vld [vmem:[#allocation2 + $0x18] sm:$0xff] }
 0x1b1   : > { %v1124_v15 = vadd.f32 %v1123_v0, %v8130_v11  ;;  %v1188_v28 = vadd.f32 %v1187_v25, %v1157_v22  ;;  %v1223_v19 = vadd.f32 %v1222_v60, %v510_v20  ;;  %v8131_v58 = vmov %v8127_v53 }
 0x1b2   : > { %v1091_v7 = vadd.f32 %v1090_v16, %v995_v23  ;;  %v1160_v21 = vmul.f32 %v5003_v44, %v513_v2  ;;  %v1161_v3 = vmul.f32 %v5021_v27, %v514_v47 }
 0x1b3   : > { %v1125_v43 = vadd.f32 %v1124_v15, %v8131_v58  ;;  %v1189_v30 = vadd.f32 %v1188_v28, %v1158_v54  ;;  %v1224_v38 = vadd.f32 %v1223_v19, %v511_v1 }
 0x1b4   : > { %1092 = vst [vmem:[#allocation2 + $0x10] sm:$0xff] %v1091_v7 }
 0x1b5   : > { %v1126_v55 = vadd.f32 %v1125_v43, %v1094_v48  ;;  %v1190_v57 = vadd.f32 %v1189_v30, %v1159_v33  ;;  %v1225_v4 = vadd.f32 %v1224_v38, %v512_v49 }
 0x1b7   : > { %1127 = vst [vmem:[#allocation2] sm:$0xff] %v1126_v55  ;;  %v1191_v34 = vadd.f32 %v1190_v57, %v1160_v21  ;;  %v1226_v13 = vadd.f32 %v1225_v4, %v513_v2 }
 0x1b9   : > { %v1192_v20 = vadd.f32 %v1191_v34, %v1161_v3  ;;  %v1227_v40 = vadd.f32 %v1226_v13, %v514_v47 }
 0x1bb   : > { %v1193_v12 = vadd.f32 %v1192_v20, %v1129_v42  ;;  %v1228_v8 = vadd.f32 %v1227_v40, %v1196_v35 }
 0x1bd   : > { %1194 = vst [vmem:[#allocation2 + $0x18] sm:$0xff] %v1193_v12 }
 0x1be   : > { %1229 = vst [vmem:[#allocation2 + $0x8] sm:$0xff] %v1228_v8 }
 0x1bf PF: > { %p2534_p13 = scmp.le.s32.totalorder %s3553_s26, 700 }
 0x1c1   : > { %1232 = sbr.rel (%p2534_p13) target bundleno = 814 (0x32e), region = 48 }
 0x1c6   : > { %v1457_v44 = vlaneseq  ;;  %v5088_v45 = vstv %s2532_s7  ;;  %v2609_v36 = vld [vmem:[%s3534_s27] sm:$0xff]   ;;  %v2688_v29 = vld [vmem:[%s3534_s27 + $0x8] sm:$0xff]   ;;  %v2690_v62 = vld [vmem:[%s3534_s27 + $0x10] sm:$0xff]  }
 0x1c7   : > { %v2610_v59 = vunpack.c.0.s8 %v2609_v36  ;;  %v2611_v14 = vunpack.c.1.s8 %v2609_v36  ;;  %v2692_v22 = vld [vmem:[%s3534_s27 + $0x18] sm:$0xff]   ;;  %v2614_v2 = vunpack.c.2.s8 %v2609_v36  ;;  %v2615_v26 = vunpack.c.3.s8 %v2609_v36  ;;  %v2694_v54 = vld [vmem:[%s3534_s27 + $0x20] sm:$0xff]   ;;  %v2696_v11 = vld [vmem:[%s3534_s27 + $0x28] sm:$0xff]  }
 0x1c8   : > { %v5083_v27 = vshrl.u32 %v1457_v44, 7  ;;  %v2618_v0 = vunpack.c.0.s8 %v2688_v29  ;;  %v2619_v31 = vunpack.c.1.s8 %v2688_v29  ;;  %v2622_v25 = vunpack.c.2.s8 %v2688_v29  ;;  %v2698_v28 = vld [vmem:[%s3534_s27 + $0x30] sm:$0xff]   ;;  %v2700_v21 = vld [vmem:[%s3534_s27 + $0x38] sm:$0xff]  }
 0x1c9   : > { %v2623_v60 = vunpack.c.3.s8 %v2688_v29  ;;  %v2626_v47 = vunpack.c.0.s8 %v2690_v62  ;;  %v2627_v23 = vunpack.c.1.s8 %v2690_v62  ;;  %v2630_v15 = vunpack.c.2.s8 %v2690_v62 }
 0x1ca   : > { %v1459_v9 = vadd.s32 8, %v5083_v27  ;;  %v1460_v18 = vadd.s32 16, %v5083_v27  ;;  %v1461_v32 = vadd.s32 24, %v5083_v27  ;;  %v1462_v37 = vadd.s32 32, %v5083_v27 }
 0x1cb   : > { %v1463_v56 = vadd.s32 40, %v5083_v27  ;;  %v5095_v41 = vadd.s32 48, %v5083_v27  ;;  %v5099_v1 = vadd.s32 %v5088_v45, %v5083_v27  ;;  %v5103_v63 = vadd.s32 56, %v5083_v27 }
 0x1cc   : > { %v5106_v61 = vadd.s32 64, %v5083_v27  ;;  %v5109_v50 = vadd.s32 72, %v5083_v27  ;;  %v5112_v46 = vadd.s32 %v5088_v45, %v1459_v9  ;;  %v5116_v10 = vadd.s32 80, %v5083_v27 }
 0x1cd   : > { %v5119_v51 = vadd.s32 88, %v5083_v27  ;;  %v5122_v39 = vadd.s32 96, %v5083_v27  ;;  %v5125_v52 = vadd.s32 %v5088_v45, %v1460_v18  ;;  %v5129_v49 = vadd.s32 104, %v5083_v27 }
 0x1ce   : > { %v5132_v53 = vadd.s32 112, %v5083_v27  ;;  %v5135_v6 = vadd.s32 %v5088_v45, %v1461_v32  ;;  %v5138_v17 = vadd.s32 %v5088_v45, %v1462_v37  ;;  %v5142_v24 = vadd.s32 120, %v5083_v27 }
 0x1cf   : > { %v5145_v5 = vadd.s32 %v5088_v45, %v1463_v56  ;;  %v2631_v16 = vunpack.c.3.s8 %v2690_v62  ;;  %v2634_v48 = vunpack.c.0.s8 %v2692_v22  ;;  %v2635_v33 = vunpack.c.1.s8 %v2692_v22 }
 0x1d0   : > { %v2638_v19 = vunpack.c.2.s8 %v2692_v22  ;;  %v2639_v58 = vunpack.c.3.s8 %v2692_v22  ;;  %v2642_v43 = vunpack.c.0.s8 %v2694_v54  ;;  %v2643_v7 = vunpack.c.1.s8 %v2694_v54 }
 0x1d1   : > { %v2646_v30 = vunpack.c.2.s8 %v2694_v54  ;;  %v2647_v38 = vunpack.c.3.s8 %v2694_v54  ;;  %v2650_v55 = vunpack.c.0.s8 %v2696_v11  ;;  %v2651_v3 = vunpack.c.1.s8 %v2696_v11 }
 0x1d2   : > { %v2654_v57 = vunpack.c.2.s8 %v2696_v11  ;;  %v2655_v4 = vunpack.c.3.s8 %v2696_v11  ;;  %v2658_v34 = vunpack.c.0.s8 %v2698_v28  ;;  %v2659_v13 = vunpack.c.1.s8 %v2698_v28 }
 0x1d3   : > { %v2662_v42 = vunpack.c.2.s8 %v2698_v28  ;;  %v2663_v35 = vunpack.c.3.s8 %v2698_v28  ;;  %v2666_v20 = vunpack.c.0.s8 %v2700_v21  ;;  %v2667_v40 = vunpack.c.1.s8 %v2700_v21 }
 0x1d4   : > { %v2670_v12 = vunpack.c.2.s8 %v2700_v21  ;;  %v2671_v8 = vunpack.c.3.s8 %v2700_v21  ;;  %v5151_v44 = vcvt.s32.f32 %v2610_v59  ;;  %v5153_v9 = vcvt.s32.f32 %v2611_v14 }
 0x1d5   : > { %v5155_v18 = vcvt.s32.f32 %v2614_v2  ;;  %v5157_v32 = vcvt.s32.f32 %v2615_v26  ;;  %v5159_v37 = vcvt.s32.f32 %v2618_v0  ;;  %v5161_v56 = vcvt.s32.f32 %v2619_v31 }
 0x1d6   : > { %v5163_v36 = vcvt.s32.f32 %v2622_v25  ;;  %v5165_v29 = vcvt.s32.f32 %v2623_v60  ;;  %v5167_v62 = vcvt.s32.f32 %v2626_v47  ;;  %v5169_v22 = vcvt.s32.f32 %v2627_v23 }
 0x1d7   : > { %8132 = vst [vmem:[#allocation151_spill] sm:$0xff] %v5157_v32  ;;  %v5171_v59 = vcvt.s32.f32 %v2630_v15  ;;  %v5173_v14 = vcvt.s32.f32 %v2631_v16  ;;  %v5175_v2 = vcvt.s32.f32 %v2634_v48  ;;  %v5177_v26 = vcvt.s32.f32 %v2635_v33 }
 0x1d8   : > { %8133 = vst [vmem:[#allocation152_spill] sm:$0xff] %v5159_v37  ;;  %v5179_v0 = vcvt.s32.f32 %v2638_v19  ;;  %v5181_v31 = vcvt.s32.f32 %v2639_v58  ;;  %v5183_v54 = vcvt.s32.f32 %v2642_v43  ;;  %v5185_v25 = vcvt.s32.f32 %v2643_v7 }
 0x1d9   : > { %8134 = vst [vmem:[#allocation153_spill] sm:$0xff] %v5161_v56  ;;  %v5187_v60 = vcvt.s32.f32 %v2646_v30  ;;  %v5189_v47 = vcvt.s32.f32 %v2647_v38  ;;  %v5191_v23 = vcvt.s32.f32 %v2650_v55  ;;  %v5193_v11 = vcvt.s32.f32 %v2651_v3 }
 0x1da   : > { %8135 = vst [vmem:[#allocation154_spill] sm:$0xff] %v5163_v36  ;;  %v5195_v15 = vcvt.s32.f32 %v2654_v57  ;;  %v5197_v16 = vcvt.s32.f32 %v2655_v4  ;;  %v5199_v48 = vcvt.s32.f32 %v2658_v34  ;;  %v5201_v33 = vcvt.s32.f32 %v2659_v13 }
 0x1db   : > { %8136 = vst [vmem:[#allocation155_spill] sm:$0xff] %v5165_v29  ;;  %v5203_v28 = vcvt.s32.f32 %v2662_v42  ;;  %v5205_v19 = vcvt.s32.f32 %v2663_v35  ;;  %v5207_v58 = vcvt.s32.f32 %v2666_v20  ;;  %v5209_v43 = vcvt.s32.f32 %v2667_v40 }
 0x1dc   : > { %8137 = vst [vmem:[#allocation156_spill] sm:$0xff] %v5167_v62  ;;  %v5211_v7 = vcvt.s32.f32 %v2670_v12  ;;  %v5213_v21 = vcvt.s32.f32 %v2671_v8  ;;  %v1393_v12 = vand.u32 2147483647, %v5151_v44  ;;  %v1394_v8 = vand.u32 2147483647, %v5153_v9 }
 0x1dd   : > { %8138 = vst [vmem:[#allocation157_spill] sm:$0xff] %v5169_v22  ;;  %v1395_v57 = vand.u32 2147483647, %v5155_v18  ;;  %v1396_v4 = vand.u32 2147483647, %v5157_v32  ;;  %v5254_v13 = vadd.s32 %v5088_v45, %v5095_v41  ;;  %v5261_v42 = vadd.s32 %v5088_v45, %v5103_v63  ;;  %v1258_v32 = vld [vmem:[%s3528_s29 + $0xc8] sm:$0xff] }
 0x1de   : > { %8139 = vst [vmem:[#allocation158_spill] sm:$0xff] %v5171_v59  ;;  %v1397_v34 = vand.u32 2147483647, %v5159_v37  ;;  %v1398_v35 = vand.u32 2147483647, %v5161_v56  ;;  %v5268_v41 = vadd.s32 %v5088_v45, %v5106_v61  ;;  %v5275_v63 = vadd.s32 %v5088_v45, %v5109_v50 }
 0x1df   : > { %8140 = vst [vmem:[#allocation159_spill] sm:$0xff] %v5173_v14  ;;  %v1399_v20 = vand.u32 2147483647, %v5163_v36  ;;  %v1400_v40 = vand.u32 2147483647, %v5165_v29  ;;  %v5282_v61 = vadd.s32 %v5088_v45, %v5116_v10  ;;  %v5289_v50 = vadd.s32 %v5088_v45, %v5119_v51 }
 0x1e0   : > { %8141 = vst [vmem:[#allocation160_spill] sm:$0xff] %v5175_v2  ;;  %v1401_v3 = vand.u32 2147483647, %v5167_v62  ;;  %v1402_v55 = vand.u32 2147483647, %v5169_v22  ;;  %v5296_v10 = vadd.s32 %v5088_v45, %v5122_v39  ;;  %v5303_v51 = vadd.s32 %v5088_v45, %v5129_v49 }
 0x1e1   : > { %8142 = vst [vmem:[#allocation161_spill] sm:$0xff] %v5177_v26  ;;  %v1403_v38 = vand.u32 2147483647, %v5171_v59  ;;  %v1404_v30 = vand.u32 2147483647, %v5173_v14  ;;  %v5310_v39 = vadd.s32 %v5088_v45, %v5132_v53  ;;  %v5317_v49 = vadd.s32 %v5088_v45, %v5142_v24 }
 0x1e2   : > { %8143 = vst [vmem:[#allocation162_spill] sm:$0xff] %v5179_v0  ;;  %v1405_v36 = vand.u32 2147483647, %v5175_v2  ;;  %v1406_v29 = vand.u32 2147483647, %v5177_v26  ;;  %v5319_v56 = vsub.f32 1.0, %v1393_v12 }
 0x1e3   : > { %8144 = vst [vmem:[#allocation163_spill] sm:$0xff] %v5181_v31  ;;  %v1407_v62 = vand.u32 2147483647, %v5179_v0  ;;  %v1408_v22 = vand.u32 2147483647, %v5181_v31  ;;  %v5327_v53 = vsub.f32 1.0, %v1397_v34 }
 0x1e4   : > { %8145 = vst [vmem:[#allocation164_spill] sm:$0xff] %v5183_v54  ;;  %v1409_v59 = vand.u32 2147483647, %v5183_v54  ;;  %v1410_v14 = vand.u32 2147483647, %v5185_v25  ;;  %v5329_v37 = vsub.f32 1.0, %v1398_v35 }
 0x1e5   : > { %8146 = vst [vmem:[#allocation165_spill] sm:$0xff] %v5185_v25  ;;  %v1411_v2 = vand.u32 2147483647, %v5187_v60  ;;  %v1412_v26 = vand.u32 2147483647, %v5189_v47  ;;  %v5337_v24 = vsub.f32 1.0, %v1402_v55 }
 0x1e6   : > { %8147 = vst [vmem:[#allocation166_spill] sm:$0xff] %v5187_v60  ;;  %v1413_v0 = vand.u32 2147483647, %v5191_v23  ;;  %v1414_v31 = vand.u32 2147483647, %v5193_v11  ;;  %v5339_v12 = vsub.f32 1.0, %v1403_v38 }
 0x1e7   : > { %8148 = vst [vmem:[#allocation167_spill] sm:$0xff] %v5189_v47  ;;  %v1415_v54 = vand.u32 2147483647, %v5195_v15  ;;  %v1416_v25 = vand.u32 2147483647, %v5197_v16  ;;  %v5347_v34 = vsub.f32 1.0, %v1407_v62 }
 0x1e8   : > { %8149 = vst [vmem:[#allocation168_spill] sm:$0xff] %v5191_v23  ;;  %v1417_v60 = vand.u32 2147483647, %v5199_v48  ;;  %v1418_v47 = vand.u32 2147483647, %v5201_v33  ;;  %v5349_v35 = vsub.f32 1.0, %v1408_v22 }
 0x1e9   : > { %8150 = vst [vmem:[#allocation169_spill] sm:$0xff] %v5193_v11  ;;  %v1419_v23 = vand.u32 2147483647, %v5203_v28  ;;  %v1420_v11 = vand.u32 2147483647, %v5205_v19  ;;  %v5357_v55 = vsub.f32 1.0, %v1412_v26 }
 0x1ea   : > { %8151 = vst [vmem:[#allocation170_spill] sm:$0xff] %v5195_v15  ;;  %v1421_v15 = vand.u32 2147483647, %v5207_v58  ;;  %v5359_v38 = vsub.f32 1.0, %v1413_v0  ;;  %v5367_v62 = vsub.f32 1.0, %v1417_v60  ;;  %v5369_v22 = vsub.f32 1.0, %v1418_v47 }
 0x1eb   : > { %8152 = vst [vmem:[#allocation171_spill] sm:$0xff] %v5197_v16  ;;  %v5331_v16 = vsub.f32 1.0, %v1399_v20  ;;  %v5351_v20 = vsub.f32 1.0, %v1409_v59  ;;  %v5371_v59 = vsub.f32 1.0, %v1419_v23  ;;  %v1474_v26 = vadd.s32 128, %v5083_v27 }
 0x1ec   : > { %8153 = vst [vmem:[#allocation172_spill] sm:$0xff] %v5199_v48  ;;  %v5333_v48 = vsub.f32 1.0, %v1400_v40  ;;  %v5353_v40 = vsub.f32 1.0, %v1410_v14  ;;  %v5373_v14 = vsub.f32 1.0, %v1420_v11  ;;  %v1475_v0 = vadd.s32 136, %v5083_v27 }
 0x1ed   : > { %8154 = vst [vmem:[#allocation173_spill] sm:$0xff] %v5201_v33  ;;  %v5335_v33 = vsub.f32 1.0, %v1401_v3  ;;  %v5355_v3 = vsub.f32 1.0, %v1411_v2  ;;  %v5375_v2 = vsub.f32 1.0, %v1421_v15  ;;  %v1479_v60 = vadd.s32 168, %v5083_v27 }
 0x1ee   : > { %8155 = vst [vmem:[#allocation174_spill] sm:$0xff] %v5203_v28  ;;  %v5321_v28 = vsub.f32 1.0, %v1394_v8  ;;  %v5341_v8 = vsub.f32 1.0, %v1404_v30  ;;  %v5361_v30 = vsub.f32 1.0, %v1414_v31  ;;  %v1476_v31 = vadd.s32 144, %v5083_v27 }
 0x1ef   : > { %8156 = vst [vmem:[#allocation175_spill] sm:$0xff] %v5205_v19  ;;  %v5323_v19 = vsub.f32 1.0, %v1395_v57  ;;  %v5343_v57 = vsub.f32 1.0, %v1405_v36  ;;  %v5363_v36 = vsub.f32 1.0, %v1415_v54  ;;  %v1477_v54 = vadd.s32 152, %v5083_v27 }
 0x1f0   : > { %8157 = vst [vmem:[#allocation176_spill] sm:$0xff] %v5207_v58  ;;  %v5325_v58 = vsub.f32 1.0, %v1396_v4  ;;  %v5345_v4 = vsub.f32 1.0, %v1406_v29  ;;  %v5365_v29 = vsub.f32 1.0, %v1416_v25  ;;  %v1478_v25 = vadd.s32 160, %v5083_v27 }
 0x1f1   : > { %8158 = vst [vmem:[#allocation177_spill] sm:$0xff] %v5209_v43  ;;  %v1480_v47 = vadd.s32 176, %v5083_v27  ;;  %v1481_v23 = vadd.s32 184, %v5083_v27  ;;  %v1482_v11 = vadd.s32 192, %v5083_v27  ;;  %v1483_v15 = vadd.s32 200, %v5083_v27 }
 0x1f2   : > { %8159 = vst [vmem:[#allocation178_spill] sm:$0xff] %v5211_v7  ;;  %vm1524_vm5 = vcmp.lt.s32.totalorder %v5099_v1, 700  ;;  %vm1525_vm8 = vcmp.lt.s32.totalorder %v5112_v46, 700  ;;  %vm1526_vm13 = vcmp.lt.s32.totalorder %v5125_v52, 700  ;;  %vm7421_vm14 = vcmp.lt.s32.totalorder %v5135_v6, 700 }
 0x1f3   : > { %8160 = vst [vmem:[#allocation179_spill] sm:$0xff] %v5213_v21  ;;  %vm7411_vm15 = vcmp.lt.s32.totalorder %v5138_v17, 700  ;;  %vm7412_vm0 = vcmp.lt.s32.totalorder %v5145_v5, 700  ;;  %vm7414_vm1 = vcmp.lt.s32.totalorder %v5254_v13, 700  ;;  %vm7415_vm2 = vcmp.lt.s32.totalorder %v5261_v42, 700 }
 0x1f4   : > { %8161 = vst [vmem:[#allocation180_spill] sm:$0xff] %v5319_v56  ;;  %vm7417_vm4 = vcmp.lt.s32.totalorder %v5268_v41, 700  ;;  %v1256_v56 = vld [vmem:[%s3528_s29 + $0xb8] sm:$0xff] }
 0x1f5   : > { %8162 = vst [vmem:[#allocation181_spill] sm:$0xff] %v5321_v28  ;;  %v1255_v28 = vld [vmem:[%s3528_s29 + $0xb0] sm:$0xff] }
 0x1f6   : > { %8163 = vst [vmem:[#allocation182_spill] sm:$0xff] %v5323_v19  ;;  %v1254_v19 = vld [vmem:[%s3528_s29 + $0xa8] sm:$0xff] }
 0x1f7   : > { %8164 = vst [vmem:[#allocation183_spill] sm:$0xff] %v5325_v58 }
 0x1f8   : > { %8165 = vst [vmem:[#allocation184_spill] sm:$0xff] %v5327_v53  ;;  %v1253_v53 = vld [vmem:[%s3528_s29 + $0xa0] sm:$0xff] }
 0x1f9   : > { %8166 = vst [vmem:[#allocation185_spill] sm:$0xff] %v5329_v37  ;;  %v1252_v37 = vld [vmem:[%s3528_s29 + $0x98] sm:$0xff] }
 0x1fa   : > { %8167 = vst [vmem:[#allocation186_spill] sm:$0xff] %v5331_v16  ;;  %v1251_v16 = vld [vmem:[%s3528_s29 + $0x90] sm:$0xff] }
 0x1fb   : > { %8168 = vst [vmem:[#allocation187_spill] sm:$0xff] %v5333_v48  ;;  %v1250_v48 = vld [vmem:[%s3528_s29 + $0x88] sm:$0xff] }
 0x1fc   : > { %8169 = vst [vmem:[#allocation188_spill] sm:$0xff] %v5335_v33  ;;  %v1249_v33 = vld [vmem:[%s3528_s29 + $0x80] sm:$0xff] }
 0x1fd   : > { %8170 = vst [vmem:[#allocation189_spill] sm:$0xff] %v5337_v24  ;;  %v1248_v24 = vld [vmem:[%s3528_s29 + $0x78] sm:$0xff] }
 0x1fe   : > { %8171 = vst [vmem:[#allocation190_spill] sm:$0xff] %v5339_v12  ;;  %v1247_v12 = vld [vmem:[%s3528_s29 + $0x70] sm:$0xff] }
 0x1ff   : > { %8172 = vst [vmem:[#allocation191_spill] sm:$0xff] %v5341_v8  ;;  %v1246_v8 = vld [vmem:[%s3528_s29 + $0x68] sm:$0xff] }
 0x200   : > { %8173 = vst [vmem:[#allocation192_spill] sm:$0xff] %v5343_v57  ;;  %v1245_v57 = vld [vmem:[%s3528_s29 + $0x60] sm:$0xff] }
 0x201   : > { %8174 = vst [vmem:[#allocation193_spill] sm:$0xff] %v5345_v4  ;;  %v1244_v4 = vld [vmem:[%s3528_s29 + $0x58] sm:$0xff] }
 0x202   : > { %8175 = vst [vmem:[#allocation194_spill] sm:$0xff] %v5347_v34  ;;  %v1243_v34 = vld [vmem:[%s3528_s29 + $0x50] sm:$0xff] }
 0x203   : > { %8176 = vst [vmem:[#allocation195_spill] sm:$0xff] %v5349_v35  ;;  %v1242_v35 = vld [vmem:[%s3528_s29 + $0x48] sm:$0xff] }
 0x204   : > { %8177 = vst [vmem:[#allocation196_spill] sm:$0xff] %v5351_v20  ;;  %v1241_v20 = vld [vmem:[%s3528_s29 + $0x40] sm:$0xff] }
 0x205   : > { %8178 = vst [vmem:[#allocation197_spill] sm:$0xff] %v5353_v40  ;;  %v5410_v40 = vadd.s32 %v5088_v45, %v1479_v60 }
 0x206   : > { %8179 = vst [vmem:[#allocation198_spill] sm:$0xff] %v5355_v3  ;;  %v5407_v3 = vadd.s32 %v5088_v45, %v1478_v25 }
 0x207   : > { %8180 = vst [vmem:[#allocation199_spill] sm:$0xff] %v5357_v55  ;;  %v5404_v55 = vadd.s32 %v5088_v45, %v1477_v54 }
 0x208   : > { %8181 = vst [vmem:[#allocation200_spill] sm:$0xff] %v5359_v38  ;;  %v5400_v38 = vadd.s32 %v5088_v45, %v1476_v31  ;;  %v5423_v31 = vadd.s32 %v5088_v45, %v1483_v15  ;;  %v1240_v15 = vld [vmem:[%s3528_s29 + $0x38] sm:$0xff] }
 0x209   : > { %8182 = vst [vmem:[#allocation201_spill] sm:$0xff] %v5361_v30  ;;  %v5397_v30 = vadd.s32 %v5088_v45, %v1475_v0  ;;  %v5420_v0 = vadd.s32 %v5088_v45, %v1482_v11 }
 0x20a   : > { %8183 = vst [vmem:[#allocation202_spill] sm:$0xff] %v5363_v36  ;;  %v5394_v36 = vadd.s32 %v5088_v45, %v1474_v26  ;;  %v5417_v26 = vadd.s32 %v5088_v45, %v1481_v23  ;;  %vm7555_vm9 = vcmp.lt.s32.totalorder %v5423_v31, 700 }
 0x20b   : > { %8184 = vst [vmem:[#allocation203_spill] sm:$0xff] %v5365_v29  ;;  %v1489_v29 = vadd.s32 248, %v5083_v27 }
 0x20c   : > { %8185 = vst [vmem:[#allocation204_spill] sm:$0xff] %v5367_v62  ;;  %v1488_v62 = vadd.s32 240, %v5083_v27 }
 0x20d   : > { %8186 = vst [vmem:[#allocation205_spill] sm:$0xff] %v5369_v22  ;;  %v1487_v22 = vadd.s32 232, %v5083_v27  ;;  %v5441_v11 = vadd.s32 %v5088_v45, %v1489_v29  ;;  %v1234_v29 = vld [vmem:[%s3528_s29 + $0x8] sm:$0xff] }
 0x20e   : > { %8187 = vst [vmem:[#allocation206_spill] sm:$0xff] %v5371_v59  ;;  %v1486_v59 = vadd.s32 224, %v5083_v27  ;;  %v5438_v23 = vadd.s32 %v5088_v45, %v1488_v62  ;;  %v1235_v62 = vld [vmem:[%s3528_s29 + $0x10] sm:$0xff]  ;;  %v5503_v21 = vsel %vm1525_vm8, %v1234_v29, 0.0 }
 0x20f   : > { %8188 = vst [vmem:[#allocation207_spill] sm:$0xff] %v5373_v14  ;;  %v1485_v14 = vadd.s32 216, %v5083_v27  ;;  %vm7546_vm10 = vcmp.lt.s32.totalorder %v5441_v11, 700  ;;  %v5507_v7 = vsel %vm1526_vm13, %v1235_v62, 0.0 }
 0x210   : > { %8189 = vst [vmem:[#allocation208_spill] sm:$0xff] %v5375_v2  ;;  %v1484_v2 = vadd.s32 208, %v5083_v27  ;;  %v5413_v27 = vadd.s32 %v5088_v45, %v1480_v47  ;;  %v5432_v60 = vadd.s32 %v5088_v45, %v1486_v59  ;;  %v5435_v47 = vadd.s32 %v5088_v45, %v1487_v22  ;;  %v1236_v22 = vld [vmem:[%s3528_s29 + $0x18] sm:$0xff]  ;;  %v1237_v59 = vld [vmem:[%s3528_s29 + $0x20] sm:$0xff] }
 0x211   : > { %8190 = vst [vmem:[#allocation209_spill] sm:$0xff] %v5423_v31  ;;  %v5429_v25 = vadd.s32 %v5088_v45, %v1485_v14  ;;  %v1238_v14 = vld [vmem:[%s3528_s29 + $0x28] sm:$0xff]  ;;  %vm7548_vm6 = vcmp.lt.s32.totalorder %v5438_v23, 700  ;;  %v5511_v43 = vsel %vm7421_vm14, %v1236_v22, 0.0  ;;  %v5529_v22 = vsel %vm7415_vm2, %v1240_v15, 0.0 }
 0x212   : > { %v5426_v54 = vadd.s32 %v5088_v45, %v1484_v2  ;;  %8193 = vst [vmem:[#allocation212_spill] sm:$0xff] %v5432_v60  ;;  %v1233_v45 = vld [vmem:[%s3528_s29] sm:$0xff]  ;;  %v1239_v2 = vld [vmem:[%s3528_s29 + $0x30] sm:$0xff]  ;;  %vm7552_vm12 = vcmp.lt.s32.totalorder %v5432_v60, 700  ;;  %vm7549_vm3 = vcmp.lt.s32.totalorder %v5435_v47, 700  ;;  %v5521_v29 = vsel %vm7412_vm0, %v1238_v14, 0.0 }
 0x213   : > { %8192 = vst [vmem:[#allocation211_spill] sm:$0xff] %v5429_v25  ;;  %vm7553_vm11 = vcmp.lt.s32.totalorder %v5429_v25, 700  ;;  %v5496_v58 = vsel %vm1524_vm5, %v1233_v45, 0.0  ;;  %v5515_v45 = vsel %vm7411_vm15, %v1237_v59, 0.0  ;;  %v5525_v62 = vsel %vm7414_vm1, %v1239_v2, 0.0 }
 0x214   : > { %8191 = vst [vmem:[#allocation210_spill] sm:$0xff] %v5426_v54  ;;  %vm7554_vm7 = vcmp.lt.s32.totalorder %v5426_v54, 700  ;;  %v5533_v59 = vsel %vm7417_vm4, %v1241_v20, 0.0  ;;  %vm8206_vm15 = vcmp.lt.s32.totalorder %v5275_v63, 700  ;;  %vm8208_vm0 = vcmp.lt.s32.totalorder %v5282_v61, 700  ;;  %v1261_v20 = vld [vmem:[%s3528_s29 + $0xe0] sm:$0xff] }
 0x215   : > { %8194 = vst [vmem:[#allocation213_spill] sm:$0xff] %v5435_v47  ;;  %v5539_v14 = vsel %vm8206_vm15, %v1242_v35, 0.0  ;;  %vm8210_vm1 = vcmp.lt.s32.totalorder %v5289_v50, 700  ;;  %vm8212_vm2 = vcmp.lt.s32.totalorder %v5296_v10, 700  ;;  %vm8214_vm4 = vcmp.lt.s32.totalorder %v5303_v51, 700  ;;  %v8362_v47 = vld [vmem:[#allocation181_spill] sm:$0xff] }
 0x216   : > { %8195 = vst [vmem:[#allocation214_spill] sm:$0xff] %v5438_v23  ;;  %v5547_v2 = vsel %vm8210_vm1, %v1244_v4, 0.0  ;;  %v5551_v15 = vsel %vm8212_vm2, %v1245_v57, 0.0  ;;  %vm8216_vm15 = vcmp.lt.s32.totalorder %v5310_v39, 700  ;;  %vm8220_vm1 = vcmp.lt.s32.totalorder %v5394_v36, 700  ;;  %v1263_v57 = vld [vmem:[%s3528_s29 + $0xf0] sm:$0xff] }
 0x217   : > { %8196 = vst [vmem:[#allocation215_spill] sm:$0xff] %v5441_v11  ;;  %v5561_v35 = vsel %vm8216_vm15, %v1247_v12, 0.0  ;;  %v5569_v4 = vsel %vm8220_vm1, %v1249_v33, 0.0  ;;  %vm8222_vm2 = vcmp.lt.s32.totalorder %v5397_v30, 700  ;;  %vm8226_vm15 = vcmp.lt.s32.totalorder %v5404_v55, 700  ;;  %v8366_v23 = vld [vmem:[#allocation183_spill] sm:$0xff] }
 0x218   : > { %8197 = vst [vmem:[#allocation216_spill] sm:$0xff] %v5496_v58  ;;  %v1257_v58 = vld [vmem:[%s3528_s29 + $0xc0] sm:$0xff]  ;;  %v5583_v12 = vsel %vm8226_vm15, %v1252_v37, 0.0  ;;  %vm8230_vm1 = vcmp.lt.s32.totalorder %v5410_v40, 700  ;;  %vm8232_vm14 = vcmp.lt.s32.totalorder %v5413_v27, 700  ;;  %vm8257_vm15 = vcmp.lt.s32.totalorder %v5138_v17, 700 }
 0x219   : > { %8198 = vst [vmem:[#allocation217_spill] sm:$0xff] %v5503_v21  ;;  %v5591_v33 = vsel %vm8230_vm1, %v1254_v19, 0.0  ;;  %vm8265_vm1 = vcmp.lt.s32.totalorder %v5254_v13, 700  ;;  %v8369_v11 = vld [vmem:[#allocation184_spill] sm:$0xff] }
 0x21a   : > { %8199 = vst [vmem:[#allocation218_spill] sm:$0xff] %v5507_v7 }
 0x21b   : > { %8200 = vst [vmem:[#allocation219_spill] sm:$0xff] %v5511_v43  ;;  %v1260_v43 = vld [vmem:[%s3528_s29 + $0xd8] sm:$0xff] }
 0x21c   : > { %8201 = vst [vmem:[#allocation220_spill] sm:$0xff] %v5515_v45  ;;  %v1259_v45 = vld [vmem:[%s3528_s29 + $0xd0] sm:$0xff] }
 0x21d   : > { %8202 = vst [vmem:[#allocation221_spill] sm:$0xff] %v5521_v29  ;;  %v5543_v29 = vsel %vm8208_vm0, %v1243_v34, 0.0  ;;  %vm8218_vm0 = vcmp.lt.s32.totalorder %v5317_v49, 700  ;;  %v5611_v19 = vsel %vm7554_vm7, %v1259_v45, 0.0 }
 0x21e   : > { %8203 = vst [vmem:[#allocation222_spill] sm:$0xff] %v5525_v62  ;;  %v5565_v34 = vsel %vm8218_vm0, %v1248_v24, 0.0  ;;  %vm8228_vm0 = vcmp.lt.s32.totalorder %v5407_v3, 700 }
 0x21f   : > { %8204 = vst [vmem:[#allocation223_spill] sm:$0xff] %v5529_v22  ;;  %v5557_v22 = vsel %vm8214_vm4, %v1246_v8, 0.0  ;;  %vm8224_vm4 = vcmp.lt.s32.totalorder %v5400_v38, 700  ;;  %v5587_v24 = vsel %vm8228_vm0, %v1253_v53, 0.0  ;;  %v5607_v53 = vsel %vm7555_vm9, %v1258_v32, 0.0 }
 0x220   : > { %8205 = vst [vmem:[#allocation224_spill] sm:$0xff] %v5533_v59  ;;  %v1262_v59 = vld [vmem:[%s3528_s29 + $0xe8] sm:$0xff]  ;;  %v5579_v8 = vsel %vm8224_vm4, %v1251_v16, 0.0  ;;  %vm8236_vm4 = vcmp.lt.s32.totalorder %v5420_v0, 700  ;;  %v5627_v32 = vsel %vm7548_vm6, %v1263_v57, 0.0  ;;  %vm8261_vm0 = vcmp.lt.s32.totalorder %v5145_v5, 700 }
 0x221   : > { %8207 = vst [vmem:[#allocation225_spill] sm:$0xff] %v5539_v14  ;;  %v5603_v37 = vsel %vm8236_vm4, %v1257_v58, 0.0  ;;  %v5623_v58 = vsel %vm7549_vm3, %v1262_v59, 0.0  ;;  %vm8273_vm4 = vcmp.lt.s32.totalorder %v5268_v41, 700 }
 0x222   : > { %8209 = vst [vmem:[#allocation226_spill] sm:$0xff] %v5543_v29 }
 0x223   : > { %8211 = vst [vmem:[#allocation227_spill] sm:$0xff] %v5547_v2  ;;  %v5575_v2 = vsel %vm8222_vm2, %v1250_v48, 0.0  ;;  %v5595_v48 = vsel %vm8232_vm14, %v1255_v28, 0.0  ;;  %vm8234_vm2 = vcmp.lt.s32.totalorder %v5417_v26, 700  ;;  %v5615_v28 = vsel %vm7553_vm11, %v1260_v43, 0.0 }
 0x224   : > { %8213 = vst [vmem:[#allocation228_spill] sm:$0xff] %v5551_v15  ;;  %v1264_v15 = vld [vmem:[%s3528_s29 + $0xf8] sm:$0xff]  ;;  %v5599_v16 = vsel %vm8234_vm2, %v1256_v56, 0.0  ;;  %v5619_v56 = vsel %vm7552_vm12, %v1261_v20, 0.0  ;;  %v8247_v20 = vmax.f32 %v5153_v9, 0.0  ;;  %vm8253_vm14 = vcmp.lt.s32.totalorder %v5135_v6, 700 }
 0x225   : > { %8215 = vst [vmem:[#allocation229_spill] sm:$0xff] %v5557_v22  ;;  %v5631_v45 = vsel %vm7546_vm10, %v1264_v15, 0.0  ;;  %v8251_v15 = vld [vmem:[#allocation151_spill] sm:$0xff]  ;;  %vm8269_vm2 = vcmp.lt.s32.totalorder %v5261_v42, 700 }
 0x226   : > { %8217 = vst [vmem:[#allocation230_spill] sm:$0xff] %v5561_v35  ;;  %v5643_v59 = vsel %vm1525_vm8, %v8247_v20, 0.0  ;;  %v8259_v20 = vld [vmem:[#allocation153_spill] sm:$0xff] }
 0x227   : > { %8219 = vst [vmem:[#allocation231_spill] sm:$0xff] %v5565_v34 }
 0x228   : > { %8221 = vst [vmem:[#allocation232_spill] sm:$0xff] %v5569_v4 }
 0x229   : > { %8223 = vst [vmem:[#allocation233_spill] sm:$0xff] %v5575_v2 }
 0x22a   : > { %8225 = vst [vmem:[#allocation234_spill] sm:$0xff] %v5579_v8 }
 0x22b   : > { %8227 = vst [vmem:[#allocation235_spill] sm:$0xff] %v5583_v12 }
 0x22c   : > { %8229 = vst [vmem:[#allocation236_spill] sm:$0xff] %v5587_v24 }
 0x22d   : > { %8231 = vst [vmem:[#allocation237_spill] sm:$0xff] %v5591_v33 }
 0x22e   : > { %8233 = vst [vmem:[#allocation238_spill] sm:$0xff] %v5595_v48 }
 0x22f   : > { %8235 = vst [vmem:[#allocation239_spill] sm:$0xff] %v5599_v16 }
 0x230   : > { %8237 = vst [vmem:[#allocation240_spill] sm:$0xff] %v5603_v37 }
 0x231   : > { %8238 = vst [vmem:[#allocation241_spill] sm:$0xff] %v5607_v53 }
 0x232   : > { %8239 = vst [vmem:[#allocation242_spill] sm:$0xff] %v5611_v19  ;;  %v8245_v19 = vmax.f32 %v5151_v44, 0.0 }
 0x233   : > { %8240 = vst [vmem:[#allocation243_spill] sm:$0xff] %v5615_v28 }
 0x234   : > { %8241 = vst [vmem:[#allocation244_spill] sm:$0xff] %v5619_v56  ;;  %v5637_v43 = vsel %vm1524_vm5, %v8245_v19, 0.0  ;;  %v8255_v19 = vld [vmem:[#allocation152_spill] sm:$0xff] }
 0x235   : > { %8242 = vst [vmem:[#allocation245_spill] sm:$0xff] %v5623_v58  ;;  %v8249_v58 = vmax.f32 %v5155_v18, 0.0 }
 0x236   : > { %8243 = vst [vmem:[#allocation246_spill] sm:$0xff] %v5627_v32 }
 0x237   : > { %8244 = vst [vmem:[#allocation247_spill] sm:$0xff] %v5631_v45  ;;  %v5649_v57 = vsel %vm1526_vm13, %v8249_v58, 0.0  ;;  %v8252_v45 = vmax.f32 %v8251_v15, 0.0  ;;  %v8263_v58 = vld [vmem:[#allocation154_spill] sm:$0xff] }
 0x238   : > { %8246 = vst [vmem:[#allocation248_spill] sm:$0xff] %v5637_v43  ;;  %v8256_v43 = vmax.f32 %v8255_v19, 0.0 }
 0x239   : > { %8248 = vst [vmem:[#allocation249_spill] sm:$0xff] %v5643_v59  ;;  %v5655_v44 = vsel %vm8253_vm14, %v8252_v45, 0.0  ;;  %v8260_v59 = vmax.f32 %v8259_v20, 0.0  ;;  %v8267_v45 = vld [vmem:[#allocation155_spill] sm:$0xff]  ;;  %vm8277_vm14 = vcmp.lt.s32.totalorder %v5275_v63, 700 }
 0x23a   : > { %8250 = vst [vmem:[#allocation250_spill] sm:$0xff] %v5649_v57  ;;  %v5661_v9 = vsel %vm8257_vm15, %v8256_v43, 0.0  ;;  %v8264_v57 = vmax.f32 %v8263_v58, 0.0  ;;  %v8271_v43 = vld [vmem:[#allocation156_spill] sm:$0xff]  ;;  %vm8281_vm15 = vcmp.lt.s32.totalorder %v5282_v61, 700 }
 0x23b   : > { %8254 = vst [vmem:[#allocation151_spill] sm:$0xff] %v5655_v44  ;;  %v5667_v18 = vsel %vm8261_vm0, %v8260_v59, 0.0  ;;  %v8268_v44 = vmax.f32 %v8267_v45, 0.0  ;;  %v8275_v59 = vld [vmem:[#allocation157_spill] sm:$0xff]  ;;  %vm8285_vm0 = vcmp.lt.s32.totalorder %v5289_v50, 700 }
 0x23c   : > { %8258 = vst [vmem:[#allocation152_spill] sm:$0xff] %v5661_v9  ;;  %v5673_v15 = vsel %vm8265_vm1, %v8264_v57, 0.0  ;;  %v8272_v9 = vmax.f32 %v8271_v43, 0.0  ;;  %v8279_v57 = vld [vmem:[#allocation158_spill] sm:$0xff]  ;;  %vm8289_vm1 = vcmp.lt.s32.totalorder %v5296_v10, 700 }
 0x23d   : > { %8262 = vst [vmem:[#allocation153_spill] sm:$0xff] %v5667_v18  ;;  %v5679_v19 = vsel %vm8269_vm2, %v8268_v44, 0.0  ;;  %v8276_v18 = vmax.f32 %v8275_v59, 0.0  ;;  %v8283_v44 = vld [vmem:[#allocation159_spill] sm:$0xff]  ;;  %vm8293_vm2 = vcmp.lt.s32.totalorder %v5303_v51, 700 }
 0x23e   : > { %8266 = vst [vmem:[#allocation154_spill] sm:$0xff] %v5673_v15  ;;  %v5685_v20 = vsel %vm8273_vm4, %v8272_v9, 0.0  ;;  %v8280_v15 = vmax.f32 %v8279_v57, 0.0  ;;  %v8287_v9 = vld [vmem:[#allocation160_spill] sm:$0xff]  ;;  %vm8297_vm4 = vcmp.lt.s32.totalorder %v5310_v39, 700 }
 0x23f   : > { %8270 = vst [vmem:[#allocation155_spill] sm:$0xff] %v5679_v19  ;;  %v5691_v58 = vsel %vm8277_vm14, %v8276_v18, 0.0  ;;  %v8284_v19 = vmax.f32 %v8283_v44, 0.0  ;;  %v8291_v18 = vld [vmem:[#allocation161_spill] sm:$0xff]  ;;  %vm8301_vm14 = vcmp.lt.s32.totalorder %v5317_v49, 700 }
 0x240   : > { %8274 = vst [vmem:[#allocation156_spill] sm:$0xff] %v5685_v20  ;;  %v5697_v45 = vsel %vm8281_vm15, %v8280_v15, 0.0  ;;  %v8288_v20 = vmax.f32 %v8287_v9, 0.0  ;;  %v8295_v15 = vld [vmem:[#allocation162_spill] sm:$0xff]  ;;  %vm8305_vm15 = vcmp.lt.s32.totalorder %v5394_v36, 700 }
 0x241   : > { %8278 = vst [vmem:[#allocation157_spill] sm:$0xff] %v5691_v58  ;;  %v5703_v43 = vsel %vm8285_vm0, %v8284_v19, 0.0  ;;  %v8292_v58 = vmax.f32 %v8291_v18, 0.0  ;;  %v8299_v19 = vld [vmem:[#allocation163_spill] sm:$0xff]  ;;  %vm8309_vm0 = vcmp.lt.s32.totalorder %v5397_v30, 700 }
 0x242   : > { %8282 = vst [vmem:[#allocation158_spill] sm:$0xff] %v5697_v45  ;;  %v5709_v59 = vsel %vm8289_vm1, %v8288_v20, 0.0  ;;  %v8296_v45 = vmax.f32 %v8295_v15, 0.0  ;;  %v8303_v20 = vld [vmem:[#allocation164_spill] sm:$0xff]  ;;  %vm8313_vm1 = vcmp.lt.s32.totalorder %v5400_v38, 700 }
 0x243   : > { %8286 = vst [vmem:[#allocation159_spill] sm:$0xff] %v5703_v43  ;;  %v5715_v57 = vsel %vm8293_vm2, %v8292_v58, 0.0  ;;  %v8300_v43 = vmax.f32 %v8299_v19, 0.0  ;;  %v8307_v58 = vld [vmem:[#allocation165_spill] sm:$0xff]  ;;  %vm8317_vm2 = vcmp.lt.s32.totalorder %v5404_v55, 700 }
 0x244   : > { %8290 = vst [vmem:[#allocation160_spill] sm:$0xff] %v5709_v59  ;;  %v5721_v44 = vsel %vm8297_vm4, %v8296_v45, 0.0  ;;  %v8304_v59 = vmax.f32 %v8303_v20, 0.0  ;;  %v8311_v45 = vld [vmem:[#allocation166_spill] sm:$0xff]  ;;  %vm8321_vm4 = vcmp.lt.s32.totalorder %v5407_v3, 700 }
 0x245   : > { %8294 = vst [vmem:[#allocation161_spill] sm:$0xff] %v5715_v57  ;;  %v5727_v9 = vsel %vm8301_vm14, %v8300_v43, 0.0  ;;  %v8308_v57 = vmax.f32 %v8307_v58, 0.0  ;;  %v8315_v43 = vld [vmem:[#allocation167_spill] sm:$0xff]  ;;  %vm8325_vm14 = vcmp.lt.s32.totalorder %v5410_v40, 700 }
 0x246   : > { %8298 = vst [vmem:[#allocation162_spill] sm:$0xff] %v5721_v44  ;;  %v5733_v18 = vsel %vm8305_vm15, %v8304_v59, 0.0  ;;  %v8312_v44 = vmax.f32 %v8311_v45, 0.0  ;;  %v8319_v59 = vld [vmem:[#allocation168_spill] sm:$0xff]  ;;  %vm8329_vm15 = vcmp.lt.s32.totalorder %v5413_v27, 700 }
 0x247   : > { %8302 = vst [vmem:[#allocation163_spill] sm:$0xff] %v5727_v9  ;;  %v5739_v15 = vsel %vm8309_vm0, %v8308_v57, 0.0  ;;  %v8316_v9 = vmax.f32 %v8315_v43, 0.0  ;;  %v8323_v57 = vld [vmem:[#allocation169_spill] sm:$0xff]  ;;  %vm8333_vm0 = vcmp.lt.s32.totalorder %v5417_v26, 700 }
 0x248   : > { %8306 = vst [vmem:[#allocation164_spill] sm:$0xff] %v5733_v18  ;;  %v5745_v19 = vsel %vm8313_vm1, %v8312_v44, 0.0  ;;  %v8320_v18 = vmax.f32 %v8319_v59, 0.0  ;;  %v8327_v44 = vld [vmem:[#allocation170_spill] sm:$0xff]  ;;  %vm8337_vm1 = vcmp.lt.s32.totalorder %v5420_v0, 700 }
 0x249   : > { %8310 = vst [vmem:[#allocation165_spill] sm:$0xff] %v5739_v15  ;;  %v5751_v20 = vsel %vm8317_vm2, %v8316_v9, 0.0  ;;  %v8324_v15 = vmax.f32 %v8323_v57, 0.0  ;;  %v8331_v9 = vld [vmem:[#allocation171_spill] sm:$0xff]  ;;  %vm8367_vm2 = vcmp.lt.s32.totalorder %v5135_v6, 700 }
 0x24a   : > { %8314 = vst [vmem:[#allocation166_spill] sm:$0xff] %v5745_v19  ;;  %v5757_v58 = vsel %vm8321_vm4, %v8320_v18, 0.0  ;;  %v8328_v19 = vmax.f32 %v8327_v44, 0.0  ;;  %v8335_v18 = vld [vmem:[#allocation172_spill] sm:$0xff]  ;;  %vm8370_vm4 = vcmp.lt.s32.totalorder %v5138_v17, 700 }
 0x24b   : > { %8318 = vst [vmem:[#allocation167_spill] sm:$0xff] %v5751_v20  ;;  %v5763_v45 = vsel %vm8325_vm14, %v8324_v15, 0.0  ;;  %v8332_v20 = vmax.f32 %v8331_v9, 0.0  ;;  %v8339_v15 = vld [vmem:[#allocation173_spill] sm:$0xff]  ;;  %v5848_v1 = vsel %vm8370_vm4, %v8369_v11, 0.0  ;;  %vm8382_vm14 = vcmp.lt.s32.totalorder %v5268_v41, 700 }
 0x24c   : > { %8322 = vst [vmem:[#allocation168_spill] sm:$0xff] %v5757_v58  ;;  %v5769_v43 = vsel %vm8329_vm15, %v8328_v19, 0.0  ;;  %v8336_v58 = vmax.f32 %v8335_v18, 0.0  ;;  %v8342_v19 = vld [vmem:[#allocation174_spill] sm:$0xff]  ;;  %v8384_v11 = vld [vmem:[#allocation189_spill] sm:$0xff]  ;;  %vm8385_vm15 = vcmp.lt.s32.totalorder %v5275_v63, 700 }
 0x24d   : > { %8326 = vst [vmem:[#allocation169_spill] sm:$0xff] %v5763_v45  ;;  %v5775_v59 = vsel %vm8333_vm0, %v8332_v20, 0.0  ;;  %v8340_v45 = vmax.f32 %v8339_v15, 0.0  ;;  %v8345_v20 = vld [vmem:[#allocation175_spill] sm:$0xff]  ;;  %vm8388_vm0 = vcmp.lt.s32.totalorder %v5282_v61, 700  ;;  %vm8397_vm4 = vcmp.lt.s32.totalorder %v5303_v51, 700 }
 0x24e   : > { %8330 = vst [vmem:[#allocation170_spill] sm:$0xff] %v5769_v43  ;;  %v5781_v57 = vsel %vm8337_vm1, %v8336_v58, 0.0  ;;  %v8343_v43 = vmax.f32 %v8342_v19, 0.0  ;;  %v8348_v58 = vld [vmem:[#allocation176_spill] sm:$0xff]  ;;  %vm8391_vm1 = vcmp.lt.s32.totalorder %v5289_v50, 700 }
 0x24f   : > { %8334 = vst [vmem:[#allocation171_spill] sm:$0xff] %v5775_v59  ;;  %v5787_v44 = vsel %vm7555_vm9, %v8340_v45, 0.0  ;;  %v8346_v59 = vmax.f32 %v8345_v20, 0.0  ;;  %v8351_v45 = vld [vmem:[#allocation177_spill] sm:$0xff] }
 0x250   : > { %8338 = vst [vmem:[#allocation172_spill] sm:$0xff] %v5781_v57  ;;  %v5793_v9 = vsel %vm7554_vm7, %v8343_v43, 0.0  ;;  %v8349_v57 = vmax.f32 %v8348_v58, 0.0  ;;  %v8352_v31 = vmax.f32 %v8351_v45, 0.0  ;;  %v8354_v43 = vld [vmem:[#allocation178_spill] sm:$0xff]  ;;  %v8435_v45 = vld [vmem:[#allocation221_spill] sm:$0xff] }
 0x251   : > { %8341 = vst [vmem:[#allocation173_spill] sm:$0xff] %v5787_v44  ;;  %v5799_v18 = vsel %vm7553_vm11, %v8346_v59, 0.0  ;;  %v8355_v54 = vmax.f32 %v8354_v43, 0.0  ;;  %v8357_v59 = vld [vmem:[#allocation179_spill] sm:$0xff]  ;;  %v8364_v43 = vld [vmem:[#allocation182_spill] sm:$0xff] }
 0x252   : > { %8344 = vst [vmem:[#allocation174_spill] sm:$0xff] %v5793_v9  ;;  %v5805_v15 = vsel %vm7552_vm12, %v8349_v57, 0.0  ;;  %v5811_v19 = vsel %vm7549_vm3, %v8352_v31, 0.0  ;;  %v8358_v25 = vmax.f32 %v8357_v59, 0.0  ;;  %v8360_v57 = vld [vmem:[#allocation180_spill] sm:$0xff]  ;;  %v5833_v31 = vsel %vm1525_vm8, %v8362_v47, 0.0 }
 0x253   : > { %8347 = vst [vmem:[#allocation175_spill] sm:$0xff] %v5799_v18  ;;  %v5817_v20 = vsel %vm7548_vm6, %v8355_v54, 0.0  ;;  %v5828_v60 = vsel %vm1524_vm5, %v8360_v57, 0.0  ;;  %v5838_v54 = vsel %vm1526_vm13, %v8364_v43, 0.0  ;;  %v8372_v57 = vld [vmem:[#allocation185_spill] sm:$0xff]  ;;  %vm8373_vm5 = vcmp.lt.s32.totalorder %v5145_v5, 700 }
 0x254   : > { %8350 = vst [vmem:[#allocation176_spill] sm:$0xff] %v5805_v15  ;;  %v5823_v58 = vsel %vm7546_vm10, %v8358_v25, 0.0  ;;  %v5843_v25 = vsel %vm8367_vm2, %v8366_v23, 0.0  ;;  %v5853_v46 = vsel %vm8373_vm5, %v8372_v57, 0.0  ;;  %v8375_v47 = vld [vmem:[#allocation186_spill] sm:$0xff]  ;;  %vm8376_vm8 = vcmp.lt.s32.totalorder %v5254_v13, 700 }
 0x255   : > { %8353 = vst [vmem:[#allocation251_spill] sm:$0xff] %v5811_v19  ;;  %v5858_v52 = vsel %vm8376_vm8, %v8375_v47, 0.0  ;;  %v8378_v43 = vld [vmem:[#allocation187_spill] sm:$0xff]  ;;  %vm8379_vm13 = vcmp.lt.s32.totalorder %v5261_v42, 700  ;;  %v8381_v23 = vld [vmem:[#allocation188_spill] sm:$0xff]  ;;  %v5873_v5 = vsel %vm8385_vm15, %v8384_v11, 0.0 }
 0x256   : > { %8356 = vst [vmem:[#allocation252_spill] sm:$0xff] %v5817_v20  ;;  %v5863_v6 = vsel %vm8379_vm13, %v8378_v43, 0.0  ;;  %v5868_v17 = vsel %vm8382_vm14, %v8381_v23, 0.0  ;;  %v8387_v57 = vld [vmem:[#allocation190_spill] sm:$0xff]  ;;  %v8390_v47 = vld [vmem:[#allocation191_spill] sm:$0xff]  ;;  %v8393_v43 = vld [vmem:[#allocation192_spill] sm:$0xff] }
 0x257   : > { %8359 = vst [vmem:[#allocation253_spill] sm:$0xff] %v5823_v58  ;;  %v5878_v13 = vsel %vm8388_vm0, %v8387_v57, 0.0  ;;  %v5883_v42 = vsel %vm8391_vm1, %v8390_v47, 0.0  ;;  %vm8394_vm2 = vcmp.lt.s32.totalorder %v5296_v10, 700  ;;  %v8396_v23 = vld [vmem:[#allocation193_spill] sm:$0xff]  ;;  %v8399_v11 = vld [vmem:[#allocation194_spill] sm:$0xff] }
 0x258   : > { %8361 = vst [vmem:[#allocation180_spill] sm:$0xff] %v5828_v60  ;;  %v5888_v41 = vsel %vm8394_vm2, %v8393_v43, 0.0  ;;  %v5893_v63 = vsel %vm8397_vm4, %v8396_v23, 0.0  ;;  %vm8400_vm5 = vcmp.lt.s32.totalorder %v5310_v39, 700  ;;  %v8402_v57 = vld [vmem:[#allocation195_spill] sm:$0xff]  ;;  %vm8403_vm8 = vcmp.lt.s32.totalorder %v5317_v49, 700 }
 0x259   : > { %8363 = vst [vmem:[#allocation181_spill] sm:$0xff] %v5833_v31  ;;  %v5898_v61 = vsel %vm8400_vm5, %v8399_v11, 0.0  ;;  %v5903_v50 = vsel %vm8403_vm8, %v8402_v57, 0.0  ;;  %v8405_v47 = vld [vmem:[#allocation196_spill] sm:$0xff]  ;;  %vm8406_vm13 = vcmp.lt.s32.totalorder %v5394_v36, 700  ;;  %v8408_v43 = vld [vmem:[#allocation197_spill] sm:$0xff] }
 0x25a   : > { %8365 = vst [vmem:[#allocation182_spill] sm:$0xff] %v5838_v54  ;;  %v5908_v10 = vsel %vm8406_vm13, %v8405_v47, 0.0  ;;  %vm8409_vm14 = vcmp.lt.s32.totalorder %v5397_v30, 700  ;;  %v8411_v23 = vld [vmem:[#allocation198_spill] sm:$0xff]  ;;  %vm8412_vm15 = vcmp.lt.s32.totalorder %v5400_v38, 700  ;;  %v8414_v11 = vld [vmem:[#allocation199_spill] sm:$0xff] }
 0x25b   : > { %8368 = vst [vmem:[#allocation183_spill] sm:$0xff] %v5843_v25  ;;  %v5913_v51 = vsel %vm8409_vm14, %v8408_v43, 0.0  ;;  %v5918_v39 = vsel %vm8412_vm15, %v8411_v23, 0.0  ;;  %vm8415_vm0 = vcmp.lt.s32.totalorder %v5404_v55, 700  ;;  %v8417_v57 = vld [vmem:[#allocation200_spill] sm:$0xff]  ;;  %vm8418_vm1 = vcmp.lt.s32.totalorder %v5407_v3, 700 }
 0x25c   : > { %8371 = vst [vmem:[#allocation184_spill] sm:$0xff] %v5848_v1  ;;  %v5923_v49 = vsel %vm8415_vm0, %v8414_v11, 0.0  ;;  %v5928_v36 = vsel %vm8418_vm1, %v8417_v57, 0.0  ;;  %v8420_v47 = vld [vmem:[#allocation201_spill] sm:$0xff]  ;;  %vm8421_vm2 = vcmp.lt.s32.totalorder %v5410_v40, 700  ;;  %v8423_v43 = vld [vmem:[#allocation202_spill] sm:$0xff] }
 0x25d   : > { %8374 = vst [vmem:[#allocation185_spill] sm:$0xff] %v5853_v46  ;;  %v5933_v30 = vsel %vm8421_vm2, %v8420_v47, 0.0  ;;  %vm8424_vm4 = vcmp.lt.s32.totalorder %v5413_v27, 700  ;;  %v8426_v23 = vld [vmem:[#allocation203_spill] sm:$0xff]  ;;  %vm8427_vm5 = vcmp.lt.s32.totalorder %v5417_v26, 700  ;;  %v8429_v11 = vld [vmem:[#allocation204_spill] sm:$0xff] }
 0x25e   : > { %8377 = vst [vmem:[#allocation186_spill] sm:$0xff] %v5858_v52  ;;  %v5938_v38 = vsel %vm8424_vm4, %v8423_v43, 0.0  ;;  %v5943_v55 = vsel %vm8427_vm5, %v8426_v23, 0.0  ;;  %vm8430_vm8 = vcmp.lt.s32.totalorder %v5420_v0, 700  ;;  %v8432_v57 = vld [vmem:[#allocation216_spill] sm:$0xff]  ;;  %v8433_v58 = vld [vmem:[#allocation219_spill] sm:$0xff] }
 0x25f   : > { %8380 = vst [vmem:[#allocation187_spill] sm:$0xff] %v5863_v6  ;;  %v5948_v3 = vsel %vm8430_vm8, %v8429_v11, 0.0  ;;  %v8434_v43 = vld [vmem:[#allocation220_spill] sm:$0xff]  ;;  %v8436_v23 = vld [vmem:[#allocation223_spill] sm:$0xff]  ;;  %v1684_v20 = vand.u32 2147483647, %v8432_v57 }
 0x260   : > { %8383 = vst [vmem:[#allocation188_spill] sm:$0xff] %v5868_v17  ;;  %v8439_v18 = vld [vmem:[#allocation228_spill] sm:$0xff]  ;;  %v1685_v19 = vand.u32 2147483647, %v5503_v21  ;;  %v1686_v26 = vand.u32 2147483647, %v5507_v7 }
 0x261   : > { %8386 = vst [vmem:[#allocation189_spill] sm:$0xff] %v5873_v5  ;;  %v1687_v15 = vand.u32 2147483647, %v8433_v58  ;;  %v1688_v0 = vand.u32 2147483647, %v8434_v43  ;;  %v8441_v46 = vld [vmem:[#allocation245_spill] sm:$0xff] }
 0x262   : > { %8389 = vst [vmem:[#allocation190_spill] sm:$0xff] %v5878_v13  ;;  %v1689_v11 = vand.u32 2147483647, %v8435_v45  ;;  %v1690_v59 = vand.u32 2147483647, %v5525_v62  ;;  %v1718_v6 = vsub.f32 0.0, %v1686_v26 }
 0x263   : > { %8392 = vst [vmem:[#allocation191_spill] sm:$0xff] %v5883_v42  ;;  %v1691_v40 = vand.u32 2147483647, %v8436_v23  ;;  %v1693_v27 = vand.u32 2147483647, %v5539_v14  ;;  %v8440_v42 = vld [vmem:[#allocation242_spill] sm:$0xff] }
 0x264   : > { %8395 = vst [vmem:[#allocation192_spill] sm:$0xff] %v5888_v41  ;;  %v1697_v44 = vand.u32 2147483647, %v5557_v22  ;;  %v1717_v41 = vsub.f32 0.0, %v1685_v19  ;;  %v1703_v5 = vand.u32 2147483647, %v5583_v12 }
 0x265   : > { %8398 = vst [vmem:[#allocation193_spill] sm:$0xff] %v5893_v63  ;;  %v1702_v63 = vand.u32 2147483647, %v5579_v8  ;;  %v1704_v17 = vand.u32 2147483647, %v5587_v24  ;;  %v1720_v8 = vsub.f32 0.0, %v1688_v0 }
 0x266   : > { %8401 = vst [vmem:[#allocation194_spill] sm:$0xff] %v5898_v61  ;;  %v1701_v61 = vand.u32 2147483647, %v5575_v2  ;;  %v1705_v52 = vand.u32 2147483647, %v5591_v33  ;;  %v1721_v1 = vsub.f32 0.0, %v1689_v11 }
 0x267   : > { %8404 = vst [vmem:[#allocation195_spill] sm:$0xff] %v5903_v50  ;;  %v1707_v2 = vand.u32 2147483647, %v5599_v16  ;;  %v1708_v12 = vand.u32 2147483647, %v5603_v37  ;;  %v1722_v33 = vsub.f32 0.0, %v1690_v59 }
 0x268   : > { %8407 = vst [vmem:[#allocation196_spill] sm:$0xff] %v5908_v10  ;;  %v1716_v10 = vsub.f32 0.0, %v1684_v20  ;;  %v1706_v20 = vand.u32 2147483647, %v5595_v48  ;;  %v1750_v24 = vmul.f32 1.442695, %v1717_v41 }
 0x269   : > { %8410 = vst [vmem:[#allocation197_spill] sm:$0xff] %v5913_v51  ;;  %v1700_v51 = vand.u32 2147483647, %v5569_v4  ;;  %v1719_v4 = vsub.f32 0.0, %v1687_v15  ;;  %v8442_v48 = vld [vmem:[#allocation247_spill] sm:$0xff]  ;;  %v1723_v25 = vsub.f32 0.0, %v1691_v40 }
 0x26a   : > { %8413 = vst [vmem:[#allocation198_spill] sm:$0xff] %v5918_v39  ;;  %v1699_v39 = vand.u32 2147483647, %v5565_v34  ;;  %v1748_v19 = vmul.f32 1.442695, %v1716_v10  ;;  %v1725_v41 = vsub.f32 0.0, %v1693_v27 }
 0x26b   : > { %8416 = vst [vmem:[#allocation199_spill] sm:$0xff] %v5923_v49  ;;  %v1709_v49 = vand.u32 2147483647, %v5607_v53  ;;  %v1752_v34 = vmul.f32 1.442695, %v1718_v6  ;;  %v8469_v21 = vmov 0 }
 0x26c   : > { %8419 = vst [vmem:[#allocation200_spill] sm:$0xff] %v5928_v36  ;;  %v1698_v36 = vand.u32 2147483647, %v5561_v35  ;;  %v1710_v50 = vand.u32 2147483647, %v8440_v42  ;;  %2966 = vpow2.f32 %v1748_v19  ;;  %v1729_v19 = vsub.f32 0.0, %v1697_v44 }
 0x26d   : > { %8422 = vst [vmem:[#allocation201_spill] sm:$0xff] %v5933_v30  ;;  %v1696_v30 = vand.u32 2147483647, %v8439_v18  ;;  %v1754_v16 = vmul.f32 1.442695, %v1719_v4  ;;  %2968 = vpow2.f32 %v1750_v24  ;;  %v1731_v27 = vsub.f32 0.0, %v1699_v39 }
 0x26e   : > { %8425 = vst [vmem:[#allocation202_spill] sm:$0xff] %v5938_v38  ;;  %v1694_v38 = vand.u32 2147483647, %v5543_v29  ;;  %v1711_v10 = vand.u32 2147483647, %v5615_v28  ;;  %2970 = vpow2.f32 %v1752_v34 }
 0x26f   : > { %8428 = vst [vmem:[#allocation203_spill] sm:$0xff] %v5943_v55  ;;  %v8437_v55 = vld [vmem:[#allocation224_spill] sm:$0xff]  ;;  %v1756_v13 = vmul.f32 1.442695, %v1720_v8  ;;  %v1712_v11 = vand.u32 2147483647, %v5619_v56  ;;  %2972 = vpow2.f32 %v1754_v16 }
 0x270   : > { %8431 = vst [vmem:[#allocation204_spill] sm:$0xff] %v5948_v3  ;;  %v8438_v3 = vld [vmem:[#allocation227_spill] sm:$0xff]  ;;  %v1692_v47 = vand.u32 2147483647, %v8437_v55  ;;  %v1758_v26 = vmul.f32 1.442695, %v1721_v1 }
 0x271   : > { %v1695_v9 = vand.u32 2147483647, %v8438_v3  ;;  %v1713_v53 = vand.u32 2147483647, %v8441_v46  ;;  %v1726_v59 = vsub.f32 0.0, %v1694_v38  ;;  %2974 = vpow2.f32 %v1756_v13 }
 0x272   : > { %v1724_v0 = vsub.f32 0.0, %v1692_v47  ;;  %v1760_v6 = vmul.f32 1.442695, %v1722_v33  ;;  %v1714_v15 = vand.u32 2147483647, %v5627_v32  ;;  %v1728_v47 = vsub.f32 0.0, %v1696_v30  ;;  %v6014_v1 = vpop.eup %2966 }
 0x273   : > { %v1727_v42 = vsub.f32 0.0, %v1695_v9  ;;  %v1762_v4 = vmul.f32 1.442695, %v1723_v25  ;;  %v1715_v40 = vand.u32 2147483647, %v8442_v48  ;;  %v1730_v56 = vsub.f32 0.0, %v1698_v36  ;;  %v6016_v33 = vpop.eup %2968 }
 0x274   : > { %v1764_v8 = vmul.f32 1.442695, %v1724_v0  ;;  %2976 = vpow2.f32 %v1758_v26  ;;  %v1766_v24 = vmul.f32 1.442695, %v1725_v41  ;;  %v1732_v38 = vsub.f32 0.0, %v1700_v51  ;;  %v6018_v48 = vpop.eup %2970 }
 0x275   : > { %2978 = vpow2.f32 %v1760_v6  ;;  %v1768_v34 = vmul.f32 1.442695, %v1726_v59  ;;  %v1733_v9 = vsub.f32 0.0, %v1701_v61  ;;  %v1734_v16 = vsub.f32 0.0, %v1702_v63  ;;  %v6020_v36 = vpop.eup %2972 }
 0x276   : > { %2980 = vpow2.f32 %v1762_v4  ;;  %v1770_v25 = vmul.f32 1.442695, %v1727_v42  ;;  %v1735_v13 = vsub.f32 0.0, %v1703_v5  ;;  %v1736_v30 = vsub.f32 0.0, %v1704_v17 }
 0x277   : > { %2982 = vpow2.f32 %v1764_v8  ;;  %v1772_v44 = vmul.f32 1.442695, %v1728_v47  ;;  %v1737_v26 = vsub.f32 0.0, %v1705_v52  ;;  %v1738_v0 = vsub.f32 0.0, %v1706_v20  ;;  %v6022_v39 = vpop.eup %2974 }
 0x278   : > { %2984 = vpow2.f32 %v1766_v24  ;;  %v1774_v51 = vmul.f32 1.442695, %v1729_v19  ;;  %v1739_v41 = vsub.f32 0.0, %v1707_v2  ;;  %v1740_v59 = vsub.f32 0.0, %v1708_v12 }
 0x279   : > { %2986 = vpow2.f32 %v1768_v34  ;;  %v1776_v63 = vmul.f32 1.442695, %v1730_v56  ;;  %v1741_v42 = vsub.f32 0.0, %v1709_v49  ;;  %v1742_v6 = vsub.f32 0.0, %v1710_v50 }
 0x27a   : > { %v6024_v61 = vpop.eup %2976  ;;  %2988 = vpow2.f32 %v1770_v25  ;;  %v1778_v17 = vmul.f32 1.442695, %v1731_v27  ;;  %v1743_v4 = vsub.f32 0.0, %v1711_v10  ;;  %v1744_v47 = vsub.f32 0.0, %v1712_v11 }
 0x27b   : > { %v6026_v5 = vpop.eup %2978  ;;  %2990 = vpow2.f32 %v1772_v44  ;;  %v1780_v52 = vmul.f32 1.442695, %v1732_v38  ;;  %v1745_v8 = vsub.f32 0.0, %v1713_v53  ;;  %v1746_v19 = vsub.f32 0.0, %v1714_v15 }
 0x27c   : > { %v6028_v20 = vpop.eup %2980  ;;  %2992 = vpow2.f32 %v1774_v51  ;;  %v1782_v2 = vmul.f32 1.442695, %v1733_v9  ;;  %v1747_v56 = vsub.f32 0.0, %v1715_v40  ;;  %v1784_v49 = vmul.f32 1.442695, %v1734_v16 }
 0x27d   : > { %v6030_v12 = vpop.eup %2982  ;;  %2994 = vpow2.f32 %v1776_v63  ;;  %v1786_v50 = vmul.f32 1.442695, %v1735_v13  ;;  %v1788_v27 = vmul.f32 1.442695, %v1736_v30  ;;  %v1790_v10 = vmul.f32 1.442695, %v1737_v26 }
 0x27e   : > { %v6032_v24 = vpop.eup %2984  ;;  %2996 = vpow2.f32 %v1778_v17  ;;  %v1815_v11 = vmul.f32 -0.5, %v6014_v1  ;;  %v1792_v53 = vmul.f32 1.442695, %v1738_v0  ;;  %v1794_v15 = vmul.f32 1.442695, %v1739_v41 }
 0x27f   : > { %v6035_v38 = vpop.eup %2986  ;;  %2998 = vpow2.f32 %v1780_v52  ;;  %v1796_v34 = vmul.f32 1.442695, %v1740_v59  ;;  %v1798_v40 = vmul.f32 1.442695, %v1741_v42  ;;  %v1800_v25 = vmul.f32 1.442695, %v1742_v6 }
 0x280   : > { %v6037_v9 = vpop.eup %2988  ;;  %3000 = vpow2.f32 %v1782_v2  ;;  %v1824_v16 = vmul.f32 -0.5, %v6016_v33  ;;  %v1802_v30 = vmul.f32 1.442695, %v1743_v4  ;;  %v1804_v44 = vmul.f32 1.442695, %v1744_v47 }
 0x281   : > { %v6040_v13 = vpop.eup %2990  ;;  %3002 = vpow2.f32 %v1784_v49  ;;  %v1833_v26 = vmul.f32 -0.5, %v6018_v48  ;;  %v1806_v0 = vmul.f32 1.442695, %v1745_v8  ;;  %v1808_v41 = vmul.f32 1.442695, %v1746_v19 }
 0x282   : > { %v6043_v51 = vpop.eup %2992  ;;  %3004 = vpow2.f32 %v1786_v50  ;;  %v1816_v59 = vadd.f32 1.0, %v1815_v11  ;;  %v1810_v42 = vmul.f32 1.442695, %v1747_v56  ;;  %v1812_v6 = vadd.f32 1.0, %v6014_v1 }
 0x283   : > { %v6045_v63 = vpop.eup %2994  ;;  %3006 = vpow2.f32 %v1788_v27  ;;  %v1842_v17 = vmul.f32 -0.5, %v6020_v36  ;;  %v1821_v47 = vadd.f32 1.0, %v6016_v33  ;;  %v1825_v2 = vadd.f32 1.0, %v1824_v16 }
 0x284   : > { %v6049_v52 = vpop.eup %2996  ;;  %3008 = vpow2.f32 %v1790_v10  ;;  %v1834_v19 = vadd.f32 1.0, %v1833_v26  ;;  %v1851_v56 = vmul.f32 -0.5, %v6022_v39  ;;  %v6060_v27 = vmul.f32 %v6014_v1, %v1816_v59 }
 0x285   : > { %v6053_v49 = vpop.eup %2998  ;;  %3010 = vpow2.f32 %v1792_v53  ;;  %v1830_v10 = vadd.f32 1.0, %v6018_v48  ;;  %v1860_v11 = vmul.f32 -0.5, %v6024_v61  ;;  %v1839_v16 = vadd.f32 1.0, %v6020_v36 }
 0x286   : > { %v6057_v50 = vpop.eup %3000  ;;  %3012 = vpow2.f32 %v1794_v15  ;;  %v1843_v26 = vadd.f32 1.0, %v1842_v17  ;;  %v6071_v15 = vmul.f32 %v6016_v33, %v1825_v2  ;;  %v1869_v32 = vmul.f32 -0.5, %v6026_v5 }
 0x287   : > { %v6064_v4 = vpop.eup %3002  ;;  %3014 = vpow2.f32 %v1796_v34  ;;  %v6078_v34 = vmul.f32 %v6018_v48, %v1834_v19  ;;  %v1848_v53 = vadd.f32 1.0, %v6022_v39  ;;  %v1852_v28 = vadd.f32 1.0, %v1851_v56 }
 0x288   : > { %v6068_v8 = vpop.eup %3004  ;;  %3016 = vpow2.f32 %v1798_v40  ;;  %v1861_v2 = vadd.f32 1.0, %v1860_v11  ;;  %v1878_v37 = vmul.f32 -0.5, %v6028_v20  ;;  %v6088_v35 = vmul.f32 %v6020_v36, %v1843_v26 }
 0x289   : > { %v6075_v46 = vpop.eup %3006  ;;  %3018 = vpow2.f32 %v1800_v25  ;;  %v1857_v25 = vadd.f32 1.0, %v6024_v61  ;;  %v1863_v19 = vand.u32 2147483647, %v6024_v61  ;;  %v1870_v56 = vadd.f32 1.0, %v1869_v32 }
 0x28a   : > { %v6081_v17 = vpop.eup %3008  ;;  %3020 = vpow2.f32 %v1802_v30  ;;  %v1866_v30 = vadd.f32 1.0, %v6026_v5  ;;  %v1887_v11 = vmul.f32 -0.5, %v6030_v12  ;;  %v1872_v26 = vand.u32 2147483647, %v6026_v5 }
 0x28b   : > { %v6085_v59 = vpop.eup %3010  ;;  %3022 = vpow2.f32 %v1804_v44  ;;  %v6099_v44 = vmul.f32 %v6022_v39, %v1852_v28  ;;  %v1896_v22 = vmul.f32 -0.5, %v6032_v24  ;;  %v1875_v32 = vadd.f32 1.0, %v6028_v20 }
 0x28c   : > { %v6092_v54 = vpop.eup %3012  ;;  %3024 = vpow2.f32 %v1806_v0  ;;  %v6106_v0 = vmul.f32 %v6024_v61, %v1861_v2  ;;  %v1879_v3 = vadd.f32 1.0, %v1878_v37  ;;  %v1884_v28 = vadd.f32 1.0, %v6030_v12 }
 0x28d   : > { %v6096_v40 = vpop.eup %3014  ;;  %3026 = vpow2.f32 %v1808_v41  ;;  %v1881_v41 = vand.u32 2147483647, %v6028_v20  ;;  %v1905_v60 = vmul.f32 -0.5, %v6035_v38  ;;  %v1888_v61 = vadd.f32 1.0, %v1887_v11 }
 0x28e   : > { %v6103_v18 = vpop.eup %3016  ;;  %3028 = vpow2.f32 %v1810_v42  ;;  %v6117_v42 = vmul.f32 %v6026_v5, %v1870_v56  ;;  %v1890_v2 = vand.u32 2147483647, %v6030_v12  ;;  %v1893_v37 = vadd.f32 1.0, %v6032_v24 }
 0x28f   : > { %v6109_v31 = vpop.eup %3018  ;;  %3030 = vlog2.f32 %v1812_v6  ;;  %v1897_v6 = vadd.f32 1.0, %v1896_v22  ;;  %v1914_v55 = vmul.f32 -0.5, %v6037_v9  ;;  %v8447_v62 = vand.u32 2147483647, %v6014_v1 }
 0x290   : > { %8443 = vst [vmem:[#allocation254_spill] sm:$0xff] %v6109_v31  ;;  %v6114_v29 = vpop.eup %3020  ;;  %3032 = vlog2.f32 %v1821_v47  ;;  %v8448_v47 = vmov 0  ;;  %v6133_v5 = vmul.f32 %v6028_v20, %v1879_v3  ;;  %v1899_v56 = vand.u32 2147483647, %v6032_v24 }
 0x291   : > { %8444 = vst [vmem:[#allocation255_spill] sm:$0xff] %v6114_v29  ;;  %v6120_v14 = vpop.eup %3022  ;;  %3034 = vlog2.f32 %v1830_v10  ;;  %vm6128_vm13 = vcmp.lt.f32.partialorder %v8447_v62, 0.0004427343  ;;  %v1923_v10 = vmul.f32 -0.5, %v6040_v13  ;;  %v1902_v22 = vadd.f32 1.0, %v6035_v38  ;;  %v8619_v29 = vld [vmem:[#allocation153_spill] sm:$0xff] }
 0x292   : > { %8445 = vst [vmem:[#allocation256_spill] sm:$0xff] %v6120_v14  ;;  %v6124_v23 = vpop.eup %3024  ;;  %v8449_v47 = vsel %vm6128_vm13, 4294967295, %v8448_v47  ;;  %3036 = vlog2.f32 %v1839_v16  ;;  %v1906_v45 = vadd.f32 1.0, %v1905_v60  ;;  %v1932_v1 = vmul.f32 -0.5, %v6043_v51  ;;  %v8757_v16 = vld [vmem:[#allocation244_spill] sm:$0xff] }
 0x293   : > { %8446 = vst [vmem:[#allocation257_spill] sm:$0xff] %v6124_v23  ;;  %v6137_v11 = vpop.eup %3026  ;;  %3038 = vlog2.f32 %v1848_v53  ;;  %v8454_v43 = vand.u32 2147483647, %v6016_v33  ;;  %v6150_v3 = vmul.f32 %v6030_v12, %v1888_v61  ;;  %v1908_v20 = vand.u32 2147483647, %v6035_v38 }
 0x294   : > { %8450 = vst [vmem:[#allocation258_spill] sm:$0xff] %v8449_v47  ;;  %v6141_v62 = vpop.eup %3028  ;;  %3040 = vlog2.f32 %v1857_v25  ;;  %v1941_v53 = vmul.f32 -0.5, %v6045_v63  ;;  %v6155_v60 = vmul.f32 %v6032_v24, %v1897_v6  ;;  %v1915_v33 = vadd.f32 1.0, %v1914_v55 }
 0x295   : > { %8451 = vst [vmem:[#allocation259_spill] sm:$0xff] %v6133_v5  ;;  %vm6145_vm14 = vcmp.lt.f32.partialorder %v8454_v43, 0.0004427343  ;;  %v3031_v58 = vpop.eup %3030  ;;  %3042 = vlog2.f32 %v1866_v30  ;;  %v8457_v7 = vand.u32 2147483647, %v6018_v48  ;;  %v1920_v61 = vadd.f32 1.0, %v6040_v13 }
 0x296   : > { %8452 = vst [vmem:[#allocation260_spill] sm:$0xff] %v6137_v11  ;;  %v3033_v43 = vpop.eup %3032  ;;  %3044 = vlog2.f32 %v1875_v32  ;;  %v1917_v12 = vand.u32 2147483647, %v6037_v9  ;;  %v1924_v11 = vadd.f32 1.0, %v1923_v10  ;;  %v8460_v24 = vand.u32 2147483647, %v6020_v36 }
 0x297   : > { %8453 = vst [vmem:[#allocation261_spill] sm:$0xff] %v6141_v62  ;;  %v1911_v62 = vadd.f32 1.0, %v6037_v9  ;;  %vm6160_vm15 = vcmp.lt.f32.partialorder %v8457_v7, 0.0004427343  ;;  %v3035_v30 = vpop.eup %3034  ;;  %v8463_v55 = vand.u32 2147483647, %v6022_v39  ;;  %3046 = vlog2.f32 %v1884_v28 }
 0x298   : > { %vm6168_vm0 = vcmp.lt.f32.partialorder %v8460_v24, 0.0004427343  ;;  %vm6178_vm2 = vcmp.lt.f32.partialorder %v1863_v19, 0.0004427343  ;;  %v8466_v48 = vmov 0  ;;  %v6183_v32 = vmul.f32 %v6035_v38, %v1906_v45  ;;  %v3037_v24 = vpop.eup %3036 }
 0x299   : > { %vm6174_vm1 = vcmp.lt.f32.partialorder %v8463_v55, 0.0004427343  ;;  %v8467_v48 = vsel %vm6178_vm2, 4294967295, %v8466_v48  ;;  %v1933_v10 = vadd.f32 1.0, %v1932_v1  ;;  %v1950_v36 = vmul.f32 -0.5, %v6049_v52  ;;  %v3039_v57 = vpop.eup %3038 }
 0x29a   : > { %8468 = vst [vmem:[#allocation262_spill] sm:$0xff] %v8467_v48  ;;  %vm6186_vm4 = vcmp.lt.f32.partialorder %v1872_v26, 0.0004427343  ;;  %3048 = vlog2.f32 %v1893_v37  ;;  %v1926_v39 = vand.u32 2147483647, %v6040_v13  ;;  %v1929_v19 = vadd.f32 1.0, %v6043_v51  ;;  %v3041_v28 = vpop.eup %3040 }
 0x29b   : > { %v8470_v21 = vsel %vm6186_vm4, 4294967295, %v8469_v21  ;;  %v1942_v55 = vadd.f32 1.0, %v1941_v53  ;;  %v6192_v23 = vmul.f32 0.6931472, %v3031_v58  ;;  %vm6194_vm5 = vcmp.lt.f32.partialorder %v1881_v41, 0.0004427343  ;;  %v3043_v53 = vpop.eup %3042 }
 0x29c   : > { %8471 = vst [vmem:[#allocation263_spill] sm:$0xff] %v8470_v21  ;;  %3050 = vlog2.f32 %v1902_v22  ;;  %v6199_v38 = vmul.f32 %v6037_v9, %v1915_v33  ;;  %v1935_v26 = vand.u32 2147483647, %v6043_v51  ;;  %vm6202_vm8 = vcmp.lt.f32.partialorder %v1890_v2, 0.0004427343  ;;  %v3045_v14 = vpop.eup %3044 }
 0x29d   : > { %v8475_v37 = vmov 0  ;;  %3052 = vlog2.f32 %v1911_v62  ;;  %v6207_v1 = vmul.f32 %v6040_v13, %v1924_v11  ;;  %v1938_v58 = vadd.f32 1.0, %v6045_v63 }
 0x29e   : > { %8474 = vst [vmem:[#allocation264_spill] sm:$0xff] %v6199_v38  ;;  %v8476_v37 = vsel %vm6202_vm8, 4294967295, %v8475_v37  ;;  %v1944_v41 = vand.u32 2147483647, %v6045_v63  ;;  %v6211_v22 = vmul.f32 0.6931472, %v3033_v43  ;;  %v6214_v9 = vmul.f32 %v6043_v51, %v1933_v10 }
 0x29f   : > { %8477 = vst [vmem:[#allocation265_spill] sm:$0xff] %v8476_v37  ;;  %v1947_v33 = vadd.f32 1.0, %v6049_v52  ;;  %v1951_v2 = vadd.f32 1.0, %v1950_v36  ;;  %vm6217_vm10 = vcmp.lt.f32.partialorder %v1899_v56, 0.0004427343  ;;  %v8482_v11 = vmov 0  ;;  %v3047_v56 = vpop.eup %3046 }
 0x2a0   : > { %vm6221_vm6 = vcmp.lt.f32.partialorder %v1908_v20, 0.0004427343  ;;  %vm6225_vm3 = vcmp.lt.f32.partialorder %v1917_v12, 0.0004427343  ;;  %3054 = vlog2.f32 %v1920_v61  ;;  %v6230_v51 = vmul.f32 %v6045_v63, %v1942_v55  ;;  %v3049_v36 = vpop.eup %3048 }
 0x2a1   : > { %v8483_v11 = vsel %vm6225_vm3, 4294967295, %v8482_v11  ;;  %v1953_v62 = vand.u32 2147483647, %v6049_v52  ;;  %v1956_v43 = vadd.f32 1.0, %v6053_v49  ;;  %v6238_v10 = vmul.f32 0.6931472, %v3035_v30 }
 0x2a2   : > { %8484 = vst [vmem:[#allocation266_spill] sm:$0xff] %v8483_v11  ;;  %3056 = vlog2.f32 %v1929_v19  ;;  %v1959_v12 = vmul.f32 -0.5, %v6053_v49  ;;  %v6241_v61 = vmul.f32 0.6931472, %v3037_v24  ;;  %v6243_v63 = vmul.f32 0.6931472, %v3039_v57  ;;  %v3051_v31 = vpop.eup %3050 }
 0x2a3   : > { %v6245_v55 = vmul.f32 0.6931472, %v3041_v28  ;;  %3058 = vlog2.f32 %v1938_v58  ;;  %v6251_v20 = vmul.f32 0.6931472, %v3043_v53  ;;  %vm6253_vm12 = vcmp.lt.f32.partialorder %v1926_v39, 0.0004427343  ;;  %v3053_v19 = vpop.eup %3052 }
 0x2a4   : > { %8485 = vst [vmem:[#allocation267_spill] sm:$0xff] %v6241_v61  ;;  %vm6257_vm11 = vcmp.lt.f32.partialorder %v1935_v26, 0.0004427343  ;;  %v8489_v24 = vmov 0  ;;  %3060 = vlog2.f32 %v1947_v33  ;;  %v6262_v57 = vmul.f32 %v6049_v52, %v1951_v2  ;;  %v8636_v30 = vld [vmem:[#allocation154_spill] sm:$0xff] }
 0x2a5   : > { %8486 = vst [vmem:[#allocation268_spill] sm:$0xff] %v6243_v63  ;;  %v8490_v24 = vsel %vm6257_vm11, 4294967295, %v8489_v24  ;;  %v6264_v28 = vmul.f32 0.6931472, %v3045_v14  ;;  %3062 = vlog2.f32 %v1956_v43  ;;  %v1962_v58 = vand.u32 2147483647, %v6053_v49 }
 0x2a6   : > { %8491 = vst [vmem:[#allocation269_spill] sm:$0xff] %v6262_v57  ;;  %v1965_v53 = vadd.f32 1.0, %v6057_v50  ;;  %v6272_v26 = vmul.f32 0.6931472, %v3047_v56  ;;  %vm6274_vm7 = vcmp.lt.f32.partialorder %v1944_v41, 0.0004427343  ;;  %v3055_v2 = vpop.eup %3054 }
 0x2a7   : > { %8492 = vst [vmem:[#allocation270_spill] sm:$0xff] %v6264_v28  ;;  %v8493_v33 = vmov 0  ;;  %v1960_v52 = vadd.f32 1.0, %v1959_v12  ;;  %v1974_v14 = vadd.f32 1.0, %v6064_v4  ;;  %vm6291_vm9 = vcmp.lt.f32.partialorder %v1953_v62, 0.0004427343 }
 0x2a8   : > { %v8494_v33 = vsel %vm6274_vm7, 4294967295, %v8493_v33  ;;  %v8495_v56 = vmov 0  ;;  %v1968_v12 = vmul.f32 -0.5, %v6057_v50  ;;  %v3057_v47 = vpop.eup %3056  ;;  %v6300_v61 = vmul.f32 0.6931472, %v3049_v36 }
 0x2a9   : > { %v8496_v56 = vsel %vm6291_vm9, 4294967295, %v8495_v56  ;;  %v6302_v39 = vmul.f32 0.6931472, %v3051_v31  ;;  %v6304_v63 = vmul.f32 0.6931472, %v3053_v19  ;;  %v3059_v48 = vpop.eup %3058  ;;  %v8500_v41 = vmov 0 }
 0x2aa   : > { %8497 = vst [vmem:[#allocation271_spill] sm:$0xff] %v8496_v56  ;;  %vm6310_vm2 = vcmp.lt.f32.partialorder %v1962_v58, 0.0004427343  ;;  %3064 = vlog2.f32 %v1965_v53  ;;  %v1971_v21 = vand.u32 2147483647, %v6057_v50  ;;  %v3061_v43 = vpop.eup %3060  ;;  %v6320_v36 = vmul.f32 %v6053_v49, %v1960_v52 }
 0x2ab   : > { %8498 = vst [vmem:[#allocation272_spill] sm:$0xff] %v6302_v39  ;;  %v8501_v41 = vsel %vm6310_vm2, 4294967295, %v8500_v41  ;;  %3066 = vlog2.f32 %v1974_v14  ;;  %v1983_v19 = vadd.f32 1.0, %v6068_v8  ;;  %v3063_v62 = vpop.eup %3062  ;;  %v6323_v58 = vmul.f32 0.6931472, %v3055_v2 }
 0x2ac   : > { %8499 = vst [vmem:[#allocation273_spill] sm:$0xff] %v6304_v63  ;;  %v6325_v28 = vmul.f32 0.6931472, %v3057_v47  ;;  %v1969_v53 = vadd.f32 1.0, %v1968_v12  ;;  %v1977_v5 = vmul.f32 -0.5, %v6064_v4  ;;  %v1992_v47 = vadd.f32 1.0, %v6075_v46 }
 0x2ad   : > { %8502 = vst [vmem:[#allocation274_spill] sm:$0xff] %v8501_v41  ;;  %v6341_v14 = vmul.f32 0.6931472, %v3059_v48  ;;  %vm6343_vm8 = vcmp.lt.f32.partialorder %v1971_v21, 0.0004427343  ;;  %v8505_v2 = vmov 0  ;;  %3068 = vlog2.f32 %v1983_v19 }
 0x2ae   : > { %8503 = vst [vmem:[#allocation275_spill] sm:$0xff] %v6320_v36  ;;  %v8506_v2 = vsel %vm6343_vm8, 4294967295, %v8505_v2  ;;  %v1986_v12 = vmul.f32 -0.5, %v6068_v8  ;;  %v2001_v37 = vadd.f32 1.0, %v6081_v17  ;;  %v6349_v31 = vmul.f32 0.6931472, %v3061_v43 }
 0x2af   : > { %8504 = vst [vmem:[#allocation276_spill] sm:$0xff] %v6323_v58  ;;  %v6351_v49 = vmul.f32 0.6931472, %v3063_v62  ;;  %v1980_v39 = vand.u32 2147483647, %v6064_v4  ;;  %v6363_v63 = vmul.f32 %v6057_v50, %v1969_v53  ;;  %v1978_v43 = vadd.f32 1.0, %v1977_v5 }
 0x2b0   : > { %8507 = vst [vmem:[#allocation277_spill] sm:$0xff] %v8506_v2  ;;  %v3065_v52 = vpop.eup %3064  ;;  %v1989_v38 = vand.u32 2147483647, %v6068_v8  ;;  %3070 = vlog2.f32 %v1992_v47  ;;  %v1995_v19 = vmul.f32 -0.5, %v6075_v46  ;;  %v2010_v11 = vadd.f32 1.0, %v6085_v59 }
 0x2b1   : > { %8508 = vst [vmem:[#allocation278_spill] sm:$0xff] %v6349_v31  ;;  %v3067_v62 = vpop.eup %3066  ;;  %v1987_v58 = vadd.f32 1.0, %v1986_v12  ;;  %3072 = vlog2.f32 %v2001_v37  ;;  %v2004_v48 = vmul.f32 -0.5, %v6081_v17  ;;  %v6381_v53 = vmul.f32 0.6931472, %v3065_v52 }
 0x2b2   : > { %8509 = vst [vmem:[#allocation279_spill] sm:$0xff] %v6351_v49  ;;  %vm6383_vm11 = vcmp.lt.f32.partialorder %v1980_v39, 0.0004427343  ;;  %v8512_v47 = vmov 0  ;;  %v6387_v12 = vmul.f32 0.6931472, %v3067_v62  ;;  %v6390_v37 = vmul.f32 %v6064_v4, %v1978_v43 }
 0x2b3   : > { %8510 = vst [vmem:[#allocation280_spill] sm:$0xff] %v6363_v63  ;;  %v8513_v47 = vsel %vm6383_vm11, 4294967295, %v8512_v47  ;;  %v1998_v21 = vand.u32 2147483647, %v6075_v46  ;;  %v2019_v50 = vadd.f32 1.0, %v6092_v54  ;;  %v3069_v31 = vpop.eup %3068  ;;  %v8517_v57 = vmov 0 }
 0x2b4   : > { %8511 = vst [vmem:[#allocation281_spill] sm:$0xff] %v6381_v53  ;;  %vm6394_vm9 = vcmp.lt.f32.partialorder %v1989_v38, 0.0004427343  ;;  %v1996_v52 = vadd.f32 1.0, %v1995_v19  ;;  %3074 = vlog2.f32 %v2010_v11  ;;  %v2013_v39 = vmul.f32 -0.5, %v6085_v59 }
 0x2b5   : > { %8514 = vst [vmem:[#allocation282_spill] sm:$0xff] %v8513_v47  ;;  %v8518_v57 = vsel %vm6394_vm9, 4294967295, %v8517_v57  ;;  %v6400_v5 = vmul.f32 %v6068_v8, %v1987_v58  ;;  %v2005_v62 = vadd.f32 1.0, %v2004_v48  ;;  %v2007_v4 = vand.u32 2147483647, %v6081_v17 }
 0x2b6   : > { %8515 = vst [vmem:[#allocation283_spill] sm:$0xff] %v6387_v12  ;;  %v2028_v43 = vadd.f32 1.0, %v6096_v40  ;;  %v3071_v49 = vpop.eup %3070  ;;  %v2016_v36 = vand.u32 2147483647, %v6085_v59  ;;  %v2022_v11 = vmul.f32 -0.5, %v6092_v54  ;;  %v2037_v19 = vadd.f32 1.0, %v6103_v18 }
 0x2b7   : > { %8516 = vst [vmem:[#allocation284_spill] sm:$0xff] %v6390_v37  ;;  %v3073_v41 = vpop.eup %3072  ;;  %v6415_v58 = vmul.f32 0.6931472, %v3069_v31  ;;  %vm6417_vm2 = vcmp.lt.f32.partialorder %v1998_v21, 0.0004427343  ;;  %v8522_v48 = vmov 0  ;;  %3076 = vlog2.f32 %v2019_v50 }
 0x2b8   : > { %8519 = vst [vmem:[#allocation285_spill] sm:$0xff] %v8518_v57  ;;  %v8523_v48 = vsel %vm6417_vm2, 4294967295, %v8522_v48  ;;  %v6422_v38 = vmul.f32 %v6075_v46, %v1996_v52  ;;  %v2014_v53 = vadd.f32 1.0, %v2013_v39  ;;  %v2025_v63 = vand.u32 2147483647, %v6092_v54  ;;  %v8540_v57 = vld [vmem:[#allocation256_spill] sm:$0xff] }
 0x2b9   : > { %8520 = vst [vmem:[#allocation286_spill] sm:$0xff] %v6400_v5  ;;  %v2031_v2 = vmul.f32 -0.5, %v6096_v40  ;;  %v6426_v56 = vmul.f32 0.6931472, %v3071_v49  ;;  %v6429_v47 = vmul.f32 %v6081_v17, %v2005_v62  ;;  %vm6431_vm11 = vcmp.lt.f32.partialorder %v2007_v4, 0.0004427343 }
 0x2ba   : > { %8521 = vst [vmem:[#allocation287_spill] sm:$0xff] %v6415_v58  ;;  %v8528_v31 = vmov 0  ;;  %3078 = vlog2.f32 %v2028_v43  ;;  %v3075_v21 = vpop.eup %3074  ;;  %v6435_v50 = vmul.f32 0.6931472, %v3073_v41  ;;  %vm6437_vm8 = vcmp.lt.f32.partialorder %v2016_v36, 0.0004427343 }
 0x2bb   : > { %8524 = vst [vmem:[#allocation288_spill] sm:$0xff] %v8523_v48  ;;  %v8529_v31 = vsel %vm6431_vm11, 4294967295, %v8528_v31  ;;  %v8531_v46 = vmov 0  ;;  %v2023_v52 = vadd.f32 1.0, %v2022_v11  ;;  %3080 = vlog2.f32 %v2037_v19  ;;  %v8534_v62 = vld [vmem:[#allocation254_spill] sm:$0xff]  ;;  %v8538_v5 = vld [vmem:[#allocation255_spill] sm:$0xff] }
 0x2bc   : > { %8525 = vst [vmem:[#allocation289_spill] sm:$0xff] %v6422_v38  ;;  %v8532_v46 = vsel %vm6437_vm8, 4294967295, %v8531_v46  ;;  %v2034_v49 = vand.u32 2147483647, %v6096_v40  ;;  %v2040_v39 = vmul.f32 -0.5, %v6103_v18  ;;  %v2046_v4 = vadd.f32 1.0, %v8534_v62 }
 0x2bd   : > { %8526 = vst [vmem:[#allocation290_spill] sm:$0xff] %v6426_v56  ;;  %v6449_v41 = vmul.f32 %v6085_v59, %v2014_v53  ;;  %vm6451_vm7 = vcmp.lt.f32.partialorder %v2025_v63, 0.0004427343  ;;  %v2032_v43 = vadd.f32 1.0, %v2031_v2  ;;  %v2043_v11 = vand.u32 2147483647, %v6103_v18  ;;  %v3077_v19 = vpop.eup %3076 }
 0x2be   : > { %8527 = vst [vmem:[#allocation291_spill] sm:$0xff] %v6429_v47  ;;  %v6460_v8 = vmul.f32 0.6931472, %v3075_v21  ;;  %v2049_v58 = vmul.f32 -0.5, %v8534_v62  ;;  %v2055_v59 = vadd.f32 1.0, %v8538_v5  ;;  %v6469_v2 = vmul.f32 %v6092_v54, %v2023_v52  ;;  %v8549_v52 = vld [vmem:[#allocation257_spill] sm:$0xff] }
 0x2bf   : > { %8530 = vst [vmem:[#allocation292_spill] sm:$0xff] %v6435_v50  ;;  %v2052_v53 = vand.u32 2147483647, %v8534_v62  ;;  %v2064_v12 = vadd.f32 1.0, %v8540_v57  ;;  %vm6473_vm2 = vcmp.lt.f32.partialorder %v2034_v49, 0.0004427343  ;;  %3082 = vlog2.f32 %v2046_v4 }
 0x2c0   : > { %8533 = vst [vmem:[#allocation293_spill] sm:$0xff] %v8532_v46  ;;  %v3079_v48 = vpop.eup %3078  ;;  %v8541_v21 = vmov 0  ;;  %v2041_v17 = vadd.f32 1.0, %v2040_v39  ;;  %v2058_v56 = vmul.f32 -0.5, %v8538_v5  ;;  %v6478_v37 = vmul.f32 0.6931472, %v3077_v19 }
 0x2c1   : > { %8537 = vst [vmem:[#allocation254_spill] sm:$0xff] %v6460_v8  ;;  %v8542_v21 = vsel %vm6473_vm2, 4294967295, %v8541_v21  ;;  %v3081_v38 = vpop.eup %3080  ;;  %v6481_v63 = vmul.f32 %v6096_v40, %v2032_v43  ;;  %vm6483_vm11 = vcmp.lt.f32.partialorder %v2043_v11, 0.0004427343  ;;  %v8546_v54 = vmov 0  ;;  %v8729_v36 = vld [vmem:[#allocation240_spill] sm:$0xff] }
 0x2c2   : > { %8539 = vst [vmem:[#allocation255_spill] sm:$0xff] %v6469_v2  ;;  %v8547_v54 = vsel %vm6483_vm11, 4294967295, %v8546_v54  ;;  %v2073_v50 = vadd.f32 1.0, %v8549_v52  ;;  %v2050_v39 = vadd.f32 1.0, %v2049_v58  ;;  %3084 = vlog2.f32 %v2055_v59  ;;  %v8555_v59 = vld [vmem:[#allocation216_spill] sm:$0xff]  ;;  %v8750_v40 = vld [vmem:[#allocation243_spill] sm:$0xff] }
 0x2c3   : > { %8543 = vst [vmem:[#allocation256_spill] sm:$0xff] %v8542_v21  ;;  %v2067_v4 = vmul.f32 -0.5, %v8540_v57  ;;  %v6493_v19 = vmul.f32 0.6931472, %v3079_v48  ;;  %vm6495_vm9 = vcmp.lt.f32.partialorder %v2052_v53, 0.0004427343  ;;  %3086 = vlog2.f32 %v2064_v12 }
 0x2c4   : > { %8544 = vst [vmem:[#allocation294_spill] sm:$0xff] %v6478_v37  ;;  %v2061_v43 = vand.u32 2147483647, %v8538_v5  ;;  %v6500_v11 = vmul.f32 0.6931472, %v3081_v38  ;;  %v6503_v47 = vmul.f32 %v6103_v18, %v2041_v17  ;;  %v2059_v46 = vadd.f32 1.0, %v2058_v56 }
 0x2c5   : > { %8545 = vst [vmem:[#allocation295_spill] sm:$0xff] %v6481_v63  ;;  %v2070_v58 = vand.u32 2147483647, %v8540_v57  ;;  %3088 = vlog2.f32 %v2073_v50  ;;  %v8556_v53 = vmax.f32 %v8555_v59, 0.0  ;;  %v8558_v12 = vsel %vm6128_vm13, %v6060_v27, %v6192_v23  ;;  %v8559_v18 = vld [vmem:[#allocation217_spill] sm:$0xff]  ;;  %v3083_v48 = vpop.eup %3082  ;;  %v8562_v2 = vld [vmem:[#allocation260_spill] sm:$0xff] }
 0x2c6   : > { %8548 = vst [vmem:[#allocation296_spill] sm:$0xff] %v8547_v54  ;;  %v8560_v17 = vmax.f32 %v8559_v18, 0.0  ;;  %v8561_v56 = vsel %vm6145_vm14, %v6071_v15, %v6211_v22  ;;  %v6529_v50 = vmul.f32 %v8534_v62, %v2050_v39  ;;  %v2068_v37 = vadd.f32 1.0, %v2067_v4  ;;  %v8565_v22 = vld [vmem:[#allocation218_spill] sm:$0xff] }
 0x2c7   : > { %8550 = vst [vmem:[#allocation257_spill] sm:$0xff] %v6493_v19  ;;  %v6517_v38 = vadd.f32 %v8558_v12, %v8556_v53  ;;  %v2076_v49 = vmul.f32 -0.5, %v8549_v52  ;;  %v2082_v23 = vadd.f32 1.0, %v8562_v2  ;;  %vm6537_vm13 = vcmp.lt.f32.partialorder %v2061_v43, 0.0004427343  ;;  %v8586_v63 = vld [vmem:[#allocation262_spill] sm:$0xff] }
 0x2c8   : > { %8553 = vst [vmem:[#allocation297_spill] sm:$0xff] %v6500_v11  ;;  %v6526_v8 = vadd.f32 %v8561_v56, %v8560_v17  ;;  %v2079_v15 = vand.u32 2147483647, %v8549_v52  ;;  %v8566_v53 = vmax.f32 %v8565_v22, 0.0  ;;  %v8567_v62 = vsel %vm6160_vm15, %v6078_v34, %v6238_v10  ;;  %v3085_v4 = vpop.eup %3084  ;;  %v8571_v34 = vld [vmem:[#allocation219_spill] sm:$0xff]  ;;  %v8575_v11 = vld [vmem:[#allocation261_spill] sm:$0xff] }
 0x2c9   : > { %8554 = vst [vmem:[#allocation298_spill] sm:$0xff] %v6503_v47  ;;  %v6556_v12 = vmul.f32 %v8538_v5, %v2059_v46  ;;  %vm6558_vm14 = vcmp.lt.f32.partialorder %v2070_v58, 0.0004427343  ;;  %v2085_v25 = vmul.f32 -0.5, %v8562_v2  ;;  %v3087_v56 = vpop.eup %3086  ;;  %v6563_v27 = vmul.f32 0.6931472, %v3083_v48 }
 0x2ca   : > { %v6549_v39 = vadd.f32 %v8567_v62, %v8566_v53  ;;  %v8572_v10 = vmax.f32 %v8571_v34, 0.0  ;;  %v8573_v53 = vld [vmem:[#allocation267_spill] sm:$0xff]  ;;  %v2133_v5 = vsub.f32 %v6517_v38, %v8555_v59  ;;  %v2134_v46 = vsub.f32 %v6526_v8, %v8559_v18  ;;  %v8582_v59 = vld [vmem:[#allocation268_spill] sm:$0xff]  ;;  %v8762_v17 = vld [vmem:[#allocation245_spill] sm:$0xff] }
 0x2cb   : > { %8568 = vst [vmem:[#allocation216_spill] sm:$0xff] %v6556_v12  ;;  %v8574_v62 = vsel %vm6168_vm0, %v6088_v35, %v8573_v53  ;;  %v6579_v58 = vmul.f32 %v8540_v57, %v2068_v37  ;;  %v2077_v48 = vadd.f32 1.0, %v2076_v49  ;;  %3090 = vlog2.f32 %v2082_v23  ;;  %v3089_v54 = vpop.eup %3088 }
 0x2cc   : > { %v6572_v43 = vadd.f32 %v8574_v62, %v8572_v10  ;;  %v2094_v47 = vmul.f32 -0.5, %v8575_v11  ;;  %v6582_v6 = vmul.f32 0.6931472, %v3085_v4  ;;  %vm6584_vm15 = vcmp.lt.f32.partialorder %v2079_v15, 0.0004427343  ;;  %v8580_v10 = vld [vmem:[#allocation220_spill] sm:$0xff] }
 0x2cd   : > { %v8577_v35 = vmov 0  ;;  %v8581_v53 = vmax.f32 %v8580_v10, 0.0  ;;  %v8583_v18 = vsel %vm6174_vm1, %v6099_v44, %v8582_v59  ;;  %v2135_v37 = vsub.f32 %v6549_v39, %v8565_v22  ;;  %v8584_v62 = vld [vmem:[#allocation221_spill] sm:$0xff]  ;;  %v8589_v22 = vld [vmem:[#allocation248_spill] sm:$0xff] }
 0x2ce   : > { %8576 = vst [vmem:[#allocation258_spill] sm:$0xff] %v6582_v6  ;;  %v8578_v35 = vsel %vm6584_vm15, 4294967295, %v8577_v35  ;;  %v6599_v49 = vmul.f32 0.6931472, %v3087_v56  ;;  %v2086_v23 = vadd.f32 1.0, %v2085_v25  ;;  %v2091_v4 = vadd.f32 1.0, %v8575_v11 }
 0x2cf   : > { %8579 = vst [vmem:[#allocation217_spill] sm:$0xff] %v8578_v35  ;;  %v6595_v57 = vadd.f32 %v8583_v18, %v8581_v53  ;;  %v2088_v15 = vand.u32 2147483647, %v8562_v2  ;;  %v8585_v19 = vmax.f32 %v8584_v62, 0.0  ;;  %vm8587_vm0 = vnez %v8586_v63  ;;  %v8590_v59 = vld [vmem:[#allocation249_spill] sm:$0xff]  ;;  %v8598_v6 = vld [vmem:[#allocation223_spill] sm:$0xff] }
 0x2d0   : > { %v8588_v7 = vsel %vm8587_vm0, %v6106_v0, %v6245_v55  ;;  %v2136_v53 = vsub.f32 %v6572_v43, %v8571_v34  ;;  %v2165_v56 = vmul.f32 %v2133_v5, %v8589_v22  ;;  %v2166_v25 = vmul.f32 %v2134_v46, %v8590_v59  ;;  %v8600_v5 = vld [vmem:[#allocation259_spill] sm:$0xff]  ;;  %v8612_v55 = vld [vmem:[#allocation225_spill] sm:$0xff] }
 0x2d1   : > { %v6610_v44 = vadd.f32 %v8588_v7, %v8585_v19  ;;  %v6620_v21 = vmul.f32 0.6931472, %v3089_v54  ;;  %v6623_v63 = vmul.f32 %v8549_v52, %v2077_v48  ;;  %v2095_v0 = vadd.f32 1.0, %v2094_v47  ;;  %v8593_v19 = vld [vmem:[#allocation222_spill] sm:$0xff]  ;;  %v3091_v47 = vpop.eup %3090 }
 0x2d2   : > { %v8594_v34 = vmax.f32 %v8593_v19, 0.0  ;;  %v8596_v46 = vsel %vm6186_vm4, %v6117_v42, %v6251_v20  ;;  %v2137_v54 = vsub.f32 %v6595_v57, %v8580_v10  ;;  %v8597_v52 = vld [vmem:[#allocation250_spill] sm:$0xff]  ;;  %v6642_v18 = vmul.f32 %v8562_v2, %v2086_v23  ;;  %v8605_v23 = vld [vmem:[#allocation151_spill] sm:$0xff] }
 0x2d3   : > { %8591 = vst [vmem:[#allocation260_spill] sm:$0xff] %v6620_v21  ;;  %v2167_v48 = vmul.f32 %v2135_v37, %v8597_v52  ;;  %3092 = vlog2.f32 %v2091_v4  ;;  %v8599_v12 = vmax.f32 %v8598_v6, 0.0  ;;  %v8601_v42 = vld [vmem:[#allocation270_spill] sm:$0xff]  ;;  %vm6658_vm1 = vcmp.lt.f32.partialorder %v2088_v15, 0.0004427343  ;;  %v8608_v15 = vld [vmem:[#allocation265_spill] sm:$0xff] }
 0x2d4   : > { %8592 = vst [vmem:[#allocation218_spill] sm:$0xff] %v6623_v63  ;;  %v6636_v7 = vadd.f32 %v8596_v46, %v8594_v34  ;;  %v8602_v20 = vsel %vm6194_vm5, %v8600_v5, %v8601_v42  ;;  %v2138_v37 = vsub.f32 %v6610_v44, %v8584_v62  ;;  %v2168_v4 = vmul.f32 %v2136_v53, %v8605_v23  ;;  %v8606_v5 = vld [vmem:[#allocation224_spill] sm:$0xff]  ;;  %v8774_v2 = vld [vmem:[#allocation247_spill] sm:$0xff] }
 0x2d5   : > { %v6652_v34 = vadd.f32 %v8602_v20, %v8599_v12  ;;  %v2197_v45 = vadd.f32 %v2166_v25, %v2165_v56  ;;  %v6670_v46 = vmul.f32 %v8575_v11, %v2095_v0  ;;  %v8607_v42 = vmax.f32 %v8606_v5, 0.0  ;;  %v8611_v25 = vld [vmem:[#allocation152_spill] sm:$0xff] }
 0x2d6   : > { %vm8609_vm4 = vnez %v8608_v15  ;;  %v2232_v62 = vadd.f32 %v8590_v59, %v8589_v22  ;;  %v6683_v53 = vmul.f32 0.6931472, %v3091_v47  ;;  %v2139_v56 = vsub.f32 %v6636_v7, %v8593_v19  ;;  %v8617_v22 = vld [vmem:[#allocation272_spill] sm:$0xff] }
 0x2d7   : > { %v8610_v20 = vsel %vm8609_vm4, %v6150_v3, %v6272_v26  ;;  %v2169_v0 = vmul.f32 %v2137_v54, %v8611_v25  ;;  %v2198_v12 = vadd.f32 %v2197_v45, %v2167_v48  ;;  %v8613_v21 = vmax.f32 %v8612_v55, 0.0 }
 0x2d8   : > { %v6679_v10 = vadd.f32 %v8610_v20, %v8607_v42  ;;  %v8614_v3 = vsel %vm6217_vm10, %v6155_v60, %v6300_v61  ;;  %v8615_v42 = vld [vmem:[#allocation226_spill] sm:$0xff]  ;;  %v8618_v59 = vsel %vm6221_vm6, %v6183_v32, %v8617_v22  ;;  %v2140_v54 = vsub.f32 %v6652_v34, %v8598_v6  ;;  %v8620_v60 = vld [vmem:[#allocation180_spill] sm:$0xff]  ;;  %v8626_v22 = vld [vmem:[#allocation273_spill] sm:$0xff] }
 0x2d9   : > { %v6695_v26 = vadd.f32 %v8614_v3, %v8613_v21  ;;  %v8616_v15 = vmax.f32 %v8615_v42, 0.0  ;;  %v2233_v48 = vadd.f32 %v2232_v62, %v8597_v52  ;;  %v2170_v47 = vmul.f32 %v2138_v37, %v8619_v29  ;;  %v8621_v21 = vld [vmem:[#allocation181_spill] sm:$0xff]  ;;  %v3093_v13 = vpop.eup %3092  ;;  %v8622_v3 = vld [vmem:[#allocation227_spill] sm:$0xff]  ;;  %v8628_v52 = vld [vmem:[#allocation228_spill] sm:$0xff] }
 0x2da   : > { %v2199_v45 = vadd.f32 %v2198_v12, %v2168_v4  ;;  %v2267_v61 = vmul.f32 %v6517_v38, %v8620_v60  ;;  %v2268_v20 = vmul.f32 %v6526_v8, %v8621_v21  ;;  %v8623_v63 = vmax.f32 %v8622_v3, 0.0  ;;  %v8630_v37 = vld [vmem:[#allocation276_spill] sm:$0xff]  ;;  %v8632_v32 = vld [vmem:[#allocation229_spill] sm:$0xff] }
 0x2db   : > { %v6704_v19 = vadd.f32 %v8618_v59, %v8616_v15  ;;  %v8625_v15 = vld [vmem:[#allocation264_spill] sm:$0xff]  ;;  %v8629_v62 = vmax.f32 %v8628_v52, 0.0  ;;  %v8631_v38 = vsel %vm6253_vm12, %v6207_v1, %v8630_v37  ;;  %v2141_v8 = vsub.f32 %v6679_v10, %v8606_v5  ;;  %v8637_v1 = vld [vmem:[#allocation182_spill] sm:$0xff] }
 0x2dc   : > { %v8627_v59 = vsel %vm6225_vm3, %v8625_v15, %v8626_v22  ;;  %v2234_v12 = vadd.f32 %v2233_v48, %v8605_v23  ;;  %v8633_v35 = vmax.f32 %v8632_v32, 0.0  ;;  %vm8634_vm3 = vnez %v8490_v24  ;;  %v8638_v37 = vld [vmem:[#allocation230_spill] sm:$0xff]  ;;  %v8642_v24 = vld [vmem:[#allocation155_spill] sm:$0xff] }
 0x2dd   : > { %v6721_v6 = vadd.f32 %v8627_v59, %v8623_v63  ;;  %v6730_v4 = vadd.f32 %v8631_v38, %v8629_v62  ;;  %v8635_v63 = vsel %vm8634_vm3, %v6214_v9, %v6325_v28  ;;  %v2171_v22 = vmul.f32 %v2139_v56, %v8636_v30 }
 0x2de   : > { %v6742_v15 = vadd.f32 %v8635_v63, %v8633_v35  ;;  %v2200_v59 = vadd.f32 %v2199_v45, %v2169_v0  ;;  %v2269_v62 = vmul.f32 %v6549_v39, %v8637_v1  ;;  %v8639_v38 = vmax.f32 %v8638_v37, 0.0  ;;  %v8643_v0 = vld [vmem:[#allocation183_spill] sm:$0xff] }
 0x2df   : > { %vm8640_vm12 = vnez %v8494_v33  ;;  %v2142_v9 = vsub.f32 %v6695_v26, %v8612_v55  ;;  %v2172_v28 = vmul.f32 %v2140_v54, %v8642_v24  ;;  %v2235_v35 = vadd.f32 %v2234_v12, %v8611_v25  ;;  %v8644_v45 = vld [vmem:[#allocation231_spill] sm:$0xff]  ;;  %v8651_v54 = vld [vmem:[#allocation156_spill] sm:$0xff] }
 0x2e0   : > { %v8641_v23 = vsel %vm8640_vm12, %v6230_v51, %v6341_v14  ;;  %v2201_v56 = vadd.f32 %v2200_v59, %v2170_v47  ;;  %v2270_v39 = vmul.f32 %v6572_v43, %v8643_v0  ;;  %v2299_v48 = vadd.f32 %v2268_v20, %v2267_v61  ;;  %v8646_v51 = vld [vmem:[#allocation271_spill] sm:$0xff]  ;;  %v8648_v14 = vld [vmem:[#allocation269_spill] sm:$0xff]  ;;  %v8652_v20 = vld [vmem:[#allocation184_spill] sm:$0xff] }
 0x2e1   : > { %v6754_v5 = vadd.f32 %v8641_v23, %v8639_v38  ;;  %v2334_v33 = vadd.f32 %v8621_v21, %v8620_v60  ;;  %v8645_v63 = vmax.f32 %v8644_v45, 0.0  ;;  %vm8647_vm6 = vnez %v8646_v51  ;;  %v8649_v38 = vld [vmem:[#allocation278_spill] sm:$0xff] }
 0x2e2   : > { %v8650_v23 = vsel %vm8647_vm6, %v8648_v14, %v8649_v38  ;;  %v2143_v25 = vsub.f32 %v6704_v19, %v8615_v42  ;;  %v2173_v47 = vmul.f32 %v2141_v8, %v8651_v54  ;;  %v2236_v43 = vadd.f32 %v2235_v35, %v8619_v29  ;;  %v8653_v42 = vld [vmem:[#allocation157_spill] sm:$0xff] }
 0x2e3   : > { %v6771_v55 = vadd.f32 %v8650_v23, %v8645_v63  ;;  %v2202_v61 = vadd.f32 %v2201_v56, %v2171_v22  ;;  %v2271_v60 = vmul.f32 %v6595_v57, %v8652_v20  ;;  %v2300_v21 = vadd.f32 %v2299_v48, %v2269_v62  ;;  %v8654_v22 = vld [vmem:[#allocation185_spill] sm:$0xff]  ;;  %v8655_v48 = vld [vmem:[#allocation158_spill] sm:$0xff] }
 0x2e4   : > { %v2335_v12 = vadd.f32 %v2334_v33, %v8637_v1  ;;  %v2090_v59 = vsel %vm6658_vm1, %v6642_v18, %v6683_v53  ;;  %v2144_v63 = vsub.f32 %v6721_v6, %v8622_v3  ;;  %v2174_v51 = vmul.f32 %v2142_v9, %v8653_v42  ;;  %v8656_v9 = vld [vmem:[#allocation186_spill] sm:$0xff] }
 0x2e5   : > { %v2237_v8 = vadd.f32 %v2236_v43, %v8636_v30  ;;  %v2203_v29 = vadd.f32 %v2202_v61, %v2172_v28  ;;  %v2272_v35 = vmul.f32 %v6610_v44, %v8654_v22  ;;  %v2301_v57 = vadd.f32 %v2300_v21, %v2270_v39  ;;  %v8657_v44 = vld [vmem:[#allocation232_spill] sm:$0xff]  ;;  %v8659_v23 = vld [vmem:[#allocation274_spill] sm:$0xff]  ;;  %v8668_v21 = vld [vmem:[#allocation187_spill] sm:$0xff] }
 0x2e6   : > { %v2336_v62 = vadd.f32 %v2335_v12, %v8643_v0  ;;  %v6791_v1 = vmul.f32 0.6931472, %v3093_v13  ;;  %v2145_v56 = vsub.f32 %v6730_v4, %v8628_v52  ;;  %v2175_v33 = vmul.f32 %v2143_v25, %v8655_v48  ;;  %v8661_v13 = vld [vmem:[#allocation275_spill] sm:$0xff] }
 0x2e7   : > { %v2238_v3 = vadd.f32 %v2237_v8, %v8642_v24  ;;  %v2204_v14 = vadd.f32 %v2203_v29, %v2173_v47  ;;  %v2273_v30 = vmul.f32 %v6636_v7, %v8656_v9  ;;  %v2302_v28 = vadd.f32 %v2301_v57, %v2271_v60  ;;  %v8662_v0 = vld [vmem:[#allocation279_spill] sm:$0xff]  ;;  %v8669_v57 = vld [vmem:[#allocation233_spill] sm:$0xff] }
 0x2e8   : > { %v2337_v38 = vadd.f32 %v2336_v62, %v8652_v20  ;;  %v8658_v39 = vmax.f32 %v8657_v44, 0.0  ;;  %vm8660_vm10 = vnez %v8659_v23  ;;  %v2146_v52 = vsub.f32 %v6742_v15, %v8632_v32  ;;  %v8664_v24 = vld [vmem:[#allocation159_spill] sm:$0xff]  ;;  %v8671_v32 = vld [vmem:[#allocation277_spill] sm:$0xff]  ;;  %v8676_v23 = vld [vmem:[#allocation160_spill] sm:$0xff] }
 0x2e9   : > { %v8663_v43 = vsel %vm8660_vm10, %v8661_v13, %v8662_v0  ;;  %v2176_v25 = vmul.f32 %v2144_v63, %v8664_v24  ;;  %v2239_v47 = vadd.f32 %v2238_v3, %v8651_v54  ;;  %v8665_v7 = vand.u32 2147483647, %v8575_v11  ;;  %v8673_v63 = vld [vmem:[#allocation280_spill] sm:$0xff]  ;;  %v8678_v13 = vld [vmem:[#allocation234_spill] sm:$0xff]  ;;  %v8778_v20 = vld [vmem:[#allocation205_spill] sm:$0xff] }
 0x2ea   : > { %v6807_v61 = vadd.f32 %v8663_v43, %v8658_v39  ;;  %v2205_v60 = vadd.f32 %v2204_v14, %v2174_v51  ;;  %v2274_v12 = vmul.f32 %v6652_v34, %v8668_v21  ;;  %v2303_v8 = vadd.f32 %v2302_v28, %v2272_v35  ;;  %v8674_v39 = vld [vmem:[#allocation281_spill] sm:$0xff]  ;;  %v8677_v35 = vld [vmem:[#allocation188_spill] sm:$0xff]  ;;  %v8680_v43 = vld [vmem:[#allocation282_spill] sm:$0xff] }
 0x2eb   : > { %vm6815_vm5 = vcmp.lt.f32.partialorder %v8665_v7, 0.0004427343  ;;  %v2338_v29 = vadd.f32 %v2337_v38, %v8654_v22  ;;  %v8670_v62 = vmax.f32 %v8669_v57, 0.0  ;;  %vm8672_vm0 = vnez %v8671_v32  ;;  %v8682_v7 = vld [vmem:[#allocation284_spill] sm:$0xff] }
 0x2ec   : > { %v8675_v54 = vsel %vm8672_vm0, %v8673_v63, %v8674_v39  ;;  %v2147_v11 = vsub.f32 %v6754_v5, %v8638_v37  ;;  %v2177_v51 = vmul.f32 %v2145_v56, %v8676_v23  ;;  %v2240_v14 = vadd.f32 %v2239_v47, %v8653_v42  ;;  %v8685_v42 = vld [vmem:[#allocation161_spill] sm:$0xff] }
 0x2ed   : > { %v6829_v3 = vadd.f32 %v8675_v54, %v8670_v62  ;;  %v2206_v34 = vadd.f32 %v2205_v60, %v2175_v33  ;;  %v2275_v22 = vmul.f32 %v6679_v10, %v8677_v35  ;;  %v2304_v28 = vadd.f32 %v2303_v8, %v2273_v30  ;;  %v8683_v62 = vld [vmem:[#allocation283_spill] sm:$0xff]  ;;  %v8686_v30 = vld [vmem:[#allocation189_spill] sm:$0xff]  ;;  %v8691_v54 = vld [vmem:[#allocation286_spill] sm:$0xff] }
 0x2ee   : > { %v2339_v38 = vadd.f32 %v2338_v29, %v8656_v9  ;;  %v8679_v0 = vmax.f32 %v8678_v13, 0.0  ;;  %vm8681_vm4 = vnez %v8680_v43  ;;  %v2148_v37 = vsub.f32 %v6771_v55, %v8644_v45  ;;  %v8687_v8 = vld [vmem:[#allocation235_spill] sm:$0xff]  ;;  %v8689_v39 = vld [vmem:[#allocation285_spill] sm:$0xff] }
 0x2ef   : > { %v8684_v32 = vsel %vm8681_vm4, %v8682_v7, %v8683_v62  ;;  %v2178_v56 = vmul.f32 %v2146_v52, %v8685_v42  ;;  %v2241_v33 = vadd.f32 %v2240_v14, %v8655_v48  ;;  %v2207_v10 = vadd.f32 %v2206_v34, %v2176_v25  ;;  %v8694_v48 = vld [vmem:[#allocation162_spill] sm:$0xff]  ;;  %v8698_v62 = vld [vmem:[#allocation288_spill] sm:$0xff] }
 0x2f0   : > { %v6845_v63 = vadd.f32 %v8684_v32, %v8679_v0  ;;  %v2276_v9 = vmul.f32 %v6695_v26, %v8686_v30  ;;  %v2305_v47 = vadd.f32 %v2304_v28, %v2274_v12  ;;  %v2340_v60 = vadd.f32 %v2339_v38, %v8668_v21  ;;  %v8692_v0 = vld [vmem:[#allocation287_spill] sm:$0xff]  ;;  %v8695_v12 = vld [vmem:[#allocation190_spill] sm:$0xff]  ;;  %v8696_v28 = vld [vmem:[#allocation236_spill] sm:$0xff] }
 0x2f1   : > { %v8688_v29 = vmax.f32 %v8687_v8, 0.0  ;;  %vm8690_vm3 = vnez %v8689_v39  ;;  %v2149_v45 = vsub.f32 %v6807_v61, %v8657_v44  ;;  %v2179_v52 = vmul.f32 %v2147_v11, %v8694_v48  ;;  %v8700_v32 = vld [vmem:[#allocation289_spill] sm:$0xff] }
 0x2f2   : > { %v8693_v43 = vsel %vm8690_vm3, %v8691_v54, %v8692_v0  ;;  %v2242_v25 = vadd.f32 %v2241_v33, %v8664_v24  ;;  %v2208_v26 = vadd.f32 %v2207_v10, %v2177_v51  ;;  %v2277_v21 = vmul.f32 %v6704_v19, %v8695_v12  ;;  %v8703_v24 = vld [vmem:[#allocation163_spill] sm:$0xff] }
 0x2f3   : > { %v6861_v7 = vadd.f32 %v8693_v43, %v8688_v29  ;;  %v2306_v14 = vadd.f32 %v2305_v47, %v2275_v22  ;;  %v2341_v34 = vadd.f32 %v2340_v60, %v8677_v35  ;;  %v8697_v38 = vmax.f32 %v8696_v28, 0.0  ;;  %v8701_v29 = vld [vmem:[#allocation290_spill] sm:$0xff]  ;;  %v8704_v22 = vld [vmem:[#allocation191_spill] sm:$0xff]  ;;  %v8705_v47 = vld [vmem:[#allocation237_spill] sm:$0xff] }
 0x2f4   : > { %vm8699_vm12 = vnez %v8698_v62  ;;  %v2150_v44 = vsub.f32 %v6829_v3, %v8669_v57  ;;  %v2180_v11 = vmul.f32 %v2148_v37, %v8703_v24  ;;  %v2243_v51 = vadd.f32 %v2242_v25, %v8676_v23  ;;  %v8708_v0 = vld [vmem:[#allocation291_spill] sm:$0xff]  ;;  %v8709_v43 = vld [vmem:[#allocation292_spill] sm:$0xff] }
 0x2f5   : > { %v8702_v39 = vsel %vm8699_vm12, %v8700_v32, %v8701_v29  ;;  %v2209_v19 = vadd.f32 %v2208_v26, %v2178_v56  ;;  %v2278_v35 = vmul.f32 %v6721_v6, %v8704_v22  ;;  %v2307_v33 = vadd.f32 %v2306_v14, %v2276_v9  ;;  %v8711_v23 = vld [vmem:[#allocation164_spill] sm:$0xff] }
 0x2f6   : > { %v6877_v54 = vadd.f32 %v8702_v39, %v8697_v38  ;;  %v2342_v10 = vadd.f32 %v2341_v34, %v8686_v30  ;;  %v8706_v60 = vmax.f32 %v8705_v47, 0.0  ;;  %vm8707_vm6 = vnez %v8529_v31  ;;  %v8712_v9 = vld [vmem:[#allocation192_spill] sm:$0xff] }
 0x2f7   : > { %v8710_v38 = vsel %vm8707_vm6, %v8708_v0, %v8709_v43  ;;  %v2151_v57 = vsub.f32 %v6845_v63, %v8678_v13  ;;  %v2181_v37 = vmul.f32 %v2149_v45, %v8711_v23  ;;  %v2244_v56 = vadd.f32 %v2243_v51, %v8685_v42  ;;  %v8713_v13 = vld [vmem:[#allocation165_spill] sm:$0xff]  ;;  %v8718_v51 = vld [vmem:[#allocation254_spill] sm:$0xff]  ;;  %v8722_v0 = vld [vmem:[#allocation239_spill] sm:$0xff] }
 0x2f8   : > { %v6893_v62 = vadd.f32 %v8710_v38, %v8706_v60  ;;  %v2210_v6 = vadd.f32 %v2209_v19, %v2179_v52  ;;  %v2279_v30 = vmul.f32 %v6730_v4, %v8712_v9  ;;  %v2308_v25 = vadd.f32 %v2307_v33, %v2277_v21  ;;  %v8714_v52 = vld [vmem:[#allocation193_spill] sm:$0xff]  ;;  %v8725_v38 = vld [vmem:[#allocation294_spill] sm:$0xff] }
 0x2f9   : > { %v2343_v26 = vadd.f32 %v2342_v10, %v8695_v12  ;;  %v2099_v31 = vsel %vm6815_vm5, %v6670_v46, %v6791_v1  ;;  %v2152_v14 = vsub.f32 %v6861_v7, %v8687_v8  ;;  %v2182_v34 = vmul.f32 %v2150_v44, %v8713_v13  ;;  %v8715_v12 = vld [vmem:[#allocation238_spill] sm:$0xff] }
 0x2fa   : > { %v2245_v45 = vadd.f32 %v2244_v56, %v8694_v48  ;;  %v2211_v42 = vadd.f32 %v2210_v6, %v2180_v11  ;;  %v2280_v32 = vmul.f32 %v6742_v15, %v8714_v52  ;;  %v2309_v4 = vadd.f32 %v2308_v25, %v2278_v35  ;;  %v8720_v48 = vld [vmem:[#allocation166_spill] sm:$0xff] }
 0x2fb   : > { %v2344_v21 = vadd.f32 %v2343_v26, %v8704_v22  ;;  %v8716_v29 = vmax.f32 %v8715_v12, 0.0  ;;  %v8719_v19 = vsel %vm6437_vm8, %v6449_v41, %v8718_v51  ;;  %v2153_v8 = vsub.f32 %v6877_v54, %v8696_v28  ;;  %v8721_v35 = vld [vmem:[#allocation194_spill] sm:$0xff]  ;;  %v8724_v41 = vld [vmem:[#allocation255_spill] sm:$0xff] }
 0x2fc   : > { %v2183_v44 = vmul.f32 %v2151_v57, %v8720_v48  ;;  %v2246_v11 = vadd.f32 %v2245_v45, %v8703_v24  ;;  %v2212_v15 = vadd.f32 %v2211_v42, %v2181_v37  ;;  %v2281_v22 = vmul.f32 %v6754_v5, %v8721_v35  ;;  %v8727_v24 = vld [vmem:[#allocation167_spill] sm:$0xff] }
 0x2fd   : > { %v6920_v33 = vadd.f32 %v8719_v19, %v8716_v29  ;;  %v2310_v10 = vadd.f32 %v2309_v4, %v2279_v30  ;;  %v2345_v60 = vadd.f32 %v2344_v21, %v8712_v9  ;;  %v8723_v43 = vmax.f32 %v8722_v0, 0.0  ;;  %v8728_v30 = vld [vmem:[#allocation195_spill] sm:$0xff]  ;;  %v8733_v21 = vld [vmem:[#allocation257_spill] sm:$0xff] }
 0x2fe   : > { %v8726_v56 = vsel %vm6451_vm7, %v8724_v41, %v8725_v38  ;;  %v2154_v28 = vsub.f32 %v6893_v62, %v8705_v47  ;;  %v2184_v57 = vmul.f32 %v2152_v14, %v8727_v24  ;;  %v2247_v37 = vadd.f32 %v2246_v11, %v8711_v23  ;;  %v8732_v4 = vld [vmem:[#allocation295_spill] sm:$0xff]  ;;  %v8735_v23 = vld [vmem:[#allocation168_spill] sm:$0xff]  ;;  %v8737_v11 = vld [vmem:[#allocation241_spill] sm:$0xff] }
 0x2ff   : > { %v6936_v6 = vadd.f32 %v8726_v56, %v8723_v43  ;;  %v2213_v5 = vadd.f32 %v2212_v15, %v2182_v34  ;;  %v2282_v9 = vmul.f32 %v6771_v55, %v8728_v30  ;;  %v2311_v25 = vadd.f32 %v2310_v10, %v2280_v32  ;;  %v8736_v32 = vld [vmem:[#allocation196_spill] sm:$0xff]  ;;  %v8741_v43 = vld [vmem:[#allocation297_spill] sm:$0xff] }
 0x300   : > { %v2346_v26 = vadd.f32 %v2345_v60, %v8714_v52  ;;  %v8730_v45 = vmax.f32 %v8729_v36, 0.0  ;;  %v8734_v29 = vsel %vm6473_vm2, %v8732_v4, %v8733_v21  ;;  %v2155_v47 = vsub.f32 %v6920_v33, %v8715_v12  ;;  %v8740_v60 = vld [vmem:[#allocation298_spill] sm:$0xff] }
 0x301   : > { %v2185_v14 = vmul.f32 %v2153_v8, %v8735_v23  ;;  %v2248_v34 = vadd.f32 %v2247_v37, %v8713_v13  ;;  %v2214_v55 = vadd.f32 %v2213_v5, %v2183_v44  ;;  %v2283_v52 = vmul.f32 %v6807_v61, %v8736_v32  ;;  %v8743_v13 = vld [vmem:[#allocation169_spill] sm:$0xff]  ;;  %v8745_v5 = vld [vmem:[#allocation242_spill] sm:$0xff] }
 0x302   : > { %v6952_v39 = vadd.f32 %v8734_v29, %v8730_v45  ;;  %v2312_v51 = vadd.f32 %v2311_v25, %v2281_v22  ;;  %v2347_v19 = vadd.f32 %v2346_v26, %v8721_v35  ;;  %v8738_v15 = vmax.f32 %v8737_v11, 0.0  ;;  %v8744_v22 = vld [vmem:[#allocation197_spill] sm:$0xff] }
 0x303   : > { %v8742_v41 = vsel %vm6483_vm11, %v8740_v60, %v8741_v43  ;;  %v2156_v12 = vsub.f32 %v6936_v6, %v8722_v0  ;;  %v2186_v8 = vmul.f32 %v2154_v28, %v8743_v13  ;;  %v2249_v44 = vadd.f32 %v2248_v34, %v8720_v48  ;;  %v8748_v48 = vld [vmem:[#allocation170_spill] sm:$0xff] }
 0x304   : > { %v6968_v38 = vadd.f32 %v8742_v41, %v8738_v15  ;;  %v2215_v61 = vadd.f32 %v2214_v55, %v2184_v57  ;;  %v2284_v35 = vmul.f32 %v6829_v3, %v8744_v22  ;;  %v2313_v56 = vadd.f32 %v2312_v51, %v2282_v9  ;;  %v8749_v9 = vld [vmem:[#allocation198_spill] sm:$0xff]  ;;  %v8756_v55 = vld [vmem:[#allocation199_spill] sm:$0xff]  ;;  %v8761_v41 = vld [vmem:[#allocation200_spill] sm:$0xff] }
 0x305   : > { %v2348_v37 = vadd.f32 %v2347_v19, %v8728_v30  ;;  %v8746_v25 = vmax.f32 %v8745_v5, 0.0  ;;  %v8747_v26 = vsel %vm6495_vm9, %v6529_v50, %v6563_v27  ;;  %v2157_v0 = vsub.f32 %v6952_v39, %v8729_v36  ;;  %v8752_v50 = vld [vmem:[#allocation216_spill] sm:$0xff]  ;;  %v8753_v27 = vld [vmem:[#allocation258_spill] sm:$0xff] }
 0x306   : > { %v2187_v28 = vmul.f32 %v2155_v47, %v8748_v48  ;;  %v2250_v57 = vadd.f32 %v2249_v44, %v8727_v24  ;;  %v2216_v3 = vadd.f32 %v2215_v61, %v2185_v14  ;;  %v2285_v30 = vmul.f32 %v6845_v63, %v8749_v9  ;;  %v8755_v24 = vld [vmem:[#allocation171_spill] sm:$0xff] }
 0x307   : > { %v6984_v45 = vadd.f32 %v8747_v26, %v8746_v25  ;;  %v2314_v42 = vadd.f32 %v2313_v56, %v2283_v52  ;;  %v2349_v4 = vadd.f32 %v2348_v37, %v8736_v32  ;;  %v8751_v21 = vmax.f32 %v8750_v40, 0.0  ;;  %v8769_v26 = vld [vmem:[#allocation201_spill] sm:$0xff] }
 0x308   : > { %v8754_v29 = vsel %vm6537_vm13, %v8752_v50, %v8753_v27  ;;  %v2158_v36 = vsub.f32 %v6968_v38, %v8737_v11  ;;  %v2188_v47 = vmul.f32 %v2156_v12, %v8755_v24  ;;  %v2251_v14 = vadd.f32 %v2250_v57, %v8735_v23  ;;  %v8760_v23 = vld [vmem:[#allocation172_spill] sm:$0xff] }
 0x309   : > { %v7000_v34 = vadd.f32 %v8754_v29, %v8751_v21  ;;  %v2217_v63 = vadd.f32 %v2216_v3, %v2186_v8  ;;  %v2286_v32 = vmul.f32 %v6861_v7, %v8756_v55  ;;  %v2315_v52 = vadd.f32 %v2314_v42, %v2284_v35  ;;  %v8770_v3 = vld [vmem:[#allocation246_spill] sm:$0xff] }
 0x30a   : > { %v2350_v51 = vadd.f32 %v2349_v4, %v8744_v22  ;;  %v8758_v19 = vmax.f32 %v8757_v16, 0.0  ;;  %v8759_v15 = vsel %vm6558_vm14, %v6579_v58, %v6599_v49  ;;  %v2159_v11 = vsub.f32 %v6984_v45, %v8745_v5  ;;  %v8765_v58 = vld [vmem:[#allocation218_spill] sm:$0xff]  ;;  %v8766_v49 = vld [vmem:[#allocation260_spill] sm:$0xff] }
 0x30b   : > { %v2189_v60 = vmul.f32 %v2157_v0, %v8760_v23  ;;  %v2252_v43 = vadd.f32 %v2251_v14, %v8743_v13  ;;  %v2218_v7 = vadd.f32 %v2217_v63, %v2187_v28  ;;  %v2287_v12 = vmul.f32 %v6877_v54, %v8761_v41  ;;  %v8768_v13 = vld [vmem:[#allocation173_spill] sm:$0xff]  ;;  %v8773_v21 = vld [vmem:[#allocation202_spill] sm:$0xff]  ;;  %v8777_v14 = vld [vmem:[#allocation203_spill] sm:$0xff] }
 0x30c   : > { %v7016_v10 = vadd.f32 %v8759_v15, %v8758_v19  ;;  %v2316_v8 = vadd.f32 %v2315_v52, %v2285_v30  ;;  %v2351_v44 = vadd.f32 %v2350_v51, %v8749_v9  ;;  %v8763_v61 = vmax.f32 %v8762_v17, 0.0  ;;  %v8779_v52 = vld [vmem:[#allocation209_spill] sm:$0xff]  ;;  %v8782_v15 = vld [vmem:[#allocation204_spill] sm:$0xff] }
 0x30d   : > { %v8767_v35 = vsel %vm6584_vm15, %v8765_v58, %v8766_v49  ;;  %v2160_v37 = vsub.f32 %v7000_v34, %v8750_v40  ;;  %v2190_v5 = vmul.f32 %v2158_v36, %v8768_v13  ;;  %v2253_v25 = vadd.f32 %v2252_v43, %v8748_v48  ;;  %v8772_v48 = vld [vmem:[#allocation174_spill] sm:$0xff]  ;;  %v8787_v58 = vld [vmem:[#allocation177_spill] sm:$0xff] }
 0x30e   : > { %v7032_v56 = vadd.f32 %v8767_v35, %v8763_v61  ;;  %v2219_v54 = vadd.f32 %v2218_v7, %v2188_v47  ;;  %v2288_v0 = vmul.f32 %v6893_v62, %v8769_v26  ;;  %v2317_v28 = vadd.f32 %v2316_v8, %v2286_v32  ;;  %v8784_v43 = vld [vmem:[#allocation210_spill] sm:$0xff] }
 0x30f   : > { %v2352_v57 = vadd.f32 %v2351_v44, %v8756_v55  ;;  %v8771_v9 = vmax.f32 %v8770_v3, 0.0  ;;  %v2161_v42 = vsub.f32 %v7016_v10, %v8757_v16  ;;  %v2191_v4 = vmul.f32 %v2159_v11, %v8772_v48 }
 0x310   : > { %v2254_v40 = vadd.f32 %v2253_v25, %v8755_v24  ;;  %v2220_v62 = vadd.f32 %v2219_v54, %v2189_v60  ;;  %v2289_v50 = vmul.f32 %v6920_v33, %v8773_v21  ;;  %v2318_v27 = vadd.f32 %v2317_v28, %v2287_v12  ;;  %v8783_v60 = vld [vmem:[#allocation206_spill] sm:$0xff]  ;;  %v8786_v12 = vld [vmem:[#allocation251_spill] sm:$0xff]  ;;  %v8792_v25 = vld [vmem:[#allocation252_spill] sm:$0xff] }
 0x311   : > { %v7048_v30 = vadd.f32 %v2090_v59, %v8771_v9  ;;  %v2353_v29 = vadd.f32 %v2352_v57, %v8761_v41  ;;  %v8775_v36 = vmax.f32 %v8774_v2, 0.0  ;;  %v2162_v53 = vsub.f32 %v7032_v56, %v8762_v17  ;;  %v8776_v59 = vld [vmem:[#allocation175_spill] sm:$0xff] }
 0x312   : > { %v2192_v24 = vmul.f32 %v2160_v37, %v8776_v59  ;;  %v2255_v47 = vadd.f32 %v2254_v40, %v8760_v23  ;;  %v2221_v33 = vadd.f32 %v2220_v62, %v2190_v5  ;;  %v2290_v63 = vmul.f32 %v6936_v6, %v8777_v14  ;;  %v8789_v37 = vld [vmem:[#allocation207_spill] sm:$0xff]  ;;  %v8798_v62 = vld [vmem:[#allocation253_spill] sm:$0xff] }
 0x313   : > { %v7064_v18 = vadd.f32 %v2099_v31, %v8775_v36  ;;  %v2319_v55 = vadd.f32 %v2318_v27, %v2288_v0  ;;  %v2354_v32 = vadd.f32 %v2353_v29, %v8769_v26  ;;  %vm8780_vm11 = vcmp.lt.s32.totalorder %v8779_v52, 700  ;;  %v8781_v31 = vld [vmem:[#allocation176_spill] sm:$0xff] }
 0x314   : > { %v1645_v46 = vsel %vm8780_vm11, %v8778_v20, 0.0  ;;  %v2163_v1 = vsub.f32 %v7048_v30, %v8770_v3  ;;  %v2193_v51 = vmul.f32 %v2161_v42, %v8781_v31  ;;  %v2256_v16 = vadd.f32 %v2255_v47, %v8768_v13  ;;  %v8790_v13 = vld [vmem:[#allocation211_spill] sm:$0xff]  ;;  %v8793_v3 = vld [vmem:[#allocation178_spill] sm:$0xff] }
 0x315   : > { %v2222_v19 = vadd.f32 %v2221_v33, %v2191_v4  ;;  %v2291_v11 = vmul.f32 %v6952_v39, %v8782_v15  ;;  %v2320_v23 = vadd.f32 %v2319_v55, %v2289_v50  ;;  %v2355_v6 = vadd.f32 %v2354_v32, %v8773_v21  ;;  %v8796_v4 = vld [vmem:[#allocation212_spill] sm:$0xff]  ;;  %v8803_v20 = vld [vmem:[#allocation214_spill] sm:$0xff] }
 0x316   : > { %vm8785_vm7 = vcmp.lt.s32.totalorder %v8784_v43, 700  ;;  %v2164_v41 = vsub.f32 %v7064_v18, %v8774_v2  ;;  %v2194_v8 = vmul.f32 %v2162_v53, %v8786_v12  ;;  %v2257_v44 = vadd.f32 %v2256_v16, %v8772_v48  ;;  %v8795_v48 = vld [vmem:[#allocation208_spill] sm:$0xff] }
 0x317   : > { %v1646_v7 = vsel %vm8785_vm7, %v8783_v60, 0.0  ;;  %v2223_v17 = vadd.f32 %v2222_v19, %v2192_v24  ;;  %v2292_v61 = vmul.f32 %v6968_v38, %v1645_v46  ;;  %v2321_v22 = vadd.f32 %v2320_v23, %v2290_v63  ;;  %v8801_v24 = vld [vmem:[#allocation213_spill] sm:$0xff] }
 0x318   : > { %v2356_v39 = vadd.f32 %v2355_v6, %v8777_v14  ;;  %v8788_v49 = vand.u32 2147483647, %v8787_v58  ;;  %vm8791_vm9 = vcmp.lt.s32.totalorder %v8790_v13, 700  ;;  %v2195_v54 = vmul.f32 %v2163_v1, %v8792_v25  ;;  %v2132_v1 = vld [vmem:[#allocation2 + $0x10] sm:$0xff] }
 0x319   : > { %v1647_v5 = vsel %vm8791_vm9, %v8789_v37, 0.0  ;;  %v2258_v26 = vadd.f32 %v2257_v44, %v8776_v59  ;;  %v2224_v0 = vadd.f32 %v2223_v17, %v2193_v51  ;;  %v2293_v28 = vmul.f32 %v6984_v45, %v1646_v7  ;;  %v8799_v45 = vld [vmem:[#allocation179_spill] sm:$0xff]  ;;  %v2266_v17 = vld [vmem:[#allocation2 + $0x18] sm:$0xff] }
 0x31a   : > { %v1454_v35 = vsub.f32 1.0, %v8788_v49  ;;  %v2322_v57 = vadd.f32 %v2321_v22, %v2291_v11  ;;  %v2357_v38 = vadd.f32 %v2356_v39, %v8782_v15  ;;  %v8794_v9 = vand.u32 2147483647, %v8793_v3  ;;  %v8805_v15 = vld [vmem:[#allocation215_spill] sm:$0xff] }
 0x31b   : > { %vm8797_vm2 = vcmp.lt.s32.totalorder %v8796_v4, 700  ;;  %v2196_v21 = vmul.f32 %v2164_v41, %v8798_v62  ;;  %v2259_v50 = vadd.f32 %v2258_v26, %v8781_v31  ;;  %v2225_v27 = vadd.f32 %v2224_v0, %v2194_v8  ;;  %v2231_v31 = vld [vmem:[#allocation2] sm:$0xff] }
 0x31c   : > { %v1455_v42 = vsub.f32 1.0, %v8794_v9  ;;  %v1648_v40 = vsel %vm8797_vm2, %v8795_v48, 0.0  ;;  %v2294_v29 = vmul.f32 %v7000_v34, %v1647_v5  ;;  %v2323_v2 = vadd.f32 %v2322_v57, %v2292_v61  ;;  %v2333_v61 = vld [vmem:[#allocation2 + $0x8] sm:$0xff] }
 0x31d   : > { %v2358_v36 = vadd.f32 %v2357_v38, %v1645_v46  ;;  %v8800_v53 = vand.u32 2147483647, %v8799_v45  ;;  %vm8802_vm8 = vcmp.lt.s32.totalorder %v8801_v24, 700  ;;  %v2260_v33 = vadd.f32 %v2259_v50, %v8786_v12 }
 0x31e   : > { %v1649_v47 = vsel %vm8802_vm8, %v1454_v35, 0.0  ;;  %v2226_v14 = vadd.f32 %v2225_v27, %v2195_v54  ;;  %v2295_v63 = vmul.f32 %v7016_v10, %v1648_v40  ;;  %v2324_v55 = vadd.f32 %v2323_v2, %v2293_v28 }
 0x31f   : > { %v1456_v59 = vsub.f32 1.0, %v8800_v53  ;;  %v2359_v32 = vadd.f32 %v2358_v36, %v1646_v7  ;;  %vm8804_vm13 = vcmp.lt.s32.totalorder %v8803_v20, 700  ;;  %v2261_v34 = vadd.f32 %v2260_v33, %v8792_v25 }
 0x320   : > { %v1650_v52 = vsel %vm8804_vm13, %v1455_v42, 0.0  ;;  %v2227_v46 = vadd.f32 %v2226_v14, %v2196_v21  ;;  %v2296_v51 = vmul.f32 %v7032_v56, %v1649_v47  ;;  %v2325_v16 = vadd.f32 %v2324_v55, %v2294_v29 }
 0x321   : > { %v2360_v19 = vadd.f32 %v2359_v32, %v1647_v5  ;;  %vm8806_vm14 = vcmp.lt.s32.totalorder %v8805_v15, 700  ;;  %v2262_v23 = vadd.f32 %v2261_v34, %v8798_v62  ;;  %v2297_v6 = vmul.f32 %v7048_v30, %v1650_v52 }
 0x322   : > { %v1651_v11 = vsel %vm8806_vm14, %v1456_v59, 0.0  ;;  %v2228_v10 = vadd.f32 %v2227_v46, %v2132_v1  ;;  %v2326_v60 = vadd.f32 %v2325_v16, %v2295_v63 }
 0x323   : > { %v2361_v43 = vadd.f32 %v2360_v19, %v1648_v40  ;;  %v2263_v7 = vadd.f32 %v2262_v23, %v2231_v31  ;;  %v2298_v41 = vmul.f32 %v7064_v18, %v1651_v11 }
 0x324   : > { %2229 = vst [vmem:[#allocation2 + $0x10] sm:$0xff] %v2228_v10  ;;  %v2327_v12 = vadd.f32 %v2326_v60, %v2296_v51 }
 0x325   : > { %v2362_v8 = vadd.f32 %v2361_v43, %v1649_v47  ;;  %2264 = vst [vmem:[#allocation2] sm:$0xff] %v2263_v7 }
 0x326   : > { %v2328_v56 = vadd.f32 %v2327_v12, %v2297_v6 }
 0x327   : > { %v2363_v44 = vadd.f32 %v2362_v8, %v1650_v52 }
 0x328   : > { %v2329_v22 = vadd.f32 %v2328_v56, %v2298_v41 }
 0x329   : > { %v2364_v39 = vadd.f32 %v2363_v44, %v1651_v11 }
 0x32a   : > { %v2330_v58 = vadd.f32 %v2329_v22, %v2266_v17 }
 0x32b   : > { %v2365_v49 = vadd.f32 %v2364_v39, %v2333_v61 }
 0x32c   : > { %2331 = vst [vmem:[#allocation2 + $0x18] sm:$0xff] %v2330_v58 }
 0x32d   : > { %2366 = vst [vmem:[#allocation2 + $0x8] sm:$0xff] %v2365_v49 }
 0x32e PF: > { %p2535_p0 = scmp.ne.s32.totalorder %s3282_s15, 1 }
 0x330   : > { %2370 = sbr.rel (%p2535_p0) target bundleno = 826 (0x33a), region = 52 }
 0x335   : > { %v2371_v30 = vld [vmem:[#allocation2 + $0x10] sm:$0xff]  ;;  %v2372_v18 = vld [vmem:[#allocation2] sm:$0xff]  ;;  %v2373_v35 = vld [vmem:[#allocation2 + $0x18] sm:$0xff] }
 0x336   : > { %2375 = vst [vmem:[%s3543_s24] sm:$0xff] %v2371_v30  ;;  %v2374_v37 = vld [vmem:[#allocation2 + $0x8] sm:$0xff] }
 0x337   : > { %2376 = vst [vmem:[%s3543_s24 + $0x8] sm:$0xff] %v2372_v18 }
 0x338   : > { %2377 = vst [vmem:[%s3543_s24 + $0x10] sm:$0xff] %v2373_v35 }
 0x339   : > { %2378 = vst [vmem:[%s3543_s24 + $0x18] sm:$0xff] %v2374_v37 }
 0x33a PF: > { %s2543_s4 = sshll.u32 %s3286_s16, 5  ;;  %s2392_s28 = sshll.u32 %s3543_s24, 4  ;;  %s2393_s28 = int_to_ptr.vmem [resolvable:$true] %s2392_s28 }
 0x33b   : > { %s2391_s18 = scalar_lea.hbm %s7185_s2, %s2543_s4  ;;  %s2380_s21 = scalar_lea.sflag [#allocation5], %s253_s30 }
 0x33c   : > { %s2394_s6 = sshll.u32 %s2391_s18, 4  ;;  %s3192_s16 = scalar_lea.hbm %s7185_s2, 64  ;;  %s2395_s6 = int_to_ptr.hbm [resolvable:$true] %s2394_s6 }
 0x33d   : > { %s3186_s25 = sshra.s32 %s2395_s6, 4  ;;  %s3187_s25 = int_to_ptr.hbm [resolvable:$true] %s3186_s25 }
 0x33e   : > { %s3188_s29 = scalar_lea.hbm %s3187_s25, 32  ;;  %p3193_p8 = scmp.lt.s32.totalorder %s3187_s25, %s7185_s2 }
 0x33f   : > { %p3189_p1 = scmp.ne.s32.totalorder %s3187_s25, %s3188_s29  ;;  %p3194_p10 = scmp.lt.s32.totalorder %s3192_s16, %s3188_s29 }
 0x341   : > { %p3190_p4 = pnand %p3189_p1, %p3428_p2  ;;  %p3195_p7 = por %p3194_p10, %p3193_p8 }
 0x343   : > { %p3191_p6 = pneg %p3190_p4 }
 0x345   : > { %p3196_p11 = pnand %p3195_p7, %p3191_p6 }
 0x347   : > { %3199 = shalt.err (!%p3196_p11)
}
 0x348   : > { %s3307_s30 = smov 128   ;;  %s3308_s24 = smov 8  }
 0x349   : > { %2704 = dma.vmem_to_hbm [thread:$0]  (%p3428_p2), %s2393_s28, 512, %s2395_s6, %s2380_s21, %s3307_s30, %s3307_s30, %s3308_s24  }
 0x34a PF: > { %p2710_p12 = scmp.ge.s32.totalorder %s3298_s19, 2  ;;  %s2409_s3 = sand.u32 1, %s3258_s9  }
 0x34b   : > { %s2410_s23 = scalar_lea.sflag [#allocation5], %s2409_s3 }
 0x34c   : > { %p2707_p5 = pnand %p2710_p12, %p3432_p3 }
 0x34e   : > { %p2708_p9 = pneg %p2707_p5 }
 0x350   : > { %3253 = dma.done.wait (%p2708_p9), %s2410_s23, 512  }
 0x351   : > { %3255 = vsyncadd (%p2708_p9), %s2410_s23, 4294966784  ;;  %s21_s19 = sadd.s32 1, %s3298_s19   ;;  %s8807_s8 = sld [smem:[#allocation16_spill]] }
 0x352   : > { %p18_p13 = scmp.ge.s32.totalorder %s21_s19, 6   ;;  %s8808_s15 = sld [smem:[#allocation12_spill]] }
 0x353   : > { %s8809_s16 = sld [smem:[#allocation13_spill]]  ;;  %s8812_s9 = smov %s3262_s10 }
 0x354   : > { %s8810_s17 = sld [smem:[#allocation14_spill]]  ;;  %s8813_s10 = smov %s3266_s11 }
 0x355   : > { %s8811_s18 = sld [smem:[#allocation15_spill]]  ;;  %s8814_s11 = smov %s3414_s5 }
 0x356   : > { %s8815_s12 = smov %s3274_s13  ;;  %s8816_s13 = smov %s3278_s14 }
 0x357   : > { %s8817_s14 = smov %s8807_s8  ;;  %20 = sbr.rel (!%p18_p13) target bundleno = 13 (0xd), region = 108 }
 0x35c   :  { %2416 = vsyncpa [#allocation4], 1 }
 0x35d   :  { %2418 = vsyncpa [#allocation4 + $0x1], 1 }
 0x35e   :  { %2419 = vsyncpa [#allocation7], 1 }
 0x35f   :  { %2421 = vsyncpa [#allocation7 + $0x1], 1 }
 0x360   :  { %2422 = vsyncpa [#allocation5], 1 }
 0x361   :  { %2424 = vsyncpa [#allocation5 + $0x1], 1 }

</bundles_post_ra>
